<compile_context>
chip_gen: v5e
topology: v5e:2x2
jax: 0.10.0
libtpu: 0.0.40
codegen_flags: <defaults>
</compile_context>

<pallas_src>
import functools
import numpy as np
import jax
import jax.numpy as jnp
from jax.experimental import pallas as pl
from jax.experimental.pallas import tpu as pltpu

EPS = 1e-5


def _bn_relu(y, g, be):
    """Training-mode BatchNorm (batch stats over rows, biased var) + ReLU."""
    m = jnp.mean(y, axis=0, keepdims=True)
    msq = jnp.mean(y * y, axis=0, keepdims=True)
    v = msq - m * m
    scale = g * jax.lax.rsqrt(v + EPS)
    shift = be - m * scale
    return jnp.maximum(y * scale + shift, 0.0)


def _upblock_kernel(xp_ref, w1_ref, b1_ref, g1_ref, be1_ref,
                    w2_ref, b2_ref, g2_ref, be2_ref,
                    wd_ref, bd_ref,
                    out_ref, im1, pad2, im2, *, final_layer):
    """Whole-array kernel (no grid): everything lives in VMEM.

    xp_ref : (N, H+2, W+2, Cin)  spatially pre-padded, channel-concatenated input
    w1_ref : (9*Cin, Cmid)       conv1 weights, rows ordered (dy, dx, cin)
    w2_ref : (9*Cmid, Cout)      conv2 weights
    wd_ref : (Cout, 4*Cout)      deconv weights, columns ordered (kh, kw, co)
    b*/g*/be*/bd : (1, C) row vectors
    out_ref: (R, Cout)   if final_layer   (R = N*H*W, row order (n, h, w))
             (R, 4*Cout) otherwise        (columns ordered (kh, kw, co))
    im1    : (R, 9*Cin)   im2col scratch for conv1
    pad2   : (N, H+2, W+2, Cmid) halo-padded conv1 activation scratch
    im2    : (R, 9*Cmid)  im2col scratch for conv2
    """
    N, Hp2, Wp2, Cin = xp_ref.shape
    H, W = Hp2 - 2, Wp2 - 2
    Cmid = w1_ref.shape[1]
    R = N * H * W

    # ---- conv1: build im2col slab once, ONE MXU matmul over K = 9*Cin ----
    for t in range(9):
        dy, dx = divmod(t, 3)
        im1[:, t * Cin:(t + 1) * Cin] = (
            xp_ref[:, dy:dy + H, dx:dx + W, :].reshape(R, Cin))
    y1 = jnp.dot(im1[...], w1_ref[...], preferred_element_type=jnp.float32)
    y1 = _bn_relu(y1 + b1_ref[...], g1_ref[...], be1_ref[...])

    # ---- re-pad intermediate: zero ONLY the 1-px halo, write interior once ----
    pad2[:, 0:1, :, :] = jnp.zeros((N, 1, Wp2, Cmid), jnp.float32)
    pad2[:, H + 1:H + 2, :, :] = jnp.zeros((N, 1, Wp2, Cmid), jnp.float32)
    pad2[:, 1:H + 1, 0:1, :] = jnp.zeros((N, H, 1, Cmid), jnp.float32)
    pad2[:, 1:H + 1, W + 1:W + 2, :] = jnp.zeros((N, H, 1, Cmid), jnp.float32)
    pad2[:, 1:H + 1, 1:W + 1, :] = y1.reshape(N, H, W, Cmid)

    # ---- conv2: im2col + ONE MXU matmul over K = 9*Cmid ----
    for t in range(9):
        dy, dx = divmod(t, 3)
        im2[:, t * Cmid:(t + 1) * Cmid] = (
            pad2[:, dy:dy + H, dx:dx + W, :].reshape(R, Cmid))
    y2 = jnp.dot(im2[...], w2_ref[...], preferred_element_type=jnp.float32)
    y2 = _bn_relu(y2 + b2_ref[...], g2_ref[...], be2_ref[...])

    if final_layer:
        out_ref[...] = y2                                   # (R, Cout)
    else:
        # ConvTranspose2d(k=2, s=2): stride == kernel => one matmul over 4 taps
        yd = jnp.dot(y2, wd_ref[...],
                     preferred_element_type=jnp.float32) + bd_ref[...]
        out_ref[...] = yd                                   # (R, 4*Cout)


def upblock_forward(x1, x2, params, final_layer=False):
    """x1, x2: NCHW float32. Returns NCHW float32 (like the PyTorch module)."""
    x1n = jnp.transpose(x1, (0, 2, 3, 1)).astype(jnp.float32)
    if x2 is not None:
        x2n = jnp.transpose(x2, (0, 2, 3, 1)).astype(jnp.float32)
        dh = x2n.shape[1] - x1n.shape[1]
        dw = x2n.shape[2] - x1n.shape[2]
        x1n = jnp.pad(x1n, ((0, 0),
                            (dh // 2, dh - dh // 2),
                            (dw // 2, dw - dw // 2),
                            (0, 0)))
        xin = jnp.concatenate([x2n, x1n], axis=-1)
    else:
        xin = x1n

    N, H, W, Cin = xin.shape
    xp = jnp.pad(xin, ((0, 0), (1, 1), (1, 1), (0, 0)))  # pad=1 for conv1

    Cmid = params["w1"].shape[0]
    Cout = params["w2"].shape[0]
    R = N * H * W

    # PyTorch Conv2d weight (Cout, Cin, 3, 3) -> (9*Cin, Cout), rows (dy, dx, cin)
    w1 = jnp.transpose(params["w1"], (2, 3, 1, 0)).reshape(9 * Cin, Cmid)
    w2 = jnp.transpose(params["w2"], (2, 3, 1, 0)).reshape(9 * Cmid, Cout)
    # ConvTranspose2d weight (Cin=Cout, Cout, 2, 2) -> (Cout, 4*Cout), cols (kh, kw, co)
    wd = jnp.transpose(params["wd"], (0, 2, 3, 1)).reshape(Cout, 4 * Cout)

    b1 = params["b1"].reshape(1, Cmid)
    g1 = params["g1"].reshape(1, Cmid)
    be1 = params["be1"].reshape(1, Cmid)
    b2 = params["b2"].reshape(1, Cout)
    g2 = params["g2"].reshape(1, Cout)
    be2 = params["be2"].reshape(1, Cout)
    bd = jnp.tile(params["bd"], 4).reshape(1, 4 * Cout)

    out_cols = Cout if final_layer else 4 * Cout
    out_shape = jax.ShapeDtypeStruct((R, out_cols), jnp.float32)

    # explicit VMEM budget (actual buffers + headroom), capped for v7x's 64 MiB
    def _nbytes(shape):
        return int(np.prod(shape)) * 4

    vmem_need = sum(map(_nbytes, [
        xp.shape, w1.shape, w2.shape, wd.shape,
        (R, 9 * Cin), (N, H + 2, W + 2, Cmid), (R, 9 * Cmid),
        (R, out_cols),
    ]))
    vmem_limit = int(min(max(2 * vmem_need + (4 << 20), 16 << 20), 64 << 20))

    out = pl.pallas_call(
        functools.partial(_upblock_kernel, final_layer=final_layer),
        out_shape=out_shape,
        in_specs=[pl.BlockSpec(memory_space=pltpu.MemorySpace.VMEM)] * 11,
        out_specs=pl.BlockSpec(memory_space=pltpu.MemorySpace.VMEM),
        scratch_shapes=[
            pltpu.VMEM((R, 9 * Cin), jnp.float32),              # im2col conv1
            pltpu.VMEM((N, H + 2, W + 2, Cmid), jnp.float32),   # halo-padded y1
            pltpu.VMEM((R, 9 * Cmid), jnp.float32),             # im2col conv2
        ],
        compiler_params=pltpu.CompilerParams(vmem_limit_bytes=vmem_limit),
    )(xp, w1, b1, g1, be1, w2, b2, g2, be2, wd, bd)

    if final_layer:
        return jnp.transpose(out.reshape(N, H, W, Cout), (0, 3, 1, 2))

    # interleave deconv taps (layout plumbing, done by XLA on the tiny slab):
    # (R, 4*Cout) -> (N,H,W,kh,kw,C) -> (N,2H,2W,C) -> NCHW
    d = out.reshape(N, H, W, 2, 2, Cout)
    d = jnp.transpose(d, (0, 1, 3, 2, 4, 5)).reshape(N, 2 * H, 2 * W, Cout)
    return jnp.transpose(d, (0, 3, 1, 2))


# ------------------------- deterministic parameter init -------------------------
def init_params(key, in_channels, out_channels, mid_channels=None):
    if mid_channels is None:
        mid_channels = out_channels
    ks = jax.random.split(key, 6)

    def u(k, shape, fan_in):
        bound = 1.0 / np.sqrt(fan_in)
        return jax.random.uniform(k, shape, jnp.float32, -bound, bound)

    return {
        "w1": u(ks[0], (mid_channels, in_channels, 3, 3), in_channels * 9),
        "b1": u(ks[1], (mid_channels,), in_channels * 9),
        "g1": jnp.ones((mid_channels,), jnp.float32),
        "be1": jnp.zeros((mid_channels,), jnp.float32),
        "w2": u(ks[2], (out_channels, mid_channels, 3, 3), mid_channels * 9),
        "b2": u(ks[3], (out_channels,), mid_channels * 9),
        "g2": jnp.ones((out_channels,), jnp.float32),
        "be2": jnp.zeros((out_channels,), jnp.float32),
        "wd": u(ks[4], (out_channels, out_channels, 2, 2), out_channels * 4),
        "bd": u(ks[5], (out_channels,), out_channels * 4),
    }


# ------------------------- pure-JAX reference (for checking) -------------------------
_HI = jax.lax.Precision.HIGHEST


def _conv3x3_ref(x_nhwc, w_oihw, b):
    w = jnp.transpose(w_oihw, (2, 3, 1, 0))  # (3,3,Cin,Cout)
    N, H, W, _ = x_nhwc.shape
    xp = jnp.pad(x_nhwc, ((0, 0), (1, 1), (1, 1), (0, 0)))
    out = jnp.zeros((N, H, W, w.shape[-1]), jnp.float32)
    for dy in range(3):
        for dx in range(3):
            out = out + jnp.einsum('nhwc,cd->nhwd',
                                   xp[:, dy:dy + H, dx:dx + W, :], w[dy, dx],
                                   precision=_HI)
    return out + b


def _bn_relu_ref(x, g, be):
    m = jnp.mean(x, axis=(0, 1, 2), keepdims=True)
    v = jnp.mean((x - m) ** 2, axis=(0, 1, 2), keepdims=True)
    return jnp.maximum((x - m) * jax.lax.rsqrt(v + EPS) * g + be, 0.0)


def _deconv_ref(x_nhwc, w_iohw, b):
    N, H, W, _ = x_nhwc.shape
    Cout = w_iohw.shape[1]
    out = jnp.zeros((N, 2 * H, 2 * W, Cout), jnp.float32)
    for kh in range(2):
        for kw in range(2):
            val = jnp.einsum('nhwc,cd->nhwd', x_nhwc, w_iohw[:, :, kh, kw],
                             precision=_HI) + b
            out = out.at[:, kh::2, kw::2, :].set(val)
    return out


def ref_forward(x1, x2, p, final_layer=False):
    x1n = jnp.transpose(x1, (0, 2, 3, 1))
    if x2 is not None:
        x2n = jnp.transpose(x2, (0, 2, 3, 1))
        dh = x2n.shape[1] - x1n.shape[1]
        dw = x2n.shape[2] - x1n.shape[2]
        x1n = jnp.pad(x1n, ((0, 0), (dh // 2, dh - dh // 2),
                            (dw // 2, dw - dw // 2), (0, 0)))
        x = jnp.concatenate([x2n, x1n], axis=-1)
    else:
        x = x1n
    x = _bn_relu_ref(_conv3x3_ref(x, p["w1"], p["b1"]), p["g1"], p["be1"])
    x = _bn_relu_ref(_conv3x3_ref(x, p["w2"], p["b2"]), p["g2"], p["be2"])
    if final_layer:
        return jnp.transpose(x, (0, 3, 1, 2))
    y = _deconv_ref(x, p["wd"], p["bd"])
    return jnp.transpose(y, (0, 3, 1, 2))


if __name__ == "__main__":
    key = jax.random.PRNGKey(0)
    N, C, H, W = 2, 4, 8, 8               # x1 / x2 each have C=out_channels channels
    in_channels, out_channels = 2 * C, C  # concat([x2, x1]) => in_channels

    k1, k2, kp = jax.random.split(key, 3)
    x1 = jax.random.normal(k1, (N, C, H, W), jnp.float32)
    x2 = jax.random.normal(k2, (N, C, H, W), jnp.float32)
    params = init_params(kp, in_channels, out_channels)

    # main path (conv stack + deconv)
    out = jax.block_until_ready(upblock_forward(x1, x2, params, final_layer=False))
    assert out.shape == (N, out_channels, 2 * H, 2 * W)
    ref = ref_forward(x1, x2, params, final_layer=False)
    np.testing.assert_allclose(np.asarray(out), np.asarray(ref),
                               rtol=1e-3, atol=1e-3)

    # final_layer path (conv stack only, no deconv compute/writeback)
    out_f = jax.block_until_ready(upblock_forward(x1, x2, params, final_layer=True))
    assert out_f.shape == (N, out_channels, H, W)
    ref_f = ref_forward(x1, x2, params, final_layer=True)
    np.testing.assert_allclose(np.asarray(out_f), np.asarray(ref_f),
                               rtol=1e-3, atol=1e-3)

    print("KERNEL_OK")
</pallas_src>

<mosaic_0001>
module attributes {stable_mosaic.version = 11 : i64} {
  func.func @_upblock_kernel(%arg0: memref<2x10x10x8xf32, #tpu.memory_space<vmem>>, %arg1: memref<72x4xf32, #tpu.memory_space<vmem>>, %arg2: memref<1x4xf32, #tpu.memory_space<vmem>>, %arg3: memref<1x4xf32, #tpu.memory_space<vmem>>, %arg4: memref<1x4xf32, #tpu.memory_space<vmem>>, %arg5: memref<36x4xf32, #tpu.memory_space<vmem>>, %arg6: memref<1x4xf32, #tpu.memory_space<vmem>>, %arg7: memref<1x4xf32, #tpu.memory_space<vmem>>, %arg8: memref<1x4xf32, #tpu.memory_space<vmem>>, %arg9: memref<4x16xf32, #tpu.memory_space<vmem>>, %arg10: memref<1x16xf32, #tpu.memory_space<vmem>>, %arg11: memref<128x16xf32, #tpu.memory_space<vmem>>, %arg12: memref<128x72xf32, #tpu.memory_space<vmem>>, %arg13: memref<2x10x10x4xf32, #tpu.memory_space<vmem>>, %arg14: memref<128x36xf32, #tpu.memory_space<vmem>>) attributes {dimension_semantics = [], scalar_prefetch = 0 : i64, scratch_operands = 3 : i64, tpu.core_type = #tpu.core_type<tc>} {
    %c0 = arith.constant 0 : index
    %c0_0 = arith.constant 0 : index
    %c0_1 = arith.constant 0 : index
    %c0_2 = arith.constant 0 : index
    %0 = vector.load %arg0[%c0, %c0_0, %c0_1, %c0_2] : memref<2x10x10x8xf32, #tpu.memory_space<vmem>>, vector<2x8x8x8xf32>
    %1 = vector.shape_cast %0 : vector<2x8x8x8xf32> to vector<128x8xf32>
    %c0_3 = arith.constant 0 : index
    %c0_4 = arith.constant 0 : index
    %2 = vector.load %arg12[%c0_3, %c0_4] : memref<128x72xf32, #tpu.memory_space<vmem>>, vector<128x8xf32>
    tpu.vector_store %arg12[%c0_3, %c0_4], %1 {strides = array<i32>} : memref<128x72xf32, #tpu.memory_space<vmem>>, vector<128x8xf32>,
    %c0_5 = arith.constant 0 : index
    %c0_6 = arith.constant 0 : index
    %c1 = arith.constant 1 : index
    %c0_7 = arith.constant 0 : index
    %3 = vector.load %arg0[%c0_5, %c0_6, %c1, %c0_7] : memref<2x10x10x8xf32, #tpu.memory_space<vmem>>, vector<2x8x8x8xf32>
    %4 = vector.shape_cast %3 : vector<2x8x8x8xf32> to vector<128x8xf32>
    %c0_8 = arith.constant 0 : index
    %c8 = arith.constant 8 : index
    %5 = vector.load %arg12[%c0_8, %c8] : memref<128x72xf32, #tpu.memory_space<vmem>>, vector<128x8xf32>
    tpu.vector_store %arg12[%c0_8, %c8], %4 {strides = array<i32>} : memref<128x72xf32, #tpu.memory_space<vmem>>, vector<128x8xf32>,
    %c0_9 = arith.constant 0 : index
    %c0_10 = arith.constant 0 : index
    %c2 = arith.constant 2 : index
    %c0_11 = arith.constant 0 : index
    %6 = vector.load %arg0[%c0_9, %c0_10, %c2, %c0_11] : memref<2x10x10x8xf32, #tpu.memory_space<vmem>>, vector<2x8x8x8xf32>
    %7 = vector.shape_cast %6 : vector<2x8x8x8xf32> to vector<128x8xf32>
    %c0_12 = arith.constant 0 : index
    %c16 = arith.constant 16 : index
    %8 = vector.load %arg12[%c0_12, %c16] : memref<128x72xf32, #tpu.memory_space<vmem>>, vector<128x8xf32>
    tpu.vector_store %arg12[%c0_12, %c16], %7 {strides = array<i32>} : memref<128x72xf32, #tpu.memory_space<vmem>>, vector<128x8xf32>,
    %c0_13 = arith.constant 0 : index
    %c1_14 = arith.constant 1 : index
    %c0_15 = arith.constant 0 : index
    %c0_16 = arith.constant 0 : index
    %9 = vector.load %arg0[%c0_13, %c1_14, %c0_15, %c0_16] : memref<2x10x10x8xf32, #tpu.memory_space<vmem>>, vector<2x8x8x8xf32>
    %10 = vector.shape_cast %9 : vector<2x8x8x8xf32> to vector<128x8xf32>
    %c0_17 = arith.constant 0 : index
    %c24 = arith.constant 24 : index
    %11 = vector.load %arg12[%c0_17, %c24] : memref<128x72xf32, #tpu.memory_space<vmem>>, vector<128x8xf32>
    tpu.vector_store %arg12[%c0_17, %c24], %10 {strides = array<i32>} : memref<128x72xf32, #tpu.memory_space<vmem>>, vector<128x8xf32>,
    %c0_18 = arith.constant 0 : index
    %c1_19 = arith.constant 1 : index
    %c1_20 = arith.constant 1 : index
    %c0_21 = arith.constant 0 : index
    %12 = vector.load %arg0[%c0_18, %c1_19, %c1_20, %c0_21] : memref<2x10x10x8xf32, #tpu.memory_space<vmem>>, vector<2x8x8x8xf32>
    %13 = vector.shape_cast %12 : vector<2x8x8x8xf32> to vector<128x8xf32>
    %c0_22 = arith.constant 0 : index
    %c32 = arith.constant 32 : index
    %14 = vector.load %arg12[%c0_22, %c32] : memref<128x72xf32, #tpu.memory_space<vmem>>, vector<128x8xf32>
    tpu.vector_store %arg12[%c0_22, %c32], %13 {strides = array<i32>} : memref<128x72xf32, #tpu.memory_space<vmem>>, vector<128x8xf32>,
    %c0_23 = arith.constant 0 : index
    %c1_24 = arith.constant 1 : index
    %c2_25 = arith.constant 2 : index
    %c0_26 = arith.constant 0 : index
    %15 = vector.load %arg0[%c0_23, %c1_24, %c2_25, %c0_26] : memref<2x10x10x8xf32, #tpu.memory_space<vmem>>, vector<2x8x8x8xf32>
    %16 = vector.shape_cast %15 : vector<2x8x8x8xf32> to vector<128x8xf32>
    %c0_27 = arith.constant 0 : index
    %c40 = arith.constant 40 : index
    %17 = vector.load %arg12[%c0_27, %c40] : memref<128x72xf32, #tpu.memory_space<vmem>>, vector<128x8xf32>
    tpu.vector_store %arg12[%c0_27, %c40], %16 {strides = array<i32>} : memref<128x72xf32, #tpu.memory_space<vmem>>, vector<128x8xf32>,
    %c0_28 = arith.constant 0 : index
    %c2_29 = arith.constant 2 : index
    %c0_30 = arith.constant 0 : index
    %c0_31 = arith.constant 0 : index
    %18 = vector.load %arg0[%c0_28, %c2_29, %c0_30, %c0_31] : memref<2x10x10x8xf32, #tpu.memory_space<vmem>>, vector<2x8x8x8xf32>
    %19 = vector.shape_cast %18 : vector<2x8x8x8xf32> to vector<128x8xf32>
    %c0_32 = arith.constant 0 : index
    %c48 = arith.constant 48 : index
    %20 = vector.load %arg12[%c0_32, %c48] : memref<128x72xf32, #tpu.memory_space<vmem>>, vector<128x8xf32>
    tpu.vector_store %arg12[%c0_32, %c48], %19 {strides = array<i32>} : memref<128x72xf32, #tpu.memory_space<vmem>>, vector<128x8xf32>,
    %c0_33 = arith.constant 0 : index
    %c2_34 = arith.constant 2 : index
    %c1_35 = arith.constant 1 : index
    %c0_36 = arith.constant 0 : index
    %21 = vector.load %arg0[%c0_33, %c2_34, %c1_35, %c0_36] : memref<2x10x10x8xf32, #tpu.memory_space<vmem>>, vector<2x8x8x8xf32>
    %22 = vector.shape_cast %21 : vector<2x8x8x8xf32> to vector<128x8xf32>
    %c0_37 = arith.constant 0 : index
    %c56 = arith.constant 56 : index
    %23 = vector.load %arg12[%c0_37, %c56] : memref<128x72xf32, #tpu.memory_space<vmem>>, vector<128x8xf32>
    tpu.vector_store %arg12[%c0_37, %c56], %22 {strides = array<i32>} : memref<128x72xf32, #tpu.memory_space<vmem>>, vector<128x8xf32>,
    %c0_38 = arith.constant 0 : index
    %c2_39 = arith.constant 2 : index
    %c2_40 = arith.constant 2 : index
    %c0_41 = arith.constant 0 : index
    %24 = vector.load %arg0[%c0_38, %c2_39, %c2_40, %c0_41] : memref<2x10x10x8xf32, #tpu.memory_space<vmem>>, vector<2x8x8x8xf32>
    %25 = vector.shape_cast %24 : vector<2x8x8x8xf32> to vector<128x8xf32>
    %c0_42 = arith.constant 0 : index
    %c64 = arith.constant 64 : index
    %26 = vector.load %arg12[%c0_42, %c64] : memref<128x72xf32, #tpu.memory_space<vmem>>, vector<128x8xf32>
    tpu.vector_store %arg12[%c0_42, %c64], %25 {strides = array<i32>} : memref<128x72xf32, #tpu.memory_space<vmem>>, vector<128x8xf32>,
    %c0_43 = arith.constant 0 : index
    %c0_44 = arith.constant 0 : index
    %27 = vector.load %arg12[%c0_43, %c0_44] : memref<128x72xf32, #tpu.memory_space<vmem>>, vector<128x72xf32>
    %c0_45 = arith.constant 0 : index
    %c0_46 = arith.constant 0 : index
    %28 = vector.load %arg1[%c0_45, %c0_46] : memref<72x4xf32, #tpu.memory_space<vmem>>, vector<72x4xf32>
    %cst = arith.constant dense<0.000000e+00> : vector<128x4xf32>
    %29 = tpu.matmul %27, %28, %cst {dimension_numbers = #tpu.dot_dimension_numbers<[1], [0], [0], [1], [0, 0, 1, 1], [], []>} : vector<128x72xf32>, vector<72x4xf32>, vector<128x4xf32> -> vector<128x4xf32>
    %c0_47 = arith.constant 0 : index
    %c0_48 = arith.constant 0 : index
    %30 = vector.load %arg2[%c0_47, %c0_48] : memref<1x4xf32, #tpu.memory_space<vmem>>, vector<1x4xf32>
    %31 = vector.broadcast %30 : vector<1x4xf32> to vector<128x4xf32>
    %32 = arith.addf %29, %31 : vector<128x4xf32>
    %c0_49 = arith.constant 0 : index
    %c0_50 = arith.constant 0 : index
    %33 = vector.load %arg3[%c0_49, %c0_50] : memref<1x4xf32, #tpu.memory_space<vmem>>, vector<1x4xf32>
    %c0_51 = arith.constant 0 : index
    %c0_52 = arith.constant 0 : index
    %34 = vector.load %arg4[%c0_51, %c0_52] : memref<1x4xf32, #tpu.memory_space<vmem>>, vector<1x4xf32>
    %cst_53 = arith.constant dense<0.000000e+00> : vector<4xf32>
    %35 = vector.multi_reduction <add>, %32, %cst_53 [0] : vector<128x4xf32> to vector<4xf32>
    %36 = vector.shape_cast %35 : vector<4xf32> to vector<1x4xf32>
    %cst_54 = arith.constant 1.280000e+02 : f32
    %37 = vector.broadcast %cst_54 : f32 to vector<1x4xf32>
    %38 = arith.divf %36, %37 : vector<1x4xf32>
    %39 = arith.mulf %32, %32 : vector<128x4xf32>
    %cst_55 = arith.constant dense<0.000000e+00> : vector<4xf32>
    %40 = vector.multi_reduction <add>, %39, %cst_55 [0] : vector<128x4xf32> to vector<4xf32>
    %41 = vector.shape_cast %40 : vector<4xf32> to vector<1x4xf32>
    %cst_56 = arith.constant 1.280000e+02 : f32
    %42 = vector.broadcast %cst_56 : f32 to vector<1x4xf32>
    %43 = arith.divf %41, %42 : vector<1x4xf32>
    %44 = arith.mulf %38, %38 : vector<1x4xf32>
    %45 = arith.subf %43, %44 : vector<1x4xf32>
    %cst_57 = arith.constant 9.99999974E-6 : f32
    %46 = vector.broadcast %cst_57 : f32 to vector<1x4xf32>
    %47 = arith.addf %45, %46 : vector<1x4xf32>
    %48 = math.rsqrt %47 : vector<1x4xf32>
    %49 = arith.mulf %33, %48 : vector<1x4xf32>
    %50 = arith.mulf %38, %49 : vector<1x4xf32>
    %51 = arith.subf %34, %50 : vector<1x4xf32>
    %52 = vector.broadcast %49 : vector<1x4xf32> to vector<128x4xf32>
    %53 = arith.mulf %32, %52 : vector<128x4xf32>
    %54 = vector.broadcast %51 : vector<1x4xf32> to vector<128x4xf32>
    %55 = arith.addf %53, %54 : vector<128x4xf32>
    %cst_58 = arith.constant 0.000000e+00 : f32
    %56 = vector.broadcast %cst_58 : f32 to vector<128x4xf32>
    %57 = arith.maximumf %55, %56 : vector<128x4xf32>
    %cst_59 = arith.constant 0.000000e+00 : f32
    %58 = vector.broadcast %cst_59 : f32 to vector<2x1x10x4xf32>
    %c0_60 = arith.constant 0 : index
    %c0_61 = arith.constant 0 : index
    %c0_62 = arith.constant 0 : index
    %c0_63 = arith.constant 0 : index
    %59 = vector.load %arg13[%c0_60, %c0_61, %c0_62, %c0_63] : memref<2x10x10x4xf32, #tpu.memory_space<vmem>>, vector<2x1x10x4xf32>
    tpu.vector_store %arg13[%c0_60, %c0_61, %c0_62, %c0_63], %58 {strides = array<i32>} : memref<2x10x10x4xf32, #tpu.memory_space<vmem>>, vector<2x1x10x4xf32>,
    %cst_64 = arith.constant 0.000000e+00 : f32
    %60 = vector.broadcast %cst_64 : f32 to vector<2x1x10x4xf32>
    %c0_65 = arith.constant 0 : index
    %c9 = arith.constant 9 : index
    %c0_66 = arith.constant 0 : index
    %c0_67 = arith.constant 0 : index
    %61 = vector.load %arg13[%c0_65, %c9, %c0_66, %c0_67] : memref<2x10x10x4xf32, #tpu.memory_space<vmem>>, vector<2x1x10x4xf32>
    tpu.vector_store %arg13[%c0_65, %c9, %c0_66, %c0_67], %60 {strides = array<i32>} : memref<2x10x10x4xf32, #tpu.memory_space<vmem>>, vector<2x1x10x4xf32>,
    %cst_68 = arith.constant 0.000000e+00 : f32
    %62 = vector.broadcast %cst_68 : f32 to vector<2x8x1x4xf32>
    %c0_69 = arith.constant 0 : index
    %c1_70 = arith.constant 1 : index
    %c0_71 = arith.constant 0 : index
    %c0_72 = arith.constant 0 : index
    %63 = vector.load %arg13[%c0_69, %c1_70, %c0_71, %c0_72] : memref<2x10x10x4xf32, #tpu.memory_space<vmem>>, vector<2x8x1x4xf32>
    tpu.vector_store %arg13[%c0_69, %c1_70, %c0_71, %c0_72], %62 {strides = array<i32>} : memref<2x10x10x4xf32, #tpu.memory_space<vmem>>, vector<2x8x1x4xf32>,
    %cst_73 = arith.constant 0.000000e+00 : f32
    %64 = vector.broadcast %cst_73 : f32 to vector<2x8x1x4xf32>
    %c0_74 = arith.constant 0 : index
    %c1_75 = arith.constant 1 : index
    %c9_76 = arith.constant 9 : index
    %c0_77 = arith.constant 0 : index
    %65 = vector.load %arg13[%c0_74, %c1_75, %c9_76, %c0_77] : memref<2x10x10x4xf32, #tpu.memory_space<vmem>>, vector<2x8x1x4xf32>
    tpu.vector_store %arg13[%c0_74, %c1_75, %c9_76, %c0_77], %64 {strides = array<i32>} : memref<2x10x10x4xf32, #tpu.memory_space<vmem>>, vector<2x8x1x4xf32>,
    %66 = vector.shape_cast %57 : vector<128x4xf32> to vector<2x8x8x4xf32>
    %c0_78 = arith.constant 0 : index
    %c1_79 = arith.constant 1 : index
    %c1_80 = arith.constant 1 : index
    %c0_81 = arith.constant 0 : index
    %67 = vector.load %arg13[%c0_78, %c1_79, %c1_80, %c0_81] : memref<2x10x10x4xf32, #tpu.memory_space<vmem>>, vector<2x8x8x4xf32>
    tpu.vector_store %arg13[%c0_78, %c1_79, %c1_80, %c0_81], %66 {strides = array<i32>} : memref<2x10x10x4xf32, #tpu.memory_space<vmem>>, vector<2x8x8x4xf32>,
    %c0_82 = arith.constant 0 : index
    %c0_83 = arith.constant 0 : index
    %c0_84 = arith.constant 0 : index
    %c0_85 = arith.constant 0 : index
    %68 = vector.load %arg13[%c0_82, %c0_83, %c0_84, %c0_85] : memref<2x10x10x4xf32, #tpu.memory_space<vmem>>, vector<2x8x8x4xf32>
    %69 = vector.shape_cast %68 : vector<2x8x8x4xf32> to vector<128x4xf32>
    %c0_86 = arith.constant 0 : index
    %c0_87 = arith.constant 0 : index
    %70 = vector.load %arg14[%c0_86, %c0_87] : memref<128x36xf32, #tpu.memory_space<vmem>>, vector<128x4xf32>
    tpu.vector_store %arg14[%c0_86, %c0_87], %69 {strides = array<i32>} : memref<128x36xf32, #tpu.memory_space<vmem>>, vector<128x4xf32>,
    %c0_88 = arith.constant 0 : index
    %c0_89 = arith.constant 0 : index
    %c1_90 = arith.constant 1 : index
    %c0_91 = arith.constant 0 : index
    %71 = vector.load %arg13[%c0_88, %c0_89, %c1_90, %c0_91] : memref<2x10x10x4xf32, #tpu.memory_space<vmem>>, vector<2x8x8x4xf32>
    %72 = vector.shape_cast %71 : vector<2x8x8x4xf32> to vector<128x4xf32>
    %c0_92 = arith.constant 0 : index
    %c4 = arith.constant 4 : index
    %73 = vector.load %arg14[%c0_92, %c4] : memref<128x36xf32, #tpu.memory_space<vmem>>, vector<128x4xf32>
    tpu.vector_store %arg14[%c0_92, %c4], %72 {strides = array<i32>} : memref<128x36xf32, #tpu.memory_space<vmem>>, vector<128x4xf32>,
    %c0_93 = arith.constant 0 : index
    %c0_94 = arith.constant 0 : index
    %c2_95 = arith.constant 2 : index
    %c0_96 = arith.constant 0 : index
    %74 = vector.load %arg13[%c0_93, %c0_94, %c2_95, %c0_96] : memref<2x10x10x4xf32, #tpu.memory_space<vmem>>, vector<2x8x8x4xf32>
    %75 = vector.shape_cast %74 : vector<2x8x8x4xf32> to vector<128x4xf32>
    %c0_97 = arith.constant 0 : index
    %c8_98 = arith.constant 8 : index
    %76 = vector.load %arg14[%c0_97, %c8_98] : memref<128x36xf32, #tpu.memory_space<vmem>>, vector<128x4xf32>
    tpu.vector_store %arg14[%c0_97, %c8_98], %75 {strides = array<i32>} : memref<128x36xf32, #tpu.memory_space<vmem>>, vector<128x4xf32>,
    %c0_99 = arith.constant 0 : index
    %c1_100 = arith.constant 1 : index
    %c0_101 = arith.constant 0 : index
    %c0_102 = arith.constant 0 : index
    %77 = vector.load %arg13[%c0_99, %c1_100, %c0_101, %c0_102] : memref<2x10x10x4xf32, #tpu.memory_space<vmem>>, vector<2x8x8x4xf32>
    %78 = vector.shape_cast %77 : vector<2x8x8x4xf32> to vector<128x4xf32>
    %c0_103 = arith.constant 0 : index
    %c12 = arith.constant 12 : index
    %79 = vector.load %arg14[%c0_103, %c12] : memref<128x36xf32, #tpu.memory_space<vmem>>, vector<128x4xf32>
    tpu.vector_store %arg14[%c0_103, %c12], %78 {strides = array<i32>} : memref<128x36xf32, #tpu.memory_space<vmem>>, vector<128x4xf32>,
    %c0_104 = arith.constant 0 : index
    %c1_105 = arith.constant 1 : index
    %c1_106 = arith.constant 1 : index
    %c0_107 = arith.constant 0 : index
    %80 = vector.load %arg13[%c0_104, %c1_105, %c1_106, %c0_107] : memref<2x10x10x4xf32, #tpu.memory_space<vmem>>, vector<2x8x8x4xf32>
    %81 = vector.shape_cast %80 : vector<2x8x8x4xf32> to vector<128x4xf32>
    %c0_108 = arith.constant 0 : index
    %c16_109 = arith.constant 16 : index
    %82 = vector.load %arg14[%c0_108, %c16_109] : memref<128x36xf32, #tpu.memory_space<vmem>>, vector<128x4xf32>
    tpu.vector_store %arg14[%c0_108, %c16_109], %81 {strides = array<i32>} : memref<128x36xf32, #tpu.memory_space<vmem>>, vector<128x4xf32>,
    %c0_110 = arith.constant 0 : index
    %c1_111 = arith.constant 1 : index
    %c2_112 = arith.constant 2 : index
    %c0_113 = arith.constant 0 : index
    %83 = vector.load %arg13[%c0_110, %c1_111, %c2_112, %c0_113] : memref<2x10x10x4xf32, #tpu.memory_space<vmem>>, vector<2x8x8x4xf32>
    %84 = vector.shape_cast %83 : vector<2x8x8x4xf32> to vector<128x4xf32>
    %c0_114 = arith.constant 0 : index
    %c20 = arith.constant 20 : index
    %85 = vector.load %arg14[%c0_114, %c20] : memref<128x36xf32, #tpu.memory_space<vmem>>, vector<128x4xf32>
    tpu.vector_store %arg14[%c0_114, %c20], %84 {strides = array<i32>} : memref<128x36xf32, #tpu.memory_space<vmem>>, vector<128x4xf32>,
    %c0_115 = arith.constant 0 : index
    %c2_116 = arith.constant 2 : index
    %c0_117 = arith.constant 0 : index
    %c0_118 = arith.constant 0 : index
    %86 = vector.load %arg13[%c0_115, %c2_116, %c0_117, %c0_118] : memref<2x10x10x4xf32, #tpu.memory_space<vmem>>, vector<2x8x8x4xf32>
    %87 = vector.shape_cast %86 : vector<2x8x8x4xf32> to vector<128x4xf32>
    %c0_119 = arith.constant 0 : index
    %c24_120 = arith.constant 24 : index
    %88 = vector.load %arg14[%c0_119, %c24_120] : memref<128x36xf32, #tpu.memory_space<vmem>>, vector<128x4xf32>
    tpu.vector_store %arg14[%c0_119, %c24_120], %87 {strides = array<i32>} : memref<128x36xf32, #tpu.memory_space<vmem>>, vector<128x4xf32>,
    %c0_121 = arith.constant 0 : index
    %c2_122 = arith.constant 2 : index
    %c1_123 = arith.constant 1 : index
    %c0_124 = arith.constant 0 : index
    %89 = vector.load %arg13[%c0_121, %c2_122, %c1_123, %c0_124] : memref<2x10x10x4xf32, #tpu.memory_space<vmem>>, vector<2x8x8x4xf32>
    %90 = vector.shape_cast %89 : vector<2x8x8x4xf32> to vector<128x4xf32>
    %c0_125 = arith.constant 0 : index
    %c28 = arith.constant 28 : index
    %91 = vector.load %arg14[%c0_125, %c28] : memref<128x36xf32, #tpu.memory_space<vmem>>, vector<128x4xf32>
    tpu.vector_store %arg14[%c0_125, %c28], %90 {strides = array<i32>} : memref<128x36xf32, #tpu.memory_space<vmem>>, vector<128x4xf32>,
    %c0_126 = arith.constant 0 : index
    %c2_127 = arith.constant 2 : index
    %c2_128 = arith.constant 2 : index
    %c0_129 = arith.constant 0 : index
    %92 = vector.load %arg13[%c0_126, %c2_127, %c2_128, %c0_129] : memref<2x10x10x4xf32, #tpu.memory_space<vmem>>, vector<2x8x8x4xf32>
    %93 = vector.shape_cast %92 : vector<2x8x8x4xf32> to vector<128x4xf32>
    %c0_130 = arith.constant 0 : index
    %c32_131 = arith.constant 32 : index
    %94 = vector.load %arg14[%c0_130, %c32_131] : memref<128x36xf32, #tpu.memory_space<vmem>>, vector<128x4xf32>
    tpu.vector_store %arg14[%c0_130, %c32_131], %93 {strides = array<i32>} : memref<128x36xf32, #tpu.memory_space<vmem>>, vector<128x4xf32>,
    %c0_132 = arith.constant 0 : index
    %c0_133 = arith.constant 0 : index
    %95 = vector.load %arg14[%c0_132, %c0_133] : memref<128x36xf32, #tpu.memory_space<vmem>>, vector<128x36xf32>
    %c0_134 = arith.constant 0 : index
    %c0_135 = arith.constant 0 : index
    %96 = vector.load %arg5[%c0_134, %c0_135] : memref<36x4xf32, #tpu.memory_space<vmem>>, vector<36x4xf32>
    %cst_136 = arith.constant dense<0.000000e+00> : vector<128x4xf32>
    %97 = tpu.matmul %95, %96, %cst_136 {dimension_numbers = #tpu.dot_dimension_numbers<[1], [0], [0], [1], [0, 0, 1, 1], [], []>} : vector<128x36xf32>, vector<36x4xf32>, vector<128x4xf32> -> vector<128x4xf32>
    %c0_137 = arith.constant 0 : index
    %c0_138 = arith.constant 0 : index
    %98 = vector.load %arg6[%c0_137, %c0_138] : memref<1x4xf32, #tpu.memory_space<vmem>>, vector<1x4xf32>
    %99 = vector.broadcast %98 : vector<1x4xf32> to vector<128x4xf32>
    %100 = arith.addf %97, %99 : vector<128x4xf32>
    %c0_139 = arith.constant 0 : index
    %c0_140 = arith.constant 0 : index
    %101 = vector.load %arg7[%c0_139, %c0_140] : memref<1x4xf32, #tpu.memory_space<vmem>>, vector<1x4xf32>
    %c0_141 = arith.constant 0 : index
    %c0_142 = arith.constant 0 : index
    %102 = vector.load %arg8[%c0_141, %c0_142] : memref<1x4xf32, #tpu.memory_space<vmem>>, vector<1x4xf32>
    %cst_143 = arith.constant dense<0.000000e+00> : vector<4xf32>
    %103 = vector.multi_reduction <add>, %100, %cst_143 [0] : vector<128x4xf32> to vector<4xf32>
    %104 = vector.shape_cast %103 : vector<4xf32> to vector<1x4xf32>
    %cst_144 = arith.constant 1.280000e+02 : f32
    %105 = vector.broadcast %cst_144 : f32 to vector<1x4xf32>
    %106 = arith.divf %104, %105 : vector<1x4xf32>
    %107 = arith.mulf %100, %100 : vector<128x4xf32>
    %cst_145 = arith.constant dense<0.000000e+00> : vector<4xf32>
    %108 = vector.multi_reduction <add>, %107, %cst_145 [0] : vector<128x4xf32> to vector<4xf32>
    %109 = vector.shape_cast %108 : vector<4xf32> to vector<1x4xf32>
    %cst_146 = arith.constant 1.280000e+02 : f32
    %110 = vector.broadcast %cst_146 : f32 to vector<1x4xf32>
    %111 = arith.divf %109, %110 : vector<1x4xf32>
    %112 = arith.mulf %106, %106 : vector<1x4xf32>
    %113 = arith.subf %111, %112 : vector<1x4xf32>
    %cst_147 = arith.constant 9.99999974E-6 : f32
    %114 = vector.broadcast %cst_147 : f32 to vector<1x4xf32>
    %115 = arith.addf %113, %114 : vector<1x4xf32>
    %116 = math.rsqrt %115 : vector<1x4xf32>
    %117 = arith.mulf %101, %116 : vector<1x4xf32>
    %118 = arith.mulf %106, %117 : vector<1x4xf32>
    %119 = arith.subf %102, %118 : vector<1x4xf32>
    %120 = vector.broadcast %117 : vector<1x4xf32> to vector<128x4xf32>
    %121 = arith.mulf %100, %120 : vector<128x4xf32>
    %122 = vector.broadcast %119 : vector<1x4xf32> to vector<128x4xf32>
    %123 = arith.addf %121, %122 : vector<128x4xf32>
    %cst_148 = arith.constant 0.000000e+00 : f32
    %124 = vector.broadcast %cst_148 : f32 to vector<128x4xf32>
    %125 = arith.maximumf %123, %124 : vector<128x4xf32>
    %c0_149 = arith.constant 0 : index
    %c0_150 = arith.constant 0 : index
    %126 = vector.load %arg9[%c0_149, %c0_150] : memref<4x16xf32, #tpu.memory_space<vmem>>, vector<4x16xf32>
    %cst_151 = arith.constant dense<0.000000e+00> : vector<128x16xf32>
    %127 = tpu.matmul %125, %126, %cst_151 {dimension_numbers = #tpu.dot_dimension_numbers<[1], [0], [0], [1], [0, 0, 1, 1], [], []>} : vector<128x4xf32>, vector<4x16xf32>, vector<128x16xf32> -> vector<128x16xf32>
    %c0_152 = arith.constant 0 : index
    %c0_153 = arith.constant 0 : index
    %128 = vector.load %arg10[%c0_152, %c0_153] : memref<1x16xf32, #tpu.memory_space<vmem>>, vector<1x16xf32>
    %129 = vector.broadcast %128 : vector<1x16xf32> to vector<128x16xf32>
    %130 = arith.addf %127, %129 : vector<128x16xf32>
    %c0_154 = arith.constant 0 : index
    %c0_155 = arith.constant 0 : index
    %131 = vector.load %arg11[%c0_154, %c0_155] : memref<128x16xf32, #tpu.memory_space<vmem>>, vector<128x16xf32>
    tpu.vector_store %arg11[%c0_154, %c0_155], %130 {strides = array<i32>} : memref<128x16xf32, #tpu.memory_space<vmem>>, vector<128x16xf32>,
    return
  }
}

</mosaic_0001>

<bundles_post_ra>
// kernel: tpu_custom_call.1
= control target key start
LH: loop header
LB: loop body
LE: loop exit
PB: predicated region body
PF: predicated region fallthrough
CT: control target
= control target key end

     0   :  { %s2666_s21 = smov 24   ;;  %s2667_s22 = smov 8   ;;  %vm54_vm0 = vcmask 64512   ;;  %vm151_vm1 = vcmask 130112   ;;  %vm248_vm2 = vcmask 195712   ;;  %vm346_vm3 = vcmask 261312   ;;  %s4244_s0 = inlined_call_operand.vmem [shape: f32[2,10,10,8], index: 0, kind: input, shape index: {}]   ;;  %s4245_s1 = inlined_call_operand.vmem [shape: f32[72,4], index: 1, kind: input, shape index: {}]   ;;  %s4246_s2 = inlined_call_operand.vmem [shape: f32[1,4], index: 2, kind: input, shape index: {}]   ;;  %s4247_s3 = inlined_call_operand.vmem [shape: f32[1,4], index: 3, kind: input, shape index: {}]   ;;  %s4248_s4 = inlined_call_operand.vmem [shape: f32[1,4], index: 4, kind: input, shape index: {}]   ;;  %s4249_s5 = inlined_call_operand.vmem [shape: f32[36,4], index: 5, kind: input, shape index: {}]   ;;  %s4250_s6 = inlined_call_operand.vmem [shape: f32[1,4], index: 6, kind: input, shape index: {}]   ;;  %s4251_s9 = inlined_call_operand.vmem [shape: f32[4,16], index: 9, kind: input, shape index: {}]   ;;  %s4252_s10 = inlined_call_operand.vmem [shape: f32[1,16], index: 10, kind: input, shape index: {}]   ;;  %s4253_s7 = inlined_call_operand.vmem [shape: f32[1,4], index: 7, kind: input, shape index: {}]   ;;  %s4254_s8 = inlined_call_operand.vmem [shape: f32[1,4], index: 8, kind: input, shape index: {}]   ;;  %s4255_s11 = inlined_call_operand.vmem [shape: f32[128,16], index: 11, kind: output, shape index: {}]  }
   0x1   :  { %v2482_v0 = vld [vmem:[%s4244_s0 + $0x10] sm:$0xff]  ;;  %v71_v1 = vld [vmem:[%s4244_s0 + $0x1] sm:$0xff]  ;;  %s2668_s25 = smov 40   ;;  %s2669_s30 = smov 32   ;;  %v872_v22 = vld [vmem:[%s4245_s1 + $0x38] sm:$0xff]  ;;  %vm443_vm4 = vcmask 326912  }
   0x2   :  { %298 = vrot.lane.b32.xlu1 %v2482_v0, %s2666_s21  ;;  %103 = vrot.lane.b32.xlu0 %v71_v1, %s2667_s22  ;;  %v169_v2 = vld [vmem:[%s4244_s0 + $0x12] sm:$0xff]  ;;  %v168_v4 = vld [vmem:[%s4244_s0 + $0x2] sm:$0xff]  ;;  %s2670_s12 = smov 16   ;;  %s2671_s15 = smov 48   ;;  %56 = vst.msk [vmem:[#allocation2 + $0x8] sm:$0xff] %vm54_vm0, %v2482_v0  ;;  %vm540_vm5 = vcmask 392512  }
   0x3   :  { %492 = vrot.lane.b32.xlu2 %v169_v2, %s2668_s25  ;;  %v2498_v3 = vld [vmem:[%s4244_s0 + $0x11] sm:$0xff]  ;;  %v2483_v5 = vld [vmem:[%s4244_s0 + $0x20] sm:$0xff]  ;;  %s2672_s20 = smov 64   ;;  %s2673_s23 = smov 56   ;;  %v870_v24 = vld [vmem:[%s4245_s1 + $0x28] sm:$0xff]  ;;  %vm638_vm6 = vcmask 458112  }
   0x4   :  { %v2562_v6 = vld [vmem:[%s4244_s0 + $0x22] sm:$0xff]  ;;  %v2531_v8 = vld [vmem:[%s4244_s0 + $0x30] sm:$0xff]  ;;  %57 = vst.msk [vmem:[#allocation2 + $0x10] sm:$0xff] %vm54_vm0, %v2483_v5  ;;  %v868_v28 = vld [vmem:[%s4245_s1 + $0x18] sm:$0xff]  ;;  %vm735_vm7 = vcmask 523712   ;;  %vm832_vm8 = vcmask 589312  }
   0x5   :  { %v2546_v7 = vld [vmem:[%s4244_s0 + $0x21] sm:$0xff]  ;;  %v2500_v9 = vld [vmem:[%s4244_s0 + $0x31] sm:$0xff]  ;;  %58 = vst.msk [vmem:[#allocation2 + $0x18] sm:$0xff] %vm54_vm0, %v2531_v8  ;;  %vm878_vm9 = vcmask 588800   ;;  %vm994_vm10 = vcmask 31744   ;;  %vm1165_vm12 = vcmask 25600  }
   0x6   :  { %v2563_v10 = vld [vmem:[%s4244_s0 + $0x32] sm:$0xff]  ;;  %v2548_v11 = vld [vmem:[%s4244_s0 + $0x41] sm:$0xff]  ;;  %vm1175_vm13 = vcmask 24576   ;;  %s2679_s14 = smov 28  }
   0x7   :  { %v2532_v12 = vld [vmem:[%s4244_s0 + $0x40] sm:$0xff]  ;;  %v2486_v14 = vld [vmem:[%s4244_s0 + $0x50] sm:$0xff]  ;;  %v866_v31 = vld [vmem:[%s4245_s1 + $0x8] sm:$0xff] }
   0x8   :  { %v2517_v13 = vld [vmem:[%s4244_s0 + $0x42] sm:$0xff]  ;;  %v2565_v15 = vld [vmem:[%s4244_s0 + $0x52] sm:$0xff]  ;;  %59 = vst.msk [vmem:[#allocation2 + $0x20] sm:$0xff] %vm54_vm0, %v2532_v12 }
   0x9   :  { %v2549_v16 = vld [vmem:[%s4244_s0 + $0x51] sm:$0xff]  ;;  %v38_v17 = vld [vmem:[%s4244_s0] sm:$0xff]  ;;  %60 = vst.msk [vmem:[#allocation2 + $0x28] sm:$0xff] %vm54_vm0, %v2486_v14 }
   0xa   :  { %395 = vrot.lane.b32.xlu1 %v2498_v3, %s2669_s30  ;;  %200 = vrot.lane.b32.xlu0 %v168_v4, %s2670_s12  ;;  %55 = vst.msk [vmem:[#allocation2] sm:$0xff] %vm54_vm0, %v38_v17  ;;  %v2534_v18 = vld [vmem:[%s4244_s0 + $0x60] sm:$0xff]  ;;  %v2841_v19 = vld [vmem:[%s4244_s0 + $0x70] sm:$0xff] }
   0xb   :  { %590 = vrot.lane.b32.xlu2 %v2483_v5, %s2671_s15  ;;  %61 = vst.msk [vmem:[#allocation2 + $0x30] sm:$0xff] %vm54_vm0, %v2534_v18  ;;  %v873_v20 = vld [vmem:[%s4245_s1 + $0x40] sm:$0xff]  ;;  %v871_v23 = vld [vmem:[%s4245_s1 + $0x30] sm:$0xff] }
   0xc   :  { %62 = vst.msk [vmem:[#allocation2 + $0x38] sm:$0xff] %vm54_vm0, %v2841_v19  ;;  %934 = vmatpush.msra.mxu0 %v873_v20  ;;  %2628 = vmatpush.msra.mxu3 %v873_v20  ;;  %v2503_v25 = vld [vmem:[%s4244_s0 + $0x61] sm:$0xff]  ;;  %v867_v29 = vld [vmem:[%s4245_s1 + $0x10] sm:$0xff] }
   0xd   :  { %v869_v26 = vld [vmem:[%s4245_s1 + $0x20] sm:$0xff]  ;;  %v2551_v37 = vld [vmem:[%s4244_s0 + $0x71] sm:$0xff] }
   0xe   :  { %935 = vmatpush.msra.mxu0 %v872_v22  ;;  %2629 = vmatpush.msra.mxu3 %v872_v22  ;;  %v2566_v30 = vld [vmem:[%s4244_s0 + $0x62] sm:$0xff]  ;;  %v2520_v38 = vld [vmem:[%s4244_s0 + $0x72] sm:$0xff] }
   0xf   :  { %v865_v32 = vld [vmem:[%s4245_s1] sm:$0xff]  ;;  %v2490_v52 = vld [vmem:[%s4244_s0 + $0xb0] sm:$0xff] }
  0x10   :  { %936 = vmatpush.msra.mxu0 %v871_v23  ;;  %2630 = vmatpush.msra.mxu3 %v871_v23  ;;  %v2489_v45 = vld [vmem:[%s4244_s0 + $0x80] sm:$0xff]  ;;  %64 = vst.msk [vmem:[#allocation2 + $0x48] sm:$0xff] %vm54_vm0, %v2490_v52  ;;  %v2941_v56 = vld [vmem:[%s4244_s0 + $0xf0] sm:$0xff] }
  0x11   :  { %v2568_v50 = vld [vmem:[%s4244_s0 + $0x82] sm:$0xff]  ;;  %68 = vst.msk [vmem:[#allocation2 + $0x68] sm:$0xff] %vm54_vm0, %v2941_v56  ;;  %v2537_v60 = vld [vmem:[%s4244_s0 + $0x90] sm:$0xff] }
  0x12   :  { %784 = vrot.lane.b32.xlu1 %v2562_v6, %s2672_s20  ;;  %687 = vrot.lane.b32.xlu0 %v2546_v7, %s2673_s23  ;;  %v2552_v51 = vld [vmem:[%s4244_s0 + $0x81] sm:$0xff]  ;;  %v2553_v62 = vld [vmem:[%s4244_s0 + $0x91] sm:$0xff] }
  0x13   :  { %105 = vrot.lane.b32.xlu2 %v2498_v3, %s2667_s22  ;;  %937 = vmatpush.msra.mxu0 %v870_v24  ;;  %v2957_v61 = vld [vmem:[%s4244_s0 + $0xc0] sm:$0xff]  ;;  %v2569_v4 = vld [vmem:[%s4244_s0 + $0x92] sm:$0xff] }
  0x14   :  { %2631 = vmatpush.msra.mxu3 %v870_v24  ;;  %65 = vst.msk [vmem:[#allocation2 + $0x50] sm:$0xff] %vm54_vm0, %v2957_v61  ;;  %v79_v3 = vld [vmem:[%s4244_s0 + $0xa1] sm:$0xff]  ;;  %v2522_v17 = vld [vmem:[%s4244_s0 + $0xb2] sm:$0xff] }
  0x15   :  { %938 = vmatpush.msra.mxu0 %v869_v26  ;;  %v3034_v22 = vld [vmem:[%s4244_s0 + $0xf2] sm:$0xff] }
  0x16   :  { %2632 = vmatpush.msra.mxu3 %v869_v26  ;;  %v3047_v26 = vld [vmem:[%s4244_s0 + $0xc1] sm:$0xff] }
  0x17   :  { %939 = vmatpush.msra.mxu0 %v868_v28 }
  0x18   :  { %2633 = vmatpush.msra.mxu3 %v868_v28 }
  0x19   :  { %940 = vmatpush.msra.mxu0 %v867_v29 }
  0x1a   :  { %300 = vrot.lane.b32.xlu1 %v2483_v5, %s2666_s21  ;;  %202 = vrot.lane.b32.xlu0 %v169_v2, %s2670_s12  ;;  %v2980_v5 = vld [vmem:[%s4244_s0 + $0x100] sm:$0xff] }
  0x1b   :  { %397 = vrot.lane.b32.xlu2 %v2546_v7, %s2669_s30  ;;  %2634 = vmatpush.msra.mxu3 %v867_v29  ;;  %69 = vst.msk [vmem:[#allocation2 + $0x70] sm:$0xff] %vm54_vm0, %v2980_v5 }
  0x1c   :  { %941 = vmatpush.msra.mxu0 %v866_v31 }
  0x1d   :  { %2635 = vmatpush.msra.mxu3 %v866_v31 }
  0x1e   :  { %942 = vmatpush.msra.mxu0 %v865_v32 }
  0x1f   :  { %2636 = vmatpush.msra.mxu3 %v865_v32  ;;  %v3067_v32 = vld [vmem:[%s4244_s0 + $0x101] sm:$0xff] }
  0x22   :  { %592 = vrot.lane.b32.xlu1 %v2531_v8, %s2671_s15  ;;  %494 = vrot.lane.b32.xlu0 %v2562_v6, %s2668_s25 }
  0x23   :  { %689 = vrot.lane.b32.xlu2 %v2500_v9, %s2673_s23 }
  0x2a   :  { %107 = vrot.lane.b32.xlu1 %v2546_v7, %s2667_s22  ;;  %786 = vrot.lane.b32.xlu0 %v2563_v10, %s2672_s20 }
  0x2b   :  { %204 = vrot.lane.b32.xlu2 %v2562_v6, %s2670_s12  ;;  %v176_v6 = vld [vmem:[%s4244_s0 + $0xa2] sm:$0xff] }
  0x32   :  { %399 = vrot.lane.b32.xlu1 %v2500_v9, %s2669_s30  ;;  %302 = vrot.lane.b32.xlu0 %v2531_v8, %s2666_s21 }
  0x33   :  { %496 = vrot.lane.b32.xlu2 %v2563_v10, %s2668_s25 }
  0x3a   :  { %691 = vrot.lane.b32.xlu1 %v2548_v11, %s2673_s23  ;;  %594 = vrot.lane.b32.xlu0 %v2532_v12, %s2671_s15 }
  0x3b   :  { %788 = vrot.lane.b32.xlu2 %v2517_v13, %s2672_s20 }
  0x42   :  { %206 = vrot.lane.b32.xlu1 %v2563_v10, %s2670_s12  ;;  %109 = vrot.lane.b32.xlu0 %v2500_v9, %s2667_s22  ;;  %v2996_v10 = vld [vmem:[%s4244_s0 + $0xe1] sm:$0xff] }
  0x43   :  { %304 = vrot.lane.b32.xlu2 %v2532_v12, %s2666_s21 }
  0x4a   :  { %498 = vrot.lane.b32.xlu1 %v2517_v13, %s2668_s25  ;;  %401 = vrot.lane.b32.xlu0 %v2548_v11, %s2669_s30 }
  0x4b   :  { %596 = vrot.lane.b32.xlu2 %v2486_v14, %s2671_s15 }
  0x52   :  { %790 = vrot.lane.b32.xlu1 %v2565_v15, %s2672_s20  ;;  %693 = vrot.lane.b32.xlu0 %v2549_v16, %s2673_s23 }
  0x53   :  { %111 = vrot.lane.b32.xlu2 %v2548_v11, %s2667_s22  ;;  %v3002_v11 = vld [vmem:[%s4244_s0 + $0xe2] sm:$0xff] }
  0x5a   :  { %306 = vrot.lane.b32.xlu1 %v2486_v14, %s2666_s21  ;;  %208 = vrot.lane.b32.xlu0 %v2517_v13, %s2670_s12 }
  0x5b   :  { %403 = vrot.lane.b32.xlu2 %v2549_v16, %s2669_s30 }
  0x5d   :  { %v493_v21 = vpop.permute.xlu2 %492 }
  0x62   :  { %598 = vrot.lane.b32.xlu1 %v2534_v18, %s2671_s15  ;;  %500 = vrot.lane.b32.xlu0 %v2565_v15, %s2668_s25 }
  0x63   :  { %695 = vrot.lane.b32.xlu2 %v2503_v25, %s2673_s23 }
  0x65   :  { %v591_v27 = vpop.permute.xlu2 %590 }
  0x6a   :  { %113 = vrot.lane.b32.xlu1 %v2549_v16, %s2667_s22  ;;  %792 = vrot.lane.b32.xlu0 %v2566_v30, %s2672_s20  ;;  %v2506_v16 = vld [vmem:[%s4244_s0 + $0xb1] sm:$0xff] }
  0x6b   :  { %210 = vrot.lane.b32.xlu2 %v2565_v15, %s2670_s12 }
  0x6d   :  { %v106_v33 = vpop.permute.xlu2 %105 }
  0x6e   :  { %153 = vst.msk [vmem:[#allocation2 + $0x8] sm:$0xff] %vm151_vm1, %v106_v33 }
  0x72   :  { %405 = vrot.lane.b32.xlu1 %v2503_v25, %s2669_s30  ;;  %308 = vrot.lane.b32.xlu0 %v2534_v18, %s2666_s21 }
  0x73   :  { %502 = vrot.lane.b32.xlu2 %v2566_v30, %s2668_s25 }
  0x74   :  { %v299_v34 = vpop.permute.xlu1 %298  ;;  %v104_v35 = vpop.permute.xlu0 %103 }
  0x75   :  { %152 = vst.msk [vmem:[#allocation2] sm:$0xff] %vm151_vm1, %v104_v35  ;;  %v398_v36 = vpop.permute.xlu2 %397 }
  0x7a   :  { %697 = vrot.lane.b32.xlu1 %v2551_v37, %s2673_s23  ;;  %600 = vrot.lane.b32.xlu0 %v2841_v19, %s2671_s15 }
  0x7b   :  { %794 = vrot.lane.b32.xlu2 %v2520_v38, %s2672_s20 }
  0x7c   :  { %v396_v39 = vpop.permute.xlu1 %395  ;;  %v201_v40 = vpop.permute.xlu0 %200 }
  0x7d   :  { %249 = vst.msk [vmem:[#allocation2] sm:$0xff] %vm248_vm2, %v201_v40  ;;  %v690_v41 = vpop.permute.xlu2 %689  ;;  %v2539_v40 = vld [vmem:[%s4244_s0 + $0xd0] sm:$0xff] }
  0x7e   :  { %347 = vst.msk [vmem:[#allocation2] sm:$0xff] %vm346_vm3, %v299_v34 }
  0x7f   :  { %444 = vst.msk [vmem:[#allocation2] sm:$0xff] %vm443_vm4, %v396_v39 }
  0x80   :  { %541 = vst.msk [vmem:[#allocation2] sm:$0xff] %vm540_vm5, %v493_v21  ;;  %v3029_v21 = vld [vmem:[%s4244_s0 + $0xf1] sm:$0xff] }
  0x81   :  { %639 = vst.msk [vmem:[#allocation2] sm:$0xff] %vm638_vm6, %v591_v27  ;;  %v3052_v27 = vld [vmem:[%s4244_s0 + $0xc2] sm:$0xff] }
  0x82   :  { %212 = vrot.lane.b32.xlu1 %v2566_v30, %s2670_s12  ;;  %115 = vrot.lane.b32.xlu0 %v2503_v25, %s2667_s22  ;;  %66 = vst.msk [vmem:[#allocation2 + $0x58] sm:$0xff] %vm54_vm0, %v2539_v40 }
  0x83   :  { %310 = vrot.lane.b32.xlu2 %v2841_v19, %s2666_s21 }
  0x84   :  { %v785_v42 = vpop.permute.xlu1 %784  ;;  %v688_v43 = vpop.permute.xlu0 %687 }
  0x85   :  { %736 = vst.msk [vmem:[#allocation2] sm:$0xff] %vm735_vm7, %v688_v43  ;;  %v205_v44 = vpop.permute.xlu2 %204 }
  0x86   :  { %833 = vst.msk [vmem:[#allocation2] sm:$0xff] %vm832_vm8, %v785_v42 }
  0x8a   :  { %504 = vrot.lane.b32.xlu1 %v2520_v38, %s2668_s25  ;;  %407 = vrot.lane.b32.xlu0 %v2551_v37, %s2669_s30 }
  0x8b   :  { %602 = vrot.lane.b32.xlu2 %v2489_v45, %s2671_s15 }
  0x8c   :  { %v301_v46 = vpop.permute.xlu1 %300  ;;  %v203_v47 = vpop.permute.xlu0 %202 }
  0x8d   :  { %250 = vst.msk [vmem:[#allocation2 + $0x8] sm:$0xff] %vm248_vm2, %v203_v47  ;;  %v849_v48 = vld [vmem:[#allocation2] sm:$0xff]  ;;  %v497_v49 = vpop.permute.xlu2 %496 }
  0x8e   :  { %348 = vst.msk [vmem:[#allocation2 + $0x8] sm:$0xff] %vm346_vm3, %v301_v46  ;;  %2578 = vmatmul.msk.f32.vlgmr.msra.gmra.mxu0 %vm878_vm9, %v849_v48 }
  0x8f   :  { %445 = vst.msk [vmem:[#allocation2 + $0x8] sm:$0xff] %vm443_vm4, %v398_v36  ;;  %v3079_v36 = vld [vmem:[%s4244_s0 + $0x102] sm:$0xff] }
  0x92   :  { %796 = vrot.lane.b32.xlu1 %v2568_v50, %s2672_s20  ;;  %699 = vrot.lane.b32.xlu0 %v2552_v51, %s2673_s23 }
  0x93   :  { %117 = vrot.lane.b32.xlu2 %v2551_v37, %s2667_s22 }
  0x94   :  { %v593_v53 = vpop.permute.xlu1 %592  ;;  %v495_v54 = vpop.permute.xlu0 %494 }
  0x95   :  { %542 = vst.msk [vmem:[#allocation2 + $0x8] sm:$0xff] %vm540_vm5, %v495_v54  ;;  %v789_v55 = vpop.permute.xlu2 %788  ;;  %v3134_v54 = vld [vmem:[%s4244_s0 + $0xd2] sm:$0xff] }
  0x96   :  { %640 = vst.msk [vmem:[#allocation2 + $0x8] sm:$0xff] %vm638_vm6, %v593_v53 }
  0x97   :  { %737 = vst.msk [vmem:[#allocation2 + $0x8] sm:$0xff] %vm735_vm7, %v690_v41 }
  0x9a   :  { %312 = vrot.lane.b32.xlu1 %v2489_v45, %s2666_s21  ;;  %214 = vrot.lane.b32.xlu0 %v2520_v38, %s2670_s12  ;;  %v2543_v45 = vld [vmem:[%s4244_s0 + $0x110] sm:$0xff] }
  0x9b   :  { %409 = vrot.lane.b32.xlu2 %v2552_v51, %s2669_s30  ;;  %70 = vst.msk [vmem:[#allocation2 + $0x78] sm:$0xff] %vm54_vm0, %v2543_v45 }
  0x9c   :  { %v108_v57 = vpop.permute.xlu1 %107  ;;  %v787_v58 = vpop.permute.xlu0 %786 }
  0x9d   :  { %154 = vst.msk [vmem:[#allocation2 + $0x10] sm:$0xff] %vm151_vm1, %v108_v57  ;;  %v305_v59 = vpop.permute.xlu2 %304  ;;  %v3148_v57 = vld [vmem:[%s4244_s0 + $0xe0] sm:$0xff] }
  0x9e   :  { %834 = vst.msk [vmem:[#allocation2 + $0x8] sm:$0xff] %vm832_vm8, %v787_v58 }
  0x9f   :  { %251 = vst.msk [vmem:[#allocation2 + $0x10] sm:$0xff] %vm248_vm2, %v205_v44 }
  0xa0   :  { %67 = vst.msk [vmem:[#allocation2 + $0x60] sm:$0xff] %vm54_vm0, %v3148_v57 }
  0xa2   :  { %604 = vrot.lane.b32.xlu1 %v2537_v60, %s2671_s15  ;;  %506 = vrot.lane.b32.xlu0 %v2568_v50, %s2668_s25  ;;  %v46_v60 = vld [vmem:[%s4244_s0 + $0xa0] sm:$0xff] }
  0xa3   :  { %701 = vrot.lane.b32.xlu2 %v2553_v62, %s2673_s23  ;;  %v3163_v62 = vld [vmem:[%s4244_s0 + $0x112] sm:$0xff]  ;;  %63 = vst.msk [vmem:[#allocation2 + $0x40] sm:$0xff] %vm54_vm0, %v46_v60 }
  0xa4   :  { %v400_v63 = vpop.permute.xlu1 %399  ;;  %v303_v0 = vpop.permute.xlu0 %302 }
  0xa5   :  { %349 = vst.msk [vmem:[#allocation2 + $0x10] sm:$0xff] %vm346_vm3, %v303_v0  ;;  %v850_v1 = vld [vmem:[#allocation2 + $0x8] sm:$0xff]  ;;  %v597_v2 = vpop.permute.xlu2 %596 }
  0xa6   :  { %446 = vst.msk [vmem:[#allocation2 + $0x10] sm:$0xff] %vm443_vm4, %v400_v63  ;;  %2579 = vmatmul.msk.f32.gmra.mxu0 %vm878_vm9, %v850_v1 }
  0xa7   :  { %543 = vst.msk [vmem:[#allocation2 + $0x10] sm:$0xff] %vm540_vm5, %v497_v49  ;;  %v3119_v49 = vld [vmem:[%s4244_s0 + $0xd1] sm:$0xff] }
  0xaa   :  { %119 = vrot.lane.b32.xlu1 %v79_v3, %s2667_s22  ;;  %798 = vrot.lane.b32.xlu0 %v2569_v4, %s2672_s20 }
  0xab   :  { %216 = vrot.lane.b32.xlu2 %v176_v6, %s2670_s12 }
  0xac   :  { %v692_v7 = vpop.permute.xlu1 %691  ;;  %v595_v8 = vpop.permute.xlu0 %594 }
  0xad   :  { %641 = vst.msk [vmem:[#allocation2 + $0x10] sm:$0xff] %vm638_vm6, %v595_v8  ;;  %v112_v9 = vpop.permute.xlu2 %111 }
  0xae   :  { %738 = vst.msk [vmem:[#allocation2 + $0x10] sm:$0xff] %vm735_vm7, %v692_v7 }
  0xaf   :  { %835 = vst.msk [vmem:[#allocation2 + $0x10] sm:$0xff] %vm832_vm8, %v789_v55  ;;  %v3139_v55 = vld [vmem:[%s4244_s0 + $0x111] sm:$0xff] }
  0xb0   :  { %156 = vst.msk [vmem:[#allocation2 + $0x20] sm:$0xff] %vm151_vm1, %v112_v9 }
  0xb2   :  { %314 = vrot.lane.b32.xlu1 %v2490_v52, %s2666_s21  ;;  %127 = vrot.lane.b32.xlu0 %v2996_v10, %s2667_s22 }
  0xb3   :  { %224 = vrot.lane.b32.xlu2 %v3002_v11, %s2670_s12 }
  0xb4   :  { %v207_v12 = vpop.permute.xlu1 %206  ;;  %v110_v13 = vpop.permute.xlu0 %109 }
  0xb5   :  { %155 = vst.msk [vmem:[#allocation2 + $0x18] sm:$0xff] %vm151_vm1, %v110_v13  ;;  %v404_v15 = vpop.permute.xlu2 %403 }
  0xb6   :  { %252 = vst.msk [vmem:[#allocation2 + $0x18] sm:$0xff] %vm248_vm2, %v207_v12  ;;  %v851_v14 = vld [vmem:[#allocation2 + $0x10] sm:$0xff] }
  0xb7   :  { %350 = vst.msk [vmem:[#allocation2 + $0x18] sm:$0xff] %vm346_vm3, %v305_v59  ;;  %2580 = vmatmul.msk.f32.gmra.mxu0 %vm878_vm9, %v851_v14  ;;  %v2544_v14 = vld [vmem:[%s4244_s0 + $0x120] sm:$0xff] }
  0xba   :  { %322 = vrot.lane.b32.xlu1 %v2941_v56, %s2666_s21  ;;  %411 = vrot.lane.b32.xlu0 %v2506_v16, %s2669_s30 }
  0xbb   :  { %508 = vrot.lane.b32.xlu2 %v2522_v17, %s2668_s25 }
  0xbc   :  { %v499_v18 = vpop.permute.xlu1 %498  ;;  %v402_v19 = vpop.permute.xlu0 %401 }
  0xbd   :  { %447 = vst.msk [vmem:[#allocation2 + $0x18] sm:$0xff] %vm443_vm4, %v402_v19  ;;  %v696_v20 = vpop.permute.xlu2 %695  ;;  %v2560_v19 = vld [vmem:[%s4244_s0 + $0x121] sm:$0xff] }
  0xbe   :  { %544 = vst.msk [vmem:[#allocation2 + $0x18] sm:$0xff] %vm540_vm5, %v499_v18 }
  0xbf   :  { %642 = vst.msk [vmem:[#allocation2 + $0x18] sm:$0xff] %vm638_vm6, %v597_v2 }
  0xc2   :  { %606 = vrot.lane.b32.xlu1 %v2957_v61, %s2671_s15  ;;  %419 = vrot.lane.b32.xlu0 %v3029_v21, %s2669_s30 }
  0xc3   :  { %516 = vrot.lane.b32.xlu2 %v3034_v22, %s2668_s25 }
  0xc4   :  { %v791_v23 = vpop.permute.xlu1 %790  ;;  %v694_v24 = vpop.permute.xlu0 %693 }
  0xc5   :  { %739 = vst.msk [vmem:[#allocation2 + $0x18] sm:$0xff] %vm735_vm7, %v694_v24  ;;  %v211_v25 = vpop.permute.xlu2 %210 }
  0xc6   :  { %836 = vst.msk [vmem:[#allocation2 + $0x18] sm:$0xff] %vm832_vm8, %v791_v23 }
  0xca   :  { %614 = vrot.lane.b32.xlu1 %v2980_v5, %s2671_s15  ;;  %703 = vrot.lane.b32.xlu0 %v3047_v26, %s2673_s23 }
  0xcb   :  { %800 = vrot.lane.b32.xlu2 %v3052_v27, %s2672_s20 }
  0xcc   :  { %v307_v28 = vpop.permute.xlu1 %306  ;;  %v209_v29 = vpop.permute.xlu0 %208 }
  0xcd   :  { %253 = vst.msk [vmem:[#allocation2 + $0x20] sm:$0xff] %vm248_vm2, %v209_v29  ;;  %v852_v30 = vld [vmem:[#allocation2 + $0x18] sm:$0xff]  ;;  %v503_v31 = vpop.permute.xlu2 %502 }
  0xce   :  { %351 = vst.msk [vmem:[#allocation2 + $0x20] sm:$0xff] %vm346_vm3, %v307_v28  ;;  %2581 = vmatmul.msk.f32.gmra.mxu0 %vm878_vm9, %v852_v30 }
  0xcf   :  { %448 = vst.msk [vmem:[#allocation2 + $0x20] sm:$0xff] %vm443_vm4, %v404_v15 }
  0xd2   :  { %711 = vrot.lane.b32.xlu1 %v3067_v32, %s2673_s23  ;;  %121 = vrot.lane.b32.xlu0 %v2506_v16, %s2667_s22 }
  0xd3   :  { %218 = vrot.lane.b32.xlu2 %v2522_v17, %s2670_s12 }
  0xd4   :  { %v599_v33 = vpop.permute.xlu1 %598  ;;  %v501_v34 = vpop.permute.xlu0 %500 }
  0xd5   :  { %545 = vst.msk [vmem:[#allocation2 + $0x20] sm:$0xff] %vm540_vm5, %v501_v34  ;;  %v795_v35 = vpop.permute.xlu2 %794  ;;  %v2545_v34 = vld [vmem:[%s4244_s0 + $0x130] sm:$0xff] }
  0xd6   :  { %643 = vst.msk [vmem:[#allocation2 + $0x20] sm:$0xff] %vm638_vm6, %v599_v33 }
  0xd7   :  { %740 = vst.msk [vmem:[#allocation2 + $0x20] sm:$0xff] %vm735_vm7, %v696_v20  ;;  %v2576_v20 = vld [vmem:[%s4244_s0 + $0x122] sm:$0xff] }
  0xda   :  { %129 = vrot.lane.b32.xlu1 %v3029_v21, %s2667_s22  ;;  %808 = vrot.lane.b32.xlu0 %v3079_v36, %s2672_s20 }
  0xdb   :  { %316 = vrot.lane.b32.xlu2 %v2957_v61, %s2666_s21 }
  0xdc   :  { %v114_v37 = vpop.permute.xlu1 %113  ;;  %v793_v38 = vpop.permute.xlu0 %792 }
  0xdd   :  { %157 = vst.msk [vmem:[#allocation2 + $0x28] sm:$0xff] %vm151_vm1, %v114_v37  ;;  %v311_v39 = vpop.permute.xlu2 %310  ;;  %v2561_v37 = vld [vmem:[%s4244_s0 + $0x131] sm:$0xff] }
  0xde   :  { %837 = vst.msk [vmem:[#allocation2 + $0x20] sm:$0xff] %vm832_vm8, %v793_v38 }
  0xdf   :  { %254 = vst.msk [vmem:[#allocation2 + $0x28] sm:$0xff] %vm248_vm2, %v211_v25 }
  0xe2   :  { %413 = vrot.lane.b32.xlu1 %v3047_v26, %s2669_s30  ;;  %226 = vrot.lane.b32.xlu0 %v3034_v22, %s2670_s12 }
  0xe3   :  { %324 = vrot.lane.b32.xlu2 %v2980_v5, %s2666_s21 }
  0xe4   :  { %v406_v41 = vpop.permute.xlu1 %405  ;;  %v309_v42 = vpop.permute.xlu0 %308 }
  0xe5   :  { %352 = vst.msk [vmem:[#allocation2 + $0x28] sm:$0xff] %vm346_vm3, %v309_v42  ;;  %v853_v43 = vld [vmem:[#allocation2 + $0x20] sm:$0xff]  ;;  %v603_v44 = vpop.permute.xlu2 %602 }
  0xe6   :  { %449 = vst.msk [vmem:[#allocation2 + $0x28] sm:$0xff] %vm443_vm4, %v406_v41  ;;  %2582 = vmatmul.msk.f32.gmra.mxu0 %vm878_vm9, %v853_v43 }
  0xe7   :  { %546 = vst.msk [vmem:[#allocation2 + $0x28] sm:$0xff] %vm540_vm5, %v503_v31 }
  0xea   :  { %421 = vrot.lane.b32.xlu1 %v3067_v32, %s2669_s30  ;;  %510 = vrot.lane.b32.xlu0 %v3052_v27, %s2668_s25 }
  0xeb   :  { %608 = vrot.lane.b32.xlu2 %v2539_v40, %s2671_s15 }
  0xec   :  { %v698_v46 = vpop.permute.xlu1 %697  ;;  %v601_v47 = vpop.permute.xlu0 %600 }
  0xed   :  { %644 = vst.msk [vmem:[#allocation2 + $0x28] sm:$0xff] %vm638_vm6, %v601_v47  ;;  %v118_v48 = vpop.permute.xlu2 %117 }
  0xee   :  { %741 = vst.msk [vmem:[#allocation2 + $0x28] sm:$0xff] %vm735_vm7, %v698_v46 }
  0xef   :  { %838 = vst.msk [vmem:[#allocation2 + $0x28] sm:$0xff] %vm832_vm8, %v795_v35 }
  0xf0   :  { %159 = vst.msk [vmem:[#allocation2 + $0x38] sm:$0xff] %vm151_vm1, %v118_v48 }
  0xf2   :  { %705 = vrot.lane.b32.xlu1 %v3119_v49, %s2673_s23  ;;  %518 = vrot.lane.b32.xlu0 %v3079_v36, %s2668_s25 }
  0xf3   :  { %616 = vrot.lane.b32.xlu2 %v2543_v45, %s2671_s15 }
  0xf4   :  { %v213_v50 = vpop.permute.xlu1 %212  ;;  %v116_v51 = vpop.permute.xlu0 %115 }
  0xf5   :  { %158 = vst.msk [vmem:[#allocation2 + $0x30] sm:$0xff] %vm151_vm1, %v116_v51  ;;  %v410_v53 = vpop.permute.xlu2 %409 }
  0xf6   :  { %255 = vst.msk [vmem:[#allocation2 + $0x30] sm:$0xff] %vm248_vm2, %v213_v50  ;;  %v854_v52 = vld [vmem:[#allocation2 + $0x28] sm:$0xff] }
  0xf7   :  { %353 = vst.msk [vmem:[#allocation2 + $0x30] sm:$0xff] %vm346_vm3, %v311_v39  ;;  %2583 = vmatmul.msk.f32.gmra.mxu0 %vm878_vm9, %v854_v52 }
  0xfa   :  { %123 = vrot.lane.b32.xlu1 %v3047_v26, %s2667_s22  ;;  %802 = vrot.lane.b32.xlu0 %v3134_v54, %s2672_s20 }
  0xfb   :  { %713 = vrot.lane.b32.xlu2 %v3139_v55, %s2673_s23 }
  0xfc   :  { %v505_v58 = vpop.permute.xlu1 %504  ;;  %v408_v59 = vpop.permute.xlu0 %407 }
  0xfd   :  { %450 = vst.msk [vmem:[#allocation2 + $0x30] sm:$0xff] %vm443_vm4, %v408_v59  ;;  %v702_v61 = vpop.permute.xlu2 %701 }
  0xfe   :  { %547 = vst.msk [vmem:[#allocation2 + $0x30] sm:$0xff] %vm540_vm5, %v505_v58 }
  0xff   :  { %645 = vst.msk [vmem:[#allocation2 + $0x30] sm:$0xff] %vm638_vm6, %v603_v44 }
 0x102   :  { %810 = vrot.lane.b32.xlu1 %v3163_v62, %s2672_s20  ;;  %220 = vrot.lane.b32.xlu0 %v3052_v27, %s2670_s12 }
 0x103   :  { %131 = vrot.lane.b32.xlu2 %v3067_v32, %s2667_s22 }
 0x104   :  { %v797_v63 = vpop.permute.xlu1 %796  ;;  %v700_v0 = vpop.permute.xlu0 %699 }
 0x105   :  { %742 = vst.msk [vmem:[#allocation2 + $0x30] sm:$0xff] %vm735_vm7, %v700_v0  ;;  %v217_v1 = vpop.permute.xlu2 %216 }
 0x106   :  { %839 = vst.msk [vmem:[#allocation2 + $0x30] sm:$0xff] %vm832_vm8, %v797_v63 }
 0x10a   :  { %228 = vrot.lane.b32.xlu1 %v3079_v36, %s2670_s12  ;;  %318 = vrot.lane.b32.xlu0 %v2539_v40, %s2666_s21 }
 0x10b   :  { %415 = vrot.lane.b32.xlu2 %v3119_v49, %s2669_s30 }
 0x10c   :  { %v313_v2 = vpop.permute.xlu1 %312  ;;  %v215_v3 = vpop.permute.xlu0 %214 }
 0x10d   :  { %256 = vst.msk [vmem:[#allocation2 + $0x38] sm:$0xff] %vm248_vm2, %v215_v3  ;;  %v855_v4 = vld [vmem:[#allocation2 + $0x30] sm:$0xff]  ;;  %v225_v5 = vpop.permute.xlu2 %224 }
 0x10e   :  { %354 = vst.msk [vmem:[#allocation2 + $0x38] sm:$0xff] %vm346_vm3, %v313_v2  ;;  %2584 = vmatmul.msk.f32.gmra.mxu0 %vm878_vm9, %v855_v4 }
 0x10f   :  { %451 = vst.msk [vmem:[#allocation2 + $0x38] sm:$0xff] %vm443_vm4, %v410_v53 }
 0x112   :  { %512 = vrot.lane.b32.xlu1 %v3134_v54, %s2668_s25  ;;  %326 = vrot.lane.b32.xlu0 %v2543_v45, %s2666_s21 }
 0x113   :  { %423 = vrot.lane.b32.xlu2 %v3139_v55, %s2669_s30 }
 0x114   :  { %v605_v6 = vpop.permute.xlu1 %604  ;;  %v507_v7 = vpop.permute.xlu0 %506 }
 0x115   :  { %548 = vst.msk [vmem:[#allocation2 + $0x38] sm:$0xff] %vm540_vm5, %v507_v7  ;;  %v509_v8 = vpop.permute.xlu2 %508 }
 0x116   :  { %646 = vst.msk [vmem:[#allocation2 + $0x38] sm:$0xff] %vm638_vm6, %v605_v6 }
 0x117   :  { %743 = vst.msk [vmem:[#allocation2 + $0x38] sm:$0xff] %vm735_vm7, %v702_v61 }
 0x11a   :  { %520 = vrot.lane.b32.xlu1 %v3163_v62, %s2668_s25  ;;  %610 = vrot.lane.b32.xlu0 %v3148_v57, %s2671_s15 }
 0x11b   :  { %707 = vrot.lane.b32.xlu2 %v2996_v10, %s2673_s23 }
 0x11c   :  { %v120_v9 = vpop.permute.xlu1 %119  ;;  %v799_v12 = vpop.permute.xlu0 %798 }
 0x11d   :  { %160 = vst.msk [vmem:[#allocation2 + $0x40] sm:$0xff] %vm151_vm1, %v120_v9  ;;  %v517_v13 = vpop.permute.xlu2 %516 }
 0x11e   :  { %840 = vst.msk [vmem:[#allocation2 + $0x38] sm:$0xff] %vm832_vm8, %v799_v12 }
 0x11f   :  { %257 = vst.msk [vmem:[#allocation2 + $0x40] sm:$0xff] %vm248_vm2, %v217_v1 }
 0x122   :  { %804 = vrot.lane.b32.xlu1 %v3002_v11, %s2672_s20  ;;  %618 = vrot.lane.b32.xlu0 %v2544_v14, %s2671_s15 }
 0x123   :  { %125 = vrot.lane.b32.xlu2 %v3119_v49, %s2667_s22 }
 0x124   :  { %v315_v15 = vpop.permute.xlu1 %314  ;;  %v128_v16 = vpop.permute.xlu0 %127 }
 0x125   :  { %355 = vst.msk [vmem:[#allocation2 + $0x40] sm:$0xff] %vm346_vm3, %v315_v15  ;;  %v856_v17 = vld [vmem:[#allocation2 + $0x38] sm:$0xff]  ;;  %v801_v18 = vpop.permute.xlu2 %800 }
 0x126   :  { %164 = vst.msk [vmem:[#allocation2 + $0x60] sm:$0xff] %vm151_vm1, %v128_v16  ;;  %2585 = vmatmul.msk.f32.gmra.mxu0 %vm878_vm9, %v856_v17 }
 0x127   :  { %261 = vst.msk [vmem:[#allocation2 + $0x60] sm:$0xff] %vm248_vm2, %v225_v5 }
 0x12a   :  { %715 = vrot.lane.b32.xlu0 %v2560_v19, %s2673_s23  ;;  %222 = vrot.lane.b32.xlu1 %v3134_v54, %s2670_s12 }
 0x12b   :  { %812 = vrot.lane.b32.xlu2 %v2576_v20, %s2672_s20 }
 0x12c   :  { %v323_v23 = vpop.permute.xlu1 %322  ;;  %v412_v24 = vpop.permute.xlu0 %411 }
 0x12d   :  { %359 = vst.msk [vmem:[#allocation2 + $0x60] sm:$0xff] %vm346_vm3, %v323_v23  ;;  %v219_v25 = vpop.permute.xlu2 %218 }
 0x12e   :  { %452 = vst.msk [vmem:[#allocation2 + $0x40] sm:$0xff] %vm443_vm4, %v412_v24 }
 0x12f   :  { %549 = vst.msk [vmem:[#allocation2 + $0x40] sm:$0xff] %vm540_vm5, %v509_v8 }
 0x132   :  { %133 = vrot.lane.b32.xlu0 %v3139_v55, %s2667_s22  ;;  %320 = vrot.lane.b32.xlu1 %v3148_v57, %s2666_s21 }
 0x133   :  { %230 = vrot.lane.b32.xlu2 %v3163_v62, %s2670_s12 }
 0x134   :  { %v607_v26 = vpop.permute.xlu1 %606  ;;  %v420_v27 = vpop.permute.xlu0 %419 }
 0x135   :  { %647 = vst.msk [vmem:[#allocation2 + $0x40] sm:$0xff] %vm638_vm6, %v607_v26  ;;  %v317_v28 = vpop.permute.xlu2 %316  ;;  %v944_v26 = vpop.f32.mrf.mxu0 }
 0x136   :  { %456 = vst.msk [vmem:[#allocation2 + $0x60] sm:$0xff] %vm443_vm4, %v420_v27 }
 0x137   :  { %553 = vst.msk [vmem:[#allocation2 + $0x60] sm:$0xff] %vm540_vm5, %v517_v13 }
 0x13a   :  { %417 = vrot.lane.b32.xlu0 %v2996_v10, %s2669_s30  ;;  %328 = vrot.lane.b32.xlu1 %v2544_v14, %s2666_s21 }
 0x13b   :  { %514 = vrot.lane.b32.xlu2 %v3002_v11, %s2668_s25 }
 0x13c   :  { %v615_v29 = vpop.permute.xlu1 %614  ;;  %v704_v30 = vpop.permute.xlu0 %703 }
 0x13d   :  { %651 = vst.msk [vmem:[#allocation2 + $0x60] sm:$0xff] %vm638_vm6, %v615_v29  ;;  %v325_v31 = vpop.permute.xlu2 %324  ;;  %v947_v27 = vpop.f32.mrf.mxu0 }
 0x13e   :  { %744 = vst.msk [vmem:[#allocation2 + $0x40] sm:$0xff] %vm735_vm7, %v704_v30 }
 0x13f   :  { %841 = vst.msk [vmem:[#allocation2 + $0x40] sm:$0xff] %vm832_vm8, %v801_v18 }
 0x142   :  { %425 = vrot.lane.b32.xlu0 %v2560_v19, %s2669_s30  ;;  %612 = vrot.lane.b32.xlu1 %v2941_v56, %s2671_s15 }
 0x143   :  { %522 = vrot.lane.b32.xlu2 %v2576_v20, %s2668_s25 }
 0x144   :  { %v712_v10 = vpop.permute.xlu1 %711  ;;  %v122_v32 = vpop.permute.xlu0 %121 }
 0x145   :  { %748 = vst.msk [vmem:[#allocation2 + $0x60] sm:$0xff] %vm735_vm7, %v712_v10  ;;  %v609_v33 = vpop.permute.xlu2 %608 }
 0x146   :  { %161 = vst.msk [vmem:[#allocation2 + $0x48] sm:$0xff] %vm151_vm1, %v122_v32  ;;  %v857_v11 = vld [vmem:[#allocation2 + $0x40] sm:$0xff] }
 0x147   :  { %258 = vst.msk [vmem:[#allocation2 + $0x48] sm:$0xff] %vm248_vm2, %v219_v25  ;;  %2586 = vmatmul.msk.f32.gmra.mxu0 %vm878_vm9, %v857_v11  ;;  %v3323_v11 = vld [vmem:[%s4246_s2] ss:$0 sm:$0xff]  ;;  %s2676_s2 = smov 4  }
 0x148   :  { %356 = vst.msk [vmem:[#allocation2 + $0x48] sm:$0xff] %vm346_vm3, %v317_v28  ;;  %v950_v28 = vpop.f32.mrf.mxu0 }
 0x14a   :  { %709 = vrot.lane.b32.xlu0 %v3029_v21, %s2673_s23  ;;  %620 = vrot.lane.b32.xlu1 %v2545_v34, %s2671_s15  ;;  %v2577_v21 = vld [vmem:[%s4244_s0 + $0x132] sm:$0xff]  ;;  %v3326_v34 = vadd.f32 %v3323_v11, %v947_v27 }
 0x14b   :  { %806 = vrot.lane.b32.xlu2 %v3034_v22, %s2672_s20 }
 0x14c   :  { %v130_v56 = vpop.permute.xlu1 %129  ;;  %v809_v35 = vpop.permute.xlu0 %808 }
 0x14d   :  { %165 = vst.msk [vmem:[#allocation2 + $0x68] sm:$0xff] %vm151_vm1, %v130_v56  ;;  %v617_v36 = vpop.permute.xlu2 %616  ;;  %v3329_v56 = vadd.f32 %v3323_v11, %v944_v26 }
 0x14e   :  { %845 = vst.msk [vmem:[#allocation2 + $0x60] sm:$0xff] %vm832_vm8, %v809_v35  ;;  %v3332_v35 = vadd.f32 %v3323_v11, %v950_v28 }
 0x150   :  { %v953_v29 = vpop.f32.mrf.mxu0 }
 0x152   :  { %717 = vrot.lane.b32.xlu0 %v2561_v37, %s2673_s23  ;;  %814 = vrot.lane.b32.xlu1 %v2577_v21, %s2672_s20  ;;  %v3337_v37 = vadd.f32 %v3323_v11, %v953_v29  ;;  %v1040_v21 = vmul.f32 %v3329_v56, %v3329_v56 }
 0x154   :  { %v414_v38 = vpop.permute.xlu1 %413  ;;  %v227_v39 = vpop.permute.xlu0 %226 }
 0x155   :  { %453 = vst.msk [vmem:[#allocation2 + $0x48] sm:$0xff] %vm443_vm4, %v414_v38  ;;  %v861_v22 = vld [vmem:[#allocation2 + $0x60] sm:$0xff]  ;;  %v714_v40 = vpop.permute.xlu2 %713  ;;  %v996_v38 = vsel %vm994_vm10, %v3326_v34, 0.0 }
 0x156   :  { %262 = vst.msk [vmem:[#allocation2 + $0x68] sm:$0xff] %vm248_vm2, %v227_v39  ;;  %2590 = vmatmul.msk.f32.vlgmr.msra.gmra.mxu3 %vm878_vm9, %v861_v22  ;;  %v1042_v39 = vmul.f32 %v3332_v35, %v3332_v35 }
 0x157   :  { %360 = vst.msk [vmem:[#allocation2 + $0x68] sm:$0xff] %vm346_vm3, %v325_v31 }
 0x15c   :  { %v422_v41 = vpop.permute.xlu1 %421  ;;  %v511_v42 = vpop.permute.xlu0 %510 }
 0x15d   :  { %457 = vst.msk [vmem:[#allocation2 + $0x68] sm:$0xff] %vm443_vm4, %v422_v41  ;;  %v132_v43 = vpop.permute.xlu2 %131 }
 0x15e   :  { %550 = vst.msk [vmem:[#allocation2 + $0x48] sm:$0xff] %vm540_vm5, %v511_v42 }
 0x15f   :  { %648 = vst.msk [vmem:[#allocation2 + $0x48] sm:$0xff] %vm638_vm6, %v609_v33 }
 0x160   :  { %166 = vst.msk [vmem:[#allocation2 + $0x70] sm:$0xff] %vm151_vm1, %v132_v43  ;;  %v998_v43 = vsel %vm994_vm10, %v3332_v35, 0.0 }
 0x163   :  { %v956_v30 = vpop.f32.mrf.mxu0 }
 0x164   :  { %v706_v44 = vpop.permute.xlu1 %705  ;;  %v519_v45 = vpop.permute.xlu0 %518  ;;  %v3346_v22 = vadd.f32 %v3323_v11, %v956_v30 }
 0x165   :  { %745 = vst.msk [vmem:[#allocation2 + $0x48] sm:$0xff] %vm735_vm7, %v706_v44  ;;  %v416_v46 = vpop.permute.xlu2 %415  ;;  %v1043_v44 = vmul.f32 %v3337_v37, %v3337_v37 }
 0x166   :  { %554 = vst.msk [vmem:[#allocation2 + $0x68] sm:$0xff] %vm540_vm5, %v519_v45 }
 0x167   :  { %652 = vst.msk [vmem:[#allocation2 + $0x68] sm:$0xff] %vm638_vm6, %v617_v36  ;;  %v1041_v36 = vmul.f32 %v3326_v34, %v3326_v34 }
 0x168   :  { %749 = vst.msk [vmem:[#allocation2 + $0x68] sm:$0xff] %vm735_vm7, %v714_v40  ;;  %v995_v40 = vsel %vm994_vm10, %v3329_v56, 0.0 }
 0x169   :  { %v1057_v42 = vsel %vm994_vm10, %v1041_v36, 0.0 }
 0x16c   :  { %v124_v47 = vpop.permute.xlu1 %123  ;;  %v803_v48 = vpop.permute.xlu0 %802 }
 0x16d   :  { %162 = vst.msk [vmem:[#allocation2 + $0x50] sm:$0xff] %vm151_vm1, %v124_v47  ;;  %v424_v49 = vpop.permute.xlu2 %423  ;;  %v997_v47 = vadd.f32 %v996_v38, %v995_v40 }
 0x16e   :  { %842 = vst.msk [vmem:[#allocation2 + $0x48] sm:$0xff] %vm832_vm8, %v803_v48  ;;  %v1059_v48 = vsel %vm994_vm10, %v1042_v39, 0.0 }
 0x174   :  { %v811_v50 = vpop.permute.xlu1 %810  ;;  %v221_v51 = vpop.permute.xlu0 %220 }
 0x175   :  { %846 = vst.msk [vmem:[#allocation2 + $0x68] sm:$0xff] %vm832_vm8, %v811_v50  ;;  %v858_v52 = vld [vmem:[#allocation2 + $0x48] sm:$0xff]  ;;  %v708_v53 = vpop.permute.xlu2 %707  ;;  %v959_v31 = vpop.f32.mrf.mxu0  ;;  %v1044_v50 = vmul.f32 %v3346_v22, %v3346_v22 }
 0x176   :  { %259 = vst.msk [vmem:[#allocation2 + $0x50] sm:$0xff] %vm248_vm2, %v221_v51  ;;  %2587 = vmatmul.msk.f32.gmra.mxu0 %vm878_vm9, %v858_v52  ;;  %v3356_v45 = vadd.f32 %v3323_v11, %v959_v31 }
 0x17c   :  { %v229_v54 = vpop.permute.xlu1 %228  ;;  %v319_v55 = vpop.permute.xlu0 %318  ;;  %v862_v57 = vld [vmem:[#allocation2 + $0x68] sm:$0xff] }
 0x17d   :  { %263 = vst.msk [vmem:[#allocation2 + $0x70] sm:$0xff] %vm248_vm2, %v229_v54  ;;  %2591 = vmatmul.msk.f32.gmra.mxu3 %vm878_vm9, %v862_v57  ;;  %v126_v58 = vpop.permute.xlu2 %125  ;;  %v1061_v54 = vsel %vm994_vm10, %v1043_v44, 0.0  ;;  %v1045_v57 = vmul.f32 %v3356_v45, %v3356_v45 }
 0x17e   :  { %357 = vst.msk [vmem:[#allocation2 + $0x50] sm:$0xff] %vm346_vm3, %v319_v55  ;;  %v1002_v55 = vsel %vm994_vm10, %v3346_v22, 0.0 }
 0x17f   :  { %454 = vst.msk [vmem:[#allocation2 + $0x50] sm:$0xff] %vm443_vm4, %v416_v46  ;;  %v1056_v46 = vsel %vm994_vm10, %v1040_v21, 0.0 }
 0x180   :  { %163 = vst.msk [vmem:[#allocation2 + $0x58] sm:$0xff] %vm151_vm1, %v126_v58  ;;  %v1058_v52 = vadd.f32 %v1057_v42, %v1056_v46  ;;  %v2674_v46 = vmov 128.0  }
 0x181   :  { %2660 = vrcp.f32 %v2674_v46 }
 0x184   :  { %v513_v59 = vpop.permute.xlu1 %512  ;;  %v327_v60 = vpop.permute.xlu0 %326 }
 0x185   :  { %551 = vst.msk [vmem:[#allocation2 + $0x50] sm:$0xff] %vm540_vm5, %v513_v59  ;;  %v813_v63 = vpop.permute.xlu2 %812  ;;  %v1060_v59 = vadd.f32 %v1059_v48, %v1058_v52 }
 0x186   :  { %361 = vst.msk [vmem:[#allocation2 + $0x70] sm:$0xff] %vm346_vm3, %v327_v60 }
 0x187   :  { %458 = vst.msk [vmem:[#allocation2 + $0x70] sm:$0xff] %vm443_vm4, %v424_v49  ;;  %v1000_v49 = vsel %vm994_vm10, %v3337_v37, 0.0 }
 0x18b   :  { %v962_v10 = vpop.f32.mrf.mxu0 }
 0x18c   :  { %v521_v61 = vpop.permute.xlu1 %520  ;;  %v611_v62 = vpop.permute.xlu0 %610  ;;  %v3365_v51 = vadd.f32 %v3323_v11, %v962_v10 }
 0x18d   :  { %555 = vst.msk [vmem:[#allocation2 + $0x70] sm:$0xff] %vm540_vm5, %v521_v61  ;;  %v231_v5 = vpop.permute.xlu2 %230  ;;  %v1063_v61 = vsel %vm994_vm10, %v1044_v50, 0.0 }
 0x18e   :  { %649 = vst.msk [vmem:[#allocation2 + $0x50] sm:$0xff] %vm638_vm6, %v611_v62  ;;  %v1004_v62 = vsel %vm994_vm10, %v3356_v45, 0.0 }
 0x18f   :  { %746 = vst.msk [vmem:[#allocation2 + $0x50] sm:$0xff] %vm735_vm7, %v708_v53  ;;  %v999_v53 = vadd.f32 %v998_v43, %v997_v47 }
 0x191   :  { %v1001_v60 = vadd.f32 %v1000_v49, %v999_v53 }
 0x194   :  { %v805_v0 = vpop.permute.xlu1 %804  ;;  %v619_v1 = vpop.permute.xlu0 %618 }
 0x195   :  { %843 = vst.msk [vmem:[#allocation2 + $0x50] sm:$0xff] %vm832_vm8, %v805_v0  ;;  %v515_v9 = vpop.permute.xlu2 %514 }
 0x196   :  { %653 = vst.msk [vmem:[#allocation2 + $0x70] sm:$0xff] %vm638_vm6, %v619_v1 }
 0x19c   :  { %v716_v2 = vpop.permute.xlu0 %715  ;;  %v223_v3 = vpop.permute.xlu1 %222  ;;  %v859_v4 = vld [vmem:[#allocation2 + $0x50] sm:$0xff] }
 0x19d   :  { %750 = vst.msk [vmem:[#allocation2 + $0x70] sm:$0xff] %vm735_vm7, %v716_v2  ;;  %2588 = vmatmul.msk.f32.gmra.mxu0 %vm878_vm9, %v859_v4  ;;  %v523_v14 = vpop.permute.xlu2 %522  ;;  %v1062_v2 = vadd.f32 %v1061_v54, %v1060_v59 }
 0x19e   :  { %260 = vst.msk [vmem:[#allocation2 + $0x58] sm:$0xff] %vm248_vm2, %v223_v3  ;;  %v1003_v3 = vadd.f32 %v1002_v55, %v1001_v60 }
 0x19f   :  { %847 = vst.msk [vmem:[#allocation2 + $0x70] sm:$0xff] %vm832_vm8, %v813_v63  ;;  %v1046_v63 = vmul.f32 %v3365_v51, %v3365_v51 }
 0x1a3   :  { %v965_v32 = vpop.f32.mrf.mxu0 }
 0x1a4   :  { %v134_v6 = vpop.permute.xlu0 %133  ;;  %v321_v7 = vpop.permute.xlu1 %320  ;;  %v3373_v58 = vadd.f32 %v3323_v11, %v965_v32 }
 0x1a5   :  { %167 = vst.msk [vmem:[#allocation2 + $0x78] sm:$0xff] %vm151_vm1, %v134_v6  ;;  %v807_v17 = vpop.permute.xlu2 %806  ;;  %v1006_v6 = vsel %vm994_vm10, %v3365_v51, 0.0  ;;  %vm1336_vm1 = vcmask 64544  }
 0x1a6   :  { %358 = vst.msk [vmem:[#allocation2 + $0x58] sm:$0xff] %vm346_vm3, %v321_v7  ;;  %v863_v8 = vld [vmem:[#allocation2 + $0x70] sm:$0xff]  ;;  %v1047_v7 = vmul.f32 %v3373_v58, %v3373_v58 }
 0x1a7   :  { %264 = vst.msk [vmem:[#allocation2 + $0x78] sm:$0xff] %vm248_vm2, %v231_v5  ;;  %2592 = vmatmul.msk.f32.gmra.mxu3 %vm878_vm9, %v863_v8  ;;  %v1065_v5 = vsel %vm994_vm10, %v1045_v57, 0.0  ;;  %vm1433_vm2 = vcmask 97344  }
 0x1ac   :  { %v418_v12 = vpop.permute.xlu0 %417  ;;  %v329_v13 = vpop.permute.xlu1 %328 }
 0x1ad   :  { %455 = vst.msk [vmem:[#allocation2 + $0x58] sm:$0xff] %vm443_vm4, %v418_v12  ;;  %v1005_v12 = vadd.f32 %v1004_v62, %v1003_v3  ;;  %v2661_v62 = vpop.eup %2660 }
 0x1ae   :  { %362 = vst.msk [vmem:[#allocation2 + $0x78] sm:$0xff] %vm346_vm3, %v329_v13  ;;  %v1067_v13 = vsel %vm994_vm10, %v1046_v63, 0.0  ;;  %vm1037_vm11 = vweird.f32 %v2661_v62  ;;  %vm2107_vm3 = vcmask 1043456  }
 0x1af   :  { %552 = vst.msk [vmem:[#allocation2 + $0x58] sm:$0xff] %vm540_vm5, %v515_v9  ;;  %v1064_v9 = vadd.f32 %v1063_v61, %v1062_v2 }
 0x1b4   :  { %v426_v15 = vpop.permute.xlu0 %425  ;;  %v613_v16 = vpop.permute.xlu1 %612 }
 0x1b5   :  { %459 = vst.msk [vmem:[#allocation2 + $0x78] sm:$0xff] %vm443_vm4, %v426_v15  ;;  %vm1530_vm4 = vcmask 130144  }
 0x1b6   :  { %650 = vst.msk [vmem:[#allocation2 + $0x58] sm:$0xff] %vm638_vm6, %v613_v16 }
 0x1b7   :  { %556 = vst.msk [vmem:[#allocation2 + $0x78] sm:$0xff] %vm540_vm5, %v523_v14  ;;  %v1008_v14 = vsel %vm994_vm10, %v3373_v58, 0.0  ;;  %vm1627_vm5 = vcmask 162944  }
 0x1bc   :  { %v710_v18 = vpop.permute.xlu0 %709  ;;  %v621_v19 = vpop.permute.xlu1 %620 }
 0x1bd   :  { %747 = vst.msk [vmem:[#allocation2 + $0x58] sm:$0xff] %vm735_vm7, %v710_v18  ;;  %v1007_v18 = vadd.f32 %v1006_v6, %v1005_v12 }
 0x1be   :  { %654 = vst.msk [vmem:[#allocation2 + $0x78] sm:$0xff] %vm638_vm6, %v621_v19  ;;  %v1069_v19 = vsel %vm994_vm10, %v1047_v7, 0.0  ;;  %vm1724_vm6 = vcmask 195744  }
 0x1bf   :  { %844 = vst.msk [vmem:[#allocation2 + $0x58] sm:$0xff] %vm832_vm8, %v807_v17  ;;  %v1066_v17 = vadd.f32 %v1065_v5, %v1064_v9  ;;  %v1033_v5 = vmul.f32 128.0, %v2661_v62 }
 0x1c4   :  { %v718_v20 = vpop.permute.xlu0 %717  ;;  %v815_v23 = vpop.permute.xlu1 %814 }
 0x1c5   :  { %751 = vst.msk [vmem:[#allocation2 + $0x78] sm:$0xff] %vm735_vm7, %v718_v20  ;;  %v968_v33 = vpop.f32.mrf.mxu0  ;;  %vm1822_vm7 = vcmask 228544  }
 0x1c6   :  { %848 = vst.msk [vmem:[#allocation2 + $0x78] sm:$0xff] %vm832_vm8, %v815_v23  ;;  %v860_v24 = vld [vmem:[#allocation2 + $0x58] sm:$0xff]  ;;  %v3381_v0 = vadd.f32 %v3323_v11, %v968_v33  ;;  %vm1919_vm8 = vcmask 261344  }
 0x1c7   :  { %2589 = vmatmul.msk.f32.gmra.mxu0 %vm878_vm9, %v860_v24  ;;  %v1068_v24 = vadd.f32 %v1067_v13, %v1066_v17  ;;  %v1034_v17 = vsub.f32 1.0, %v1033_v5 }
 0x1c8   :  { %v1048_v15 = vmul.f32 %v3381_v0, %v3381_v0  ;;  %v1010_v20 = vsel %vm994_vm10, %v3381_v0, 0.0 }
 0x1c9   :  { %v1070_v30 = vadd.f32 %v1069_v19, %v1068_v24 }
 0x1ca   :  { %v1071_v26 = vsel %vm994_vm10, %v1048_v15, 0.0 }
 0x1cb   :  { %v1072_v33 = vadd.f32 %v1071_v26, %v1070_v30  ;;  %v1035_v26 = vmul.f32 %v2661_v62, %v1034_v17 }
 0x1cd   :  { %v864_v25 = vld [vmem:[#allocation2 + $0x78] sm:$0xff]  ;;  %v1036_v30 = vadd.f32 %v2661_v62, %v1035_v26 }
 0x1ce   :  { %2593 = vmatmul.msk.f32.gmra.mxu3 %vm878_vm9, %v864_v25  ;;  %v1009_v25 = vadd.f32 %v1008_v14, %v1007_v18  ;;  %vm2016_vm9 = vcmask 294144  }
 0x1d0   :  { %v1011_v31 = vadd.f32 %v1010_v20, %v1009_v25 }
 0x1d9   :  { %v980_v1 = vpop.f32.mrf.mxu3 }
 0x1da   :  { %v3413_v36 = vadd.f32 %v3323_v11, %v980_v1 }
 0x1dc   :  { %v1052_v47 = vmul.f32 %v3413_v36, %v3413_v36  ;;  %v1018_v54 = vsel %vm994_vm10, %v3413_v36, 0.0 }
 0x1de   :  { %v1079_v59 = vsel %vm994_vm10, %v1052_v47, 0.0 }
 0x1f3   :  { %v971_v41 = vpop.f32.mrf.mxu0 }
 0x1f4   :  { %v3389_v8 = vadd.f32 %v3323_v11, %v971_v41 }
 0x1f6   :  { %v1049_v23 = vmul.f32 %v3389_v8, %v3389_v8  ;;  %v1012_v27 = vsel %vm994_vm10, %v3389_v8, 0.0 }
 0x1f7   :  { %v1013_v21 = vadd.f32 %v1012_v27, %v1011_v31 }
 0x1f8   :  { %v1073_v10 = vsel %vm994_vm10, %v1049_v23, 0.0 }
 0x1f9   :  { %v1074_v41 = vadd.f32 %v1073_v10, %v1072_v33 }
 0x200   :  { %v983_v28 = vpop.f32.mrf.mxu3 }
 0x201   :  { %v3426_v48 = vadd.f32 %v3323_v11, %v983_v28 }
 0x203   :  { %v1053_v60 = vmul.f32 %v3426_v48, %v3426_v48  ;;  %v1020_v1 = vsel %vm994_vm10, %v3426_v48, 0.0 }
 0x205   :  { %v1081_v3 = vsel %vm994_vm10, %v1053_v60, 0.0  ;;  %v992_v60 = vld [vmem:[%s4247_s3] sm:$0x1]  ;;  %s2677_s3 = smov 20  }
 0x21a   :  { %v974_v4 = vpop.f32.mrf.mxu0 }
 0x21b   :  { %v3397_v16 = vadd.f32 %v3323_v11, %v974_v4 }
 0x21d   :  { %v1050_v29 = vmul.f32 %v3397_v16, %v3397_v16  ;;  %v1014_v32 = vsel %vm994_vm10, %v3397_v16, 0.0 }
 0x21e   :  { %v1015_v42 = vadd.f32 %v1014_v32, %v1013_v21  ;;  %v3453_v21 = vsel %vm1037_vm11, %v2661_v62, %v1036_v30  ;;  %vm2058_vm11 = vcmask 293888  }
 0x21f   :  { %v1075_v39 = vsel %vm994_vm10, %v1050_v29, 0.0 }
 0x220   :  { %v1076_v49 = vadd.f32 %v1075_v39, %v1074_v41  ;;  %v2675_v41 = vmov 0.0  }
 0x221   :  { %1164 = vst.msk [vmem:[#allocation3] sm:$0xff] %vm994_vm10, %v2675_v41 }
 0x222   :  { %1166 = vst.msk [vmem:[#allocation3 + $0x8] sm:$0x3] %vm1165_vm12, %v2675_v41 }
 0x223   :  { %1167 = vst.msk [vmem:[#allocation3 + $0xa0] sm:$0xff] %vm994_vm10, %v2675_v41 }
 0x224   :  { %1168 = vst.msk [vmem:[#allocation3 + $0xa8] sm:$0x3] %vm1165_vm12, %v2675_v41 }
 0x225   :  { %1170 = vst.msk [vmem:[#allocation3 + $0x90] sm:$0xff] %vm994_vm10, %v2675_v41 }
 0x226   :  { %1171 = vst.msk [vmem:[#allocation3 + $0x98] sm:$0x3] %vm1165_vm12, %v2675_v41 }
 0x227   :  { %1172 = vst.msk [vmem:[#allocation3 + $0x130] sm:$0xff] %vm994_vm10, %v2675_v41 }
 0x228   :  { %1173 = vst.msk [vmem:[#allocation3 + $0x138] sm:$0x3] %vm1165_vm12, %v2675_v41 }
 0x229   :  { %1192 = vst.msk [vmem:[#allocation3 + $0x19] sm:$0x1] %vm1175_vm13, %v2675_v41 }
 0x22a   :  { %v986_v52 = vpop.f32.mrf.mxu3  ;;  %1176 = vst.msk [vmem:[#allocation3 + $0x10] sm:$0x1] %vm1175_vm13, %v2675_v41 }
 0x22b   :  { %v3435_v61 = vadd.f32 %v3323_v11, %v986_v52  ;;  %v1353_v52 = vld [vmem:[#allocation3 + $0x2] sm:$0xff]  ;;  %1177 = vst.msk [vmem:[#allocation3 + $0x20] sm:$0x1] %vm1175_vm13, %v2675_v41 }
 0x22c   :  { %1385 = vrot.lane.b32.xlu0 %v1353_v52, %s2667_s22  ;;  %1178 = vst.msk [vmem:[#allocation3 + $0x30] sm:$0x1] %vm1175_vm13, %v2675_v41 }
 0x22d   :  { %v1054_v4 = vmul.f32 %v3435_v61, %v3435_v61  ;;  %v1022_v9 = vsel %vm994_vm10, %v3435_v61, 0.0  ;;  %1179 = vst.msk [vmem:[#allocation3 + $0x40] sm:$0x1] %vm1175_vm13, %v2675_v41 }
 0x22e   :  { %1180 = vst.msk [vmem:[#allocation3 + $0x50] sm:$0x1] %vm1175_vm13, %v2675_v41 }
 0x22f   :  { %v1083_v14 = vsel %vm994_vm10, %v1054_v4, 0.0  ;;  %1181 = vst.msk [vmem:[#allocation3 + $0x60] sm:$0x1] %vm1175_vm13, %v2675_v41 }
 0x230   :  { %1182 = vst.msk [vmem:[#allocation3 + $0x70] sm:$0x1] %vm1175_vm13, %v2675_v41 }
 0x231   :  { %1183 = vst.msk [vmem:[#allocation3 + $0x80] sm:$0x1] %vm1175_vm13, %v2675_v41 }
 0x232   :  { %1184 = vst.msk [vmem:[#allocation3 + $0xb0] sm:$0x1] %vm1175_vm13, %v2675_v41 }
 0x233   :  { %1185 = vst.msk [vmem:[#allocation3 + $0xc0] sm:$0x1] %vm1175_vm13, %v2675_v41 }
 0x234   :  { %1186 = vst.msk [vmem:[#allocation3 + $0xd0] sm:$0x1] %vm1175_vm13, %v2675_v41 }
 0x235   :  { %1187 = vst.msk [vmem:[#allocation3 + $0xe0] sm:$0x1] %vm1175_vm13, %v2675_v41 }
 0x236   :  { %1188 = vst.msk [vmem:[#allocation3 + $0xf0] sm:$0x1] %vm1175_vm13, %v2675_v41 }
 0x237   :  { %1189 = vst.msk [vmem:[#allocation3 + $0x100] sm:$0x1] %vm1175_vm13, %v2675_v41 }
 0x238   :  { %1190 = vst.msk [vmem:[#allocation3 + $0x110] sm:$0x1] %vm1175_vm13, %v2675_v41 }
 0x239   :  { %1191 = vst.msk [vmem:[#allocation3 + $0x120] sm:$0x1] %vm1175_vm13, %v2675_v41 }
 0x23a   :  { %1193 = vst.msk [vmem:[#allocation3 + $0x29] sm:$0x1] %vm1175_vm13, %v2675_v41 }
 0x23b   :  { %1194 = vst.msk [vmem:[#allocation3 + $0x39] sm:$0x1] %vm1175_vm13, %v2675_v41 }
 0x23c   :  { %1195 = vst.msk [vmem:[#allocation3 + $0x49] sm:$0x1] %vm1175_vm13, %v2675_v41 }
 0x23d   :  { %1196 = vst.msk [vmem:[#allocation3 + $0x59] sm:$0x1] %vm1175_vm13, %v2675_v41 }
 0x23e   :  { %1197 = vst.msk [vmem:[#allocation3 + $0x69] sm:$0x1] %vm1175_vm13, %v2675_v41 }
 0x23f   :  { %1198 = vst.msk [vmem:[#allocation3 + $0x79] sm:$0x1] %vm1175_vm13, %v2675_v41 }
 0x240   :  { %1199 = vst.msk [vmem:[#allocation3 + $0x89] sm:$0x1] %vm1175_vm13, %v2675_v41 }
 0x241   :  { %1200 = vst.msk [vmem:[#allocation3 + $0xb9] sm:$0x1] %vm1175_vm13, %v2675_v41 }
 0x242   :  { %1201 = vst.msk [vmem:[#allocation3 + $0xc9] sm:$0x1] %vm1175_vm13, %v2675_v41 }
 0x243   :  { %1202 = vst.msk [vmem:[#allocation3 + $0xd9] sm:$0x1] %vm1175_vm13, %v2675_v41 }
 0x244   :  { %v977_v38 = vpop.f32.mrf.mxu0  ;;  %1203 = vst.msk [vmem:[#allocation3 + $0xe9] sm:$0x1] %vm1175_vm13, %v2675_v41 }
 0x245   :  { %v3417_v40 = vadd.f32 %v3323_v11, %v977_v38  ;;  %1204 = vst.msk [vmem:[#allocation3 + $0xf9] sm:$0x1] %vm1175_vm13, %v2675_v41 }
 0x246   :  { %1205 = vst.msk [vmem:[#allocation3 + $0x109] sm:$0x1] %vm1175_vm13, %v2675_v41 }
 0x247   :  { %v1016_v43 = vsel %vm994_vm10, %v3417_v40, 0.0  ;;  %v1051_v44 = vmul.f32 %v3417_v40, %v3417_v40  ;;  %1206 = vst.msk [vmem:[#allocation3 + $0x119] sm:$0x1] %vm1175_vm13, %v2675_v41 }
 0x248   :  { %v1017_v50 = vadd.f32 %v1016_v43, %v1015_v42  ;;  %1207 = vst.msk [vmem:[#allocation3 + $0x129] sm:$0x1] %vm1175_vm13, %v2675_v41 }
 0x249   :  { %v1077_v53 = vsel %vm994_vm10, %v1051_v44, 0.0 }
 0x24a   :  { %v1078_v55 = vadd.f32 %v1077_v53, %v1076_v49  ;;  %v1019_v57 = vadd.f32 %v1018_v54, %v1017_v50  ;;  %v1256_v50 = vld [vmem:[#allocation3 + $0x1] sm:$0xff] }
 0x24b   :  { %1288 = vrot.lane.b32.xlu2 %v1256_v50, %s2676_s2 }
 0x24c   :  { %v1080_v63 = vadd.f32 %v1079_v59, %v1078_v55  ;;  %v1021_v2 = vadd.f32 %v1020_v1, %v1019_v57 }
 0x24e   :  { %v1082_v7 = vadd.f32 %v1081_v3, %v1080_v63  ;;  %v1023_v13 = vadd.f32 %v1022_v9, %v1021_v2  ;;  %v993_v2 = vld [vmem:[%s4248_s4] sm:$0x1]  ;;  %s2678_s4 = smov 12  }
 0x250   :  { %v1084_v20 = vadd.f32 %v1083_v14, %v1082_v7 }
 0x251   :  { %v989_v6 = vpop.f32.mrf.mxu3 }
 0x252   :  { %v3445_v12 = vadd.f32 %v3323_v11, %v989_v6 }
 0x254   :  { %v1024_v15 = vsel %vm994_vm10, %v3445_v12, 0.0  ;;  %v1055_v18 = vmul.f32 %v3445_v12, %v3445_v12 }
 0x255   :  { %v1025_v19 = vadd.f32 %v1024_v15, %v1023_v13 }
 0x256   :  { %v1085_v23 = vsel %vm994_vm10, %v1055_v18, 0.0 }
 0x257   :  { %v1026_v24 = vrot.slane %v1025_v19, 4  ;;  %v1086_v25 = vadd.f32 %v1085_v23, %v1084_v20 }
 0x259   :  { %v1027_v27 = vadd.f32 %v1026_v24, %v1025_v19  ;;  %v1087_v11 = vrot.slane %v1086_v25, 4 }
 0x25b   :  { %v1028_v28 = vrot.slane %v1027_v27, 2  ;;  %v1088_v29 = vadd.f32 %v1087_v11, %v1086_v25 }
 0x25d   :  { %v1029_v31 = vadd.f32 %v1028_v28, %v1027_v27  ;;  %v1089_v10 = vrot.slane %v1088_v29, 2 }
 0x25f   :  { %v1030_v32 = vrot.slane %v1029_v31, 1  ;;  %v1090_v33 = vadd.f32 %v1089_v10, %v1088_v29 }
 0x261   :  { %v1031_v38 = vadd.f32 %v1030_v32, %v1029_v31  ;;  %v1091_v39 = vrot.slane %v1090_v33, 1 }
 0x263   :  { %v1039_v42 = vmul.f32 %v3453_v21, %v1031_v38  ;;  %v1092_v43 = vadd.f32 %v1091_v39, %v1090_v33 }
 0x265   :  { %v1093_v44 = vmul.f32 %v1092_v43, %v3453_v21  ;;  %v1094_v46 = vmul.f32 %v1039_v42, %v1039_v42 }
 0x267   :  { %v1095_v47 = vsub.f32 %v1093_v44, %v1094_v46 }
 0x269   :  { %v1096_v49 = vadd.f32 1e-05, %v1095_v47 }
 0x26b   :  { %2662 = vrsqrt.f32 %v1096_v49  ;;  %vm1103_vm15 = vweird.f32 %v1096_v49 }
 0x271   :  { %v2663_v53 = vpop.eup %2662 }
 0x272   :  { %v1098_v54 = vmul.f32 %v2663_v53, %v1096_v49  ;;  %vm1104_vm14 = vweird.f32 %v2663_v53 }
 0x273   :  { %vm1105_vm0 = vmor %vm1103_vm15, %vm1104_vm14  ;;  %vm2461_vm15 = vcmask 130048  }
 0x274   :  { %v1099_v55 = vmul.f32 %v2663_v53, %v1098_v54 }
 0x276   :  { %v1100_v57 = vmul.f32 0.5, %v1099_v55 }
 0x278   :  { %v1101_v59 = vsub.f32 1.5, %v1100_v57 }
 0x27a   :  { %v1102_v62 = vmul.f32 %v2663_v53, %v1101_v59 }
 0x27c   :  { %v1106_v63 = vsel %vm1105_vm0, %v2663_v53, %v1102_v62 }
 0x27d   :  { %v1107_v1 = vmul.f32 %v1106_v63, %v992_v60 }
 0x27f   :  { %v1108_v3 = vmul.f32 %v1107_v1, %v1039_v42  ;;  %v3519_v4 = vperm.slane %v1107_v1, 0 }
 0x281   :  { %v1109_v5 = vsub.f32 %v993_v2, %v1108_v3  ;;  %v1128_v6 = vmul.f32 %v3519_v4, %v3445_v12  ;;  %v1113_v9 = vmul.f32 %v3519_v4, %v3329_v56  ;;  %v1114_v13 = vmul.f32 %v3519_v4, %v3326_v34 }
 0x282   :  { %v1115_v14 = vmul.f32 %v3519_v4, %v3332_v35  ;;  %v1116_v12 = vmul.f32 %v3519_v4, %v3337_v37  ;;  %v1117_v15 = vmul.f32 %v3519_v4, %v3346_v22  ;;  %v1118_v37 = vmul.f32 %v3519_v4, %v3356_v45 }
 0x283   :  { %v3531_v7 = vperm.slane %v1109_v5, 0  ;;  %v1119_v23 = vmul.f32 %v3519_v4, %v3365_v51  ;;  %v1120_v27 = vmul.f32 %v3519_v4, %v3373_v58  ;;  %v1121_v30 = vmul.f32 %v3519_v4, %v3381_v0 }
 0x284   :  { %v1122_v58 = vmul.f32 %v3519_v4, %v3389_v8  ;;  %v1123_v38 = vmul.f32 %v3519_v4, %v3397_v16  ;;  %v1125_v0 = vmul.f32 %v3519_v4, %v3413_v36  ;;  %v1126_v46 = vmul.f32 %v3519_v4, %v3426_v48 }
 0x285   :  { %v1147_v56 = vadd.f32 %v3531_v7, %v1128_v6  ;;  %v1132_v17 = vadd.f32 %v3531_v7, %v1113_v9  ;;  %v1133_v34 = vadd.f32 %v3531_v7, %v1114_v13  ;;  %v1134_v35 = vadd.f32 %v3531_v7, %v1115_v14 }
 0x286   :  { %v1135_v18 = vadd.f32 %v3531_v7, %v1116_v12  ;;  %v1136_v20 = vadd.f32 %v3531_v7, %v1117_v15  ;;  %v1137_v25 = vadd.f32 %v3531_v7, %v1118_v37  ;;  %v1138_v45 = vadd.f32 %v3531_v7, %v1119_v23 }
 0x287   :  { %v1163_v22 = vmax.f32 %v1147_v56, 0.0  ;;  %v1148_v19 = vmax.f32 %v1132_v17, 0.0  ;;  %v1149_v24 = vmax.f32 %v1133_v34, 0.0  ;;  %v1150_v26 = vmax.f32 %v1134_v35, 0.0  ;;  %v1224_v56 = vld [vmem:[#allocation3] sm:$0xff] }
 0x288   :  { %v1151_v11 = vmax.f32 %v1135_v18, 0.0  ;;  %v1152_v51 = vmax.f32 %v1136_v20, 0.0  ;;  %v1139_v28 = vadd.f32 %v3531_v7, %v1120_v27  ;;  %v1153_v29 = vmax.f32 %v1137_v25, 0.0  ;;  %1240 = vst.msk [vmem:[#allocation4] sm:$0xff] %vm994_vm10, %v1224_v56  ;;  %v2052_v20 = vld [vmem:[%s4249_s5 + $0x18] sm:$0xff]  ;;  %v2051_v25 = vld [vmem:[%s4249_s5 + $0x10] sm:$0xff] }
 0x289   :  { %1223 = vst.msk [vmem:[#allocation3 + $0x121] sm:$0xff] %vm994_vm10, %v1163_v22  ;;  %v1154_v31 = vmax.f32 %v1138_v45, 0.0  ;;  %v1140_v10 = vadd.f32 %v3531_v7, %v1121_v30  ;;  %v1141_v33 = vadd.f32 %v3531_v7, %v1122_v58  ;;  %v1142_v42 = vadd.f32 %v3531_v7, %v1123_v38  ;;  %v2050_v45 = vld [vmem:[%s4249_s5 + $0x8] sm:$0xff]  ;;  %v2049_v27 = vld [vmem:[%s4249_s5] sm:$0xff] }
 0x28a   :  { %1208 = vst.msk [vmem:[#allocation3 + $0x11] sm:$0xff] %vm994_vm10, %v1148_v19  ;;  %v1155_v32 = vmax.f32 %v1139_v28, 0.0  ;;  %v1144_v43 = vadd.f32 %v3531_v7, %v1125_v0  ;;  %v1127_v49 = vmul.f32 %v3519_v4, %v3435_v61  ;;  %v1145_v53 = vadd.f32 %v3531_v7, %v1126_v46  ;;  %v2053_v19 = vld [vmem:[%s4249_s5 + $0x20] sm:$0xf] }
 0x28b   :  { %1209 = vst.msk [vmem:[#allocation3 + $0x21] sm:$0xff] %vm994_vm10, %v1149_v24  ;;  %v1156_v16 = vmax.f32 %v1140_v10, 0.0  ;;  %v1157_v44 = vmax.f32 %v1141_v33, 0.0  ;;  %v1158_v52 = vmax.f32 %v1142_v42, 0.0  ;;  %v1124_v54 = vmul.f32 %v3519_v4, %v3417_v40  ;;  %2594 = vmatpush.msk.msra.mxu1 %vm2107_vm3, %v2053_v19  ;;  %2637 = vmatpush.msk.msrb.mxu3 %vm2107_vm3, %v2053_v19 }
 0x28c   :  { %1210 = vst.msk [vmem:[#allocation3 + $0x31] sm:$0xff] %vm994_vm10, %v1150_v26  ;;  %v1160_v55 = vmax.f32 %v1144_v43, 0.0  ;;  %v1146_v48 = vadd.f32 %v3531_v7, %v1127_v49  ;;  %v1161_v40 = vmax.f32 %v1145_v53, 0.0  ;;  %v1749_v49 = vld [vmem:[#allocation3 + $0x90] sm:$0xff] }
 0x28d   :  { %1211 = vst.msk [vmem:[#allocation3 + $0x41] sm:$0xff] %vm994_vm10, %v1151_v11  ;;  %v1143_v57 = vadd.f32 %v3531_v7, %v1124_v54  ;;  %2123 = vmatpush.msra.mxu1 %v2052_v20  ;;  %2638 = vmatpush.msrb.mxu3 %v2052_v20 }
 0x28e   :  { %1212 = vst.msk [vmem:[#allocation3 + $0x51] sm:$0xff] %vm994_vm10, %v1152_v51  ;;  %v1162_v63 = vmax.f32 %v1146_v48, 0.0  ;;  %v1943_v48 = vld [vmem:[#allocation3 + $0x92] sm:$0xff] }
 0x28f   :  { %1213 = vst.msk [vmem:[#allocation3 + $0x61] sm:$0xff] %vm994_vm10, %v1153_v29  ;;  %v1159_v1 = vmax.f32 %v1143_v57, 0.0  ;;  %2124 = vmatpush.msra.mxu1 %v2051_v25  ;;  %2639 = vmatpush.msrb.mxu3 %v2051_v25  ;;  %v1846_v57 = vld [vmem:[#allocation3 + $0x91] sm:$0xff] }
 0x290   :  { %1214 = vst.msk [vmem:[#allocation3 + $0x71] sm:$0xff] %vm994_vm10, %v1154_v31 }
 0x291   :  { %v1644_v39 = vld [vmem:[#allocation3 + $0x12] sm:$0xff]  ;;  %1215 = vst.msk [vmem:[#allocation3 + $0x81] sm:$0xff] %vm994_vm10, %v1155_v32  ;;  %2125 = vmatpush.msra.mxu1 %v2050_v45  ;;  %2640 = vmatpush.msrb.mxu3 %v2050_v45 }
 0x292   :  { %v1547_v41 = vld [vmem:[#allocation3 + $0x11] sm:$0xff]  ;;  %1676 = vrot.lane.b32.xlu0 %v1644_v39, %s2677_s3  ;;  %v1742_v36 = vld [vmem:[#allocation3 + $0x20] sm:$0xff]  ;;  %1216 = vst.msk [vmem:[#allocation3 + $0xb1] sm:$0xff] %vm994_vm10, %v1156_v16 }
 0x293   :  { %v1450_v8 = vld [vmem:[#allocation3 + $0x10] sm:$0xff]  ;;  %1579 = vrot.lane.b32.xlu2 %v1547_v41, %s2670_s12  ;;  %1242 = vst.msk [vmem:[#allocation4 + $0x10] sm:$0xff] %vm994_vm10, %v1742_v36  ;;  %v1936_v59 = vld [vmem:[#allocation3 + $0x22] sm:$0xff]  ;;  %2126 = vmatpush.msra.mxu1 %v2049_v27 }
 0x294   :  { %1241 = vst.msk [vmem:[#allocation4 + $0x8] sm:$0xff] %vm994_vm10, %v1450_v8  ;;  %1482 = vrot.lane.b32.xlu1 %v1450_v8, %s2678_s4  ;;  %v1743_v47 = vld [vmem:[#allocation3 + $0x30] sm:$0xff]  ;;  %v3602_v50 = vld [vmem:[#allocation3 + $0x40] sm:$0xff]  ;;  %2641 = vmatpush.msrb.mxu3 %v2049_v27 }
 0x295   :  { %1243 = vst.msk [vmem:[#allocation4 + $0x18] sm:$0xff] %vm994_vm10, %v1743_v47  ;;  %v3612_v61 = vld [vmem:[#allocation3 + $0x50] sm:$0xff]  ;;  %v1839_v60 = vld [vmem:[#allocation3 + $0x21] sm:$0xff] }
 0x296   :  { %1217 = vst.msk [vmem:[#allocation3 + $0xc1] sm:$0xff] %vm994_vm10, %v1157_v44  ;;  %v3616_v62 = vld [vmem:[#allocation3 + $0x60] sm:$0xff]  ;;  %v1937_v14 = vld [vmem:[#allocation3 + $0x32] sm:$0xff] }
 0x297   :  { %1244 = vst.msk [vmem:[#allocation4 + $0x20] sm:$0xff] %vm994_vm10, %v3602_v50  ;;  %v3627_v2 = vld [vmem:[#allocation3 + $0x70] sm:$0xff]  ;;  %v1841_v15 = vld [vmem:[#allocation3 + $0x41] sm:$0xff] }
 0x298   :  { %1218 = vst.msk [vmem:[#allocation3 + $0xd1] sm:$0xff] %vm994_vm10, %v1158_v52  ;;  %v1840_v12 = vld [vmem:[#allocation3 + $0x31] sm:$0xff]  ;;  %v1938_v34 = vld [vmem:[#allocation3 + $0x42] sm:$0xff] }
 0x299   :  { %1220 = vst.msk [vmem:[#allocation3 + $0xf1] sm:$0xff] %vm994_vm10, %v1160_v55  ;;  %v3630_v3 = vld [vmem:[#allocation3 + $0xb0] sm:$0xff]  ;;  %v1940_v23 = vld [vmem:[#allocation3 + $0x62] sm:$0xff] }
 0x29a   :  { %1968 = vrot.lane.b32.xlu0 %v1936_v59, %s2669_s30  ;;  %1245 = vst.msk [vmem:[#allocation4 + $0x28] sm:$0xff] %vm994_vm10, %v3612_v61  ;;  %v1939_v35 = vld [vmem:[#allocation3 + $0x52] sm:$0xff]  ;;  %v1843_v24 = vld [vmem:[#allocation3 + $0x61] sm:$0xff] }
 0x29b   :  { %1871 = vrot.lane.b32.xlu2 %v1839_v60, %s2679_s14  ;;  %1246 = vst.msk [vmem:[#allocation4 + $0x30] sm:$0xff] %vm994_vm10, %v3616_v62  ;;  %v1842_v18 = vld [vmem:[#allocation3 + $0x51] sm:$0xff]  ;;  %v1845_v8 = vld [vmem:[#allocation3 + $0x81] sm:$0xff] }
 0x29c   :  { %1774 = vrot.lane.b32.xlu1 %v1742_v36, %s2666_s21  ;;  %1221 = vst.msk [vmem:[#allocation3 + $0x101] sm:$0xff] %vm994_vm10, %v1161_v40  ;;  %v1844_v51 = vld [vmem:[#allocation3 + $0x71] sm:$0xff]  ;;  %v1748_v42 = vld [vmem:[#allocation3 + $0x80] sm:$0xff] }
 0x29d   :  { %1222 = vst.msk [vmem:[#allocation3 + $0x111] sm:$0xff] %vm994_vm10, %v1162_v63  ;;  %v3634_v4 = vld [vmem:[#allocation3 + $0xc0] sm:$0xff]  ;;  %v1941_v31 = vld [vmem:[#allocation3 + $0x72] sm:$0xff] }
 0x29e   :  { %1219 = vst.msk [vmem:[#allocation3 + $0xe1] sm:$0xff] %vm994_vm10, %v1159_v1  ;;  %v1386_v37 = vpop.permute.xlu0 %1385  ;;  %v1264_v55 = vld [vmem:[#allocation3 + $0xa1] sm:$0xff]  ;;  %v1555_v40 = vld [vmem:[#allocation3 + $0xb1] sm:$0xff] }
 0x29f   :  { %1247 = vst.msk [vmem:[#allocation4 + $0x38] sm:$0xff] %vm994_vm10, %v3627_v2  ;;  %v3638_v5 = vld [vmem:[#allocation3 + $0xd0] sm:$0xff] }
 0x2a0   :  { %v3640_v6 = vld [vmem:[#allocation3 + $0xf0] sm:$0xff]  ;;  %1249 = vst.msk [vmem:[#allocation4 + $0x48] sm:$0xff] %vm994_vm10, %v3630_v3 }
 0x2a1   :  { %1253 = vst.msk [vmem:[#allocation4 + $0x68] sm:$0xff] %vm994_vm10, %v3640_v6  ;;  %v3801_v25 = vld [vmem:[#allocation3 + $0xd1] sm:$0xff] }
 0x2a2   :  { %1484 = vrot.lane.b32.xlu0 %v1742_v36, %s2678_s4  ;;  %1250 = vst.msk [vmem:[#allocation4 + $0x50] sm:$0xff] %vm994_vm10, %v3634_v4  ;;  %v3812_v27 = vld [vmem:[#allocation3 + $0xf1] sm:$0xff] }
 0x2a3   :  { %1387 = vrot.lane.b32.xlu2 %v1644_v39, %s2667_s22  ;;  %v3651_v7 = vld [vmem:[#allocation3 + $0x100] sm:$0xff]  ;;  %1251 = vst.msk [vmem:[#allocation4 + $0x58] sm:$0xff] %vm994_vm10, %v3638_v5 }
 0x2a4   :  { %1290 = vrot.lane.b32.xlu1 %v1547_v41, %s2676_s2  ;;  %v3655_v9 = vld [vmem:[#allocation3 + $0x110] sm:$0xff]  ;;  %1254 = vst.msk [vmem:[#allocation4 + $0x70] sm:$0xff] %vm994_vm10, %v3651_v7  ;;  %v1942_v41 = vld [vmem:[#allocation3 + $0x82] sm:$0xff] }
 0x2a5   :  { %v3659_v13 = vld [vmem:[#allocation3 + $0xe0] sm:$0xff]  ;;  %1255 = vst.msk [vmem:[#allocation4 + $0x78] sm:$0xff] %vm994_vm10, %v3655_v9  ;;  %v1289_v17 = vpop.permute.xlu2 %1288 }
 0x2a6   :  { %1252 = vst.msk [vmem:[#allocation4 + $0x60] sm:$0xff] %vm994_vm10, %v3659_v13 }
 0x2a7   :  { %1337 = vst.msk [vmem:[#allocation4] sm:$0xff] %vm1336_vm1, %v1289_v17 }
 0x2a8   :  { %1434 = vst.msk [vmem:[#allocation4] sm:$0xff] %vm1433_vm2, %v1386_v37 }
 0x2aa   :  { %1776 = vrot.lane.b32.xlu0 %v1743_v47, %s2666_s21 }
 0x2ab   :  { %1678 = vrot.lane.b32.xlu2 %v1936_v59, %s2677_s3 }
 0x2ac   :  { %1581 = vrot.lane.b32.xlu1 %v1839_v60, %s2670_s12 }
 0x2b2   :  { %1292 = vrot.lane.b32.xlu0 %v1839_v60, %s2676_s2 }
 0x2b3   :  { %1970 = vrot.lane.b32.xlu2 %v1937_v14, %s2669_s30 }
 0x2b4   :  { %1873 = vrot.lane.b32.xlu1 %v1840_v12, %s2679_s14 }
 0x2ba   :  { %1583 = vrot.lane.b32.xlu0 %v1840_v12, %s2670_s12 }
 0x2bb   :  { %1486 = vrot.lane.b32.xlu2 %v1743_v47, %s2678_s4 }
 0x2bc   :  { %1389 = vrot.lane.b32.xlu1 %v1936_v59, %s2667_s22 }
 0x2c2   :  { %1875 = vrot.lane.b32.xlu0 %v1841_v15, %s2679_s14 }
 0x2c3   :  { %1778 = vrot.lane.b32.xlu2 %v3602_v50, %s2666_s21 }
 0x2c4   :  { %1680 = vrot.lane.b32.xlu1 %v1937_v14, %s2677_s3 }
 0x2ca   :  { %1391 = vrot.lane.b32.xlu0 %v1937_v14, %s2667_s22  ;;  %v1847_v14 = vld [vmem:[#allocation3 + $0xc1] sm:$0xff] }
 0x2cb   :  { %1294 = vrot.lane.b32.xlu2 %v1840_v12, %s2676_s2  ;;  %v1652_v12 = vld [vmem:[#allocation3 + $0xb2] sm:$0xff] }
 0x2cc   :  { %1972 = vrot.lane.b32.xlu1 %v1938_v34, %s2669_s30 }
 0x2d2   :  { %1682 = vrot.lane.b32.xlu0 %v1938_v34, %s2677_s3 }
 0x2d3   :  { %1585 = vrot.lane.b32.xlu2 %v1841_v15, %s2670_s12 }
 0x2d4   :  { %1488 = vrot.lane.b32.xlu1 %v3602_v50, %s2678_s4 }
 0x2da   :  { %1974 = vrot.lane.b32.xlu0 %v1939_v35, %s2669_s30 }
 0x2db   :  { %1877 = vrot.lane.b32.xlu2 %v1842_v18, %s2679_s14 }
 0x2dc   :  { %1780 = vrot.lane.b32.xlu1 %v3612_v61, %s2666_s21 }
 0x2e2   :  { %1490 = vrot.lane.b32.xlu0 %v3612_v61, %s2678_s4 }
 0x2e3   :  { %1393 = vrot.lane.b32.xlu2 %v1938_v34, %s2667_s22  ;;  %v1944_v34 = vld [vmem:[#allocation3 + $0xc2] sm:$0xff] }
 0x2e4   :  { %1296 = vrot.lane.b32.xlu1 %v1841_v15, %s2676_s2 }
 0x2ea   :  { %1782 = vrot.lane.b32.xlu0 %v3616_v62, %s2666_s21 }
 0x2eb   :  { %1684 = vrot.lane.b32.xlu2 %v1939_v35, %s2677_s3 }
 0x2ec   :  { %1587 = vrot.lane.b32.xlu1 %v1842_v18, %s2670_s12 }
 0x2ed   :  { %v1580_v22 = vpop.permute.xlu2 %1579 }
 0x2f2   :  { %1298 = vrot.lane.b32.xlu0 %v1842_v18, %s2676_s2 }
 0x2f3   :  { %1976 = vrot.lane.b32.xlu2 %v1940_v23, %s2669_s30 }
 0x2f4   :  { %1879 = vrot.lane.b32.xlu1 %v1843_v24, %s2679_s14 }
 0x2f5   :  { %v1872_v26 = vpop.permute.xlu2 %1871 }
 0x2fa   :  { %1589 = vrot.lane.b32.xlu0 %v1843_v24, %s2670_s12 }
 0x2fb   :  { %1492 = vrot.lane.b32.xlu2 %v3616_v62, %s2678_s4  ;;  %v1361_v62 = vld [vmem:[#allocation3 + $0xa2] sm:$0xff] }
 0x2fc   :  { %1395 = vrot.lane.b32.xlu1 %v1939_v35, %s2667_s22 }
 0x2fd   :  { %v1388_v11 = vpop.permute.xlu2 %1387 }
 0x302   :  { %1881 = vrot.lane.b32.xlu0 %v1844_v51, %s2679_s14 }
 0x303   :  { %1784 = vrot.lane.b32.xlu2 %v3627_v2, %s2666_s21 }
 0x304   :  { %1686 = vrot.lane.b32.xlu1 %v1940_v23, %s2677_s3  ;;  %v1677_v28 = vpop.permute.xlu0 %1676 }
 0x305   :  { %v1679_v29 = vpop.permute.xlu2 %1678 }
 0x306   :  { %v1483_v30 = vpop.permute.xlu1 %1482 }
 0x307   :  { %1531 = vst.msk [vmem:[#allocation4] sm:$0xff] %vm1530_vm4, %v1483_v30 }
 0x308   :  { %1628 = vst.msk [vmem:[#allocation4] sm:$0xff] %vm1627_vm5, %v1580_v22 }
 0x309   :  { %1725 = vst.msk [vmem:[#allocation4] sm:$0xff] %vm1724_vm6, %v1677_v28 }
 0x30a   :  { %1397 = vrot.lane.b32.xlu0 %v1940_v23, %s2667_s22 }
 0x30b   :  { %1300 = vrot.lane.b32.xlu2 %v1843_v24, %s2676_s2  ;;  %v3799_v24 = vld [vmem:[#allocation3 + $0xd2] sm:$0xff] }
 0x30c   :  { %1978 = vrot.lane.b32.xlu1 %v1941_v31, %s2669_s30  ;;  %v1969_v58 = vpop.permute.xlu0 %1968 }
 0x30d   :  { %v1971_v10 = vpop.permute.xlu2 %1970 }
 0x30e   :  { %v1775_v32 = vpop.permute.xlu1 %1774 }
 0x30f   :  { %1823 = vst.msk [vmem:[#allocation4] sm:$0xff] %vm1822_vm7, %v1775_v32  ;;  %v3834_v32 = vld [vmem:[#allocation3 + $0x101] sm:$0xff] }
 0x310   :  { %1920 = vst.msk [vmem:[#allocation4] sm:$0xff] %vm1919_vm8, %v1872_v26 }
 0x311   :  { %2017 = vst.msk [vmem:[#allocation4] sm:$0xff] %vm2016_vm9, %v1969_v58 }
 0x312   :  { %1688 = vrot.lane.b32.xlu0 %v1941_v31, %s2677_s3 }
 0x313   :  { %1591 = vrot.lane.b32.xlu2 %v1844_v51, %s2670_s12 }
 0x314   :  { %1494 = vrot.lane.b32.xlu1 %v3627_v2, %s2678_s4  ;;  %v1485_v33 = vpop.permute.xlu0 %1484 }
 0x315   :  { %v1487_v38 = vpop.permute.xlu2 %1486 }
 0x316   :  { %v1291_v0 = vpop.permute.xlu1 %1290 }
 0x317   :  { %1338 = vst.msk [vmem:[#allocation4 + $0x8] sm:$0xff] %vm1336_vm1, %v1291_v0  ;;  %v3849_v0 = vld [vmem:[#allocation3 + $0x102] sm:$0xff] }
 0x318   :  { %1435 = vst.msk [vmem:[#allocation4 + $0x8] sm:$0xff] %vm1433_vm2, %v1388_v11  ;;  %v2033_v39 = vld [vmem:[#allocation4] sm:$0xff] }
 0x319   :  { %1532 = vst.msk [vmem:[#allocation4 + $0x8] sm:$0xff] %vm1530_vm4, %v1485_v33  ;;  %2595 = vmatmul.msk.f32.vlgmr.msra.gmra.mxu1 %vm2058_vm11, %v2033_v39 }
 0x31a   :  { %1980 = vrot.lane.b32.xlu0 %v1942_v41, %s2669_s30 }
 0x31b   :  { %1883 = vrot.lane.b32.xlu2 %v1845_v8, %s2679_s14 }
 0x31c   :  { %1786 = vrot.lane.b32.xlu1 %v1748_v42, %s2666_s21  ;;  %v1777_v16 = vpop.permute.xlu0 %1776 }
 0x31d   :  { %v1779_v43 = vpop.permute.xlu2 %1778 }
 0x31e   :  { %v1582_v36 = vpop.permute.xlu1 %1581 }
 0x31f   :  { %1629 = vst.msk [vmem:[#allocation4 + $0x8] sm:$0xff] %vm1627_vm5, %v1582_v36  ;;  %v1232_v36 = vld [vmem:[#allocation3 + $0xa0] sm:$0xff] }
 0x320   :  { %1726 = vst.msk [vmem:[#allocation4 + $0x8] sm:$0xff] %vm1724_vm6, %v1679_v29  ;;  %v3826_v29 = vld [vmem:[#allocation3 + $0xf2] sm:$0xff] }
 0x321   :  { %1824 = vst.msk [vmem:[#allocation4 + $0x8] sm:$0xff] %vm1822_vm7, %v1777_v16  ;;  %v3857_v16 = vld [vmem:[#allocation3 + $0x111] sm:$0xff] }
 0x322   :  { %1496 = vrot.lane.b32.xlu0 %v1748_v42, %s2678_s4  ;;  %v3855_v42 = vld [vmem:[#allocation3 + $0xe2] sm:$0xff]  ;;  %1248 = vst.msk [vmem:[#allocation4 + $0x40] sm:$0xff] %vm994_vm10, %v1232_v36 }
 0x323   :  { %1399 = vrot.lane.b32.xlu2 %v1941_v31, %s2667_s22 }
 0x324   :  { %1302 = vrot.lane.b32.xlu1 %v1844_v51, %s2676_s2  ;;  %v1293_v44 = vpop.permute.xlu0 %1292 }
 0x325   :  { %v1295_v46 = vpop.permute.xlu2 %1294  ;;  %1339 = vst.msk [vmem:[#allocation4 + $0x10] sm:$0xff] %vm1336_vm1, %v1293_v44 }
 0x326   :  { %v1874_v47 = vpop.permute.xlu1 %1873  ;;  %1340 = vst.msk [vmem:[#allocation4 + $0x18] sm:$0xff] %vm1336_vm1, %v1295_v46 }
 0x327   :  { %1921 = vst.msk [vmem:[#allocation4 + $0x8] sm:$0xff] %vm1919_vm8, %v1874_v47 }
 0x328   :  { %2018 = vst.msk [vmem:[#allocation4 + $0x8] sm:$0xff] %vm2016_vm9, %v1971_v10 }
 0x32a   :  { %1788 = vrot.lane.b32.xlu0 %v1749_v49, %s2666_s21 }
 0x32b   :  { %1690 = vrot.lane.b32.xlu2 %v1942_v41, %s2677_s3 }
 0x32c   :  { %1593 = vrot.lane.b32.xlu1 %v1845_v8, %s2670_s12  ;;  %v1584_v50 = vpop.permute.xlu0 %1583 }
 0x32d   :  { %v1586_v52 = vpop.permute.xlu2 %1585 }
 0x32e   :  { %v1390_v53 = vpop.permute.xlu1 %1389 }
 0x32f   :  { %1436 = vst.msk [vmem:[#allocation4 + $0x10] sm:$0xff] %vm1433_vm2, %v1390_v53  ;;  %v2034_v54 = vld [vmem:[#allocation4 + $0x8] sm:$0xff] }
 0x330   :  { %1533 = vst.msk [vmem:[#allocation4 + $0x10] sm:$0xff] %vm1530_vm4, %v1487_v38  ;;  %2596 = vmatmul.msk.f32.gmra.mxu1 %vm2058_vm11, %v2034_v54 }
 0x331   :  { %1630 = vst.msk [vmem:[#allocation4 + $0x10] sm:$0xff] %vm1627_vm5, %v1584_v50  ;;  %v1949_v50 = vld [vmem:[#allocation3 + $0x112] sm:$0xff] }
 0x332   :  { %1304 = vrot.lane.b32.xlu0 %v1264_v55, %s2676_s2 }
 0x333   :  { %1982 = vrot.lane.b32.xlu2 %v1943_v48, %s2669_s30 }
 0x334   :  { %1885 = vrot.lane.b32.xlu1 %v1846_v57, %s2679_s14  ;;  %v1876_v61 = vpop.permute.xlu0 %1875 }
 0x335   :  { %v1878_v59 = vpop.permute.xlu2 %1877 }
 0x336   :  { %v1681_v60 = vpop.permute.xlu1 %1680 }
 0x337   :  { %1727 = vst.msk [vmem:[#allocation4 + $0x10] sm:$0xff] %vm1724_vm6, %v1681_v60 }
 0x338   :  { %1825 = vst.msk [vmem:[#allocation4 + $0x10] sm:$0xff] %vm1822_vm7, %v1779_v43  ;;  %v3863_v43 = vld [vmem:[#allocation3 + $0xe1] sm:$0xff] }
 0x339   :  { %1922 = vst.msk [vmem:[#allocation4 + $0x10] sm:$0xff] %vm1919_vm8, %v1876_v61 }
 0x33a   :  { %1595 = vrot.lane.b32.xlu0 %v1555_v40, %s2670_s12 }
 0x33b   :  { %1498 = vrot.lane.b32.xlu2 %v3630_v3, %s2678_s4 }
 0x33c   :  { %1401 = vrot.lane.b32.xlu1 %v1361_v62, %s2667_s22  ;;  %v1392_v63 = vpop.permute.xlu0 %1391 }
 0x33d   :  { %v1394_v1 = vpop.permute.xlu2 %1393  ;;  %1437 = vst.msk [vmem:[#allocation4 + $0x18] sm:$0xff] %vm1433_vm2, %v1392_v63  ;;  %v1853_v63 = vld [vmem:[#allocation3 + $0x121] sm:$0xff] }
 0x33e   :  { %v1973_v2 = vpop.permute.xlu1 %1972 }
 0x33f   :  { %2019 = vst.msk [vmem:[#allocation4 + $0x10] sm:$0xff] %vm2016_vm9, %v1973_v2 }
 0x342   :  { %1887 = vrot.lane.b32.xlu0 %v1847_v14, %s2679_s14 }
 0x343   :  { %1790 = vrot.lane.b32.xlu2 %v3634_v4, %s2666_s21 }
 0x344   :  { %1692 = vrot.lane.b32.xlu1 %v1652_v12, %s2677_s3  ;;  %v1683_v15 = vpop.permute.xlu0 %1682 }
 0x345   :  { %v1685_v3 = vpop.permute.xlu2 %1684 }
 0x346   :  { %v1489_v56 = vpop.permute.xlu1 %1488  ;;  %v2035_v17 = vld [vmem:[#allocation4 + $0x10] sm:$0xff] }
 0x347   :  { %1534 = vst.msk [vmem:[#allocation4 + $0x18] sm:$0xff] %vm1530_vm4, %v1489_v56  ;;  %2597 = vmatmul.msk.f32.gmra.mxu1 %vm2058_vm11, %v2035_v17 }
 0x348   :  { %1631 = vst.msk [vmem:[#allocation4 + $0x18] sm:$0xff] %vm1627_vm5, %v1586_v52 }
 0x349   :  { %1728 = vst.msk [vmem:[#allocation4 + $0x18] sm:$0xff] %vm1724_vm6, %v1683_v15 }
 0x34a   :  { %1403 = vrot.lane.b32.xlu0 %v1652_v12, %s2667_s22 }
 0x34b   :  { %1306 = vrot.lane.b32.xlu2 %v1555_v40, %s2676_s2 }
 0x34c   :  { %1984 = vrot.lane.b32.xlu1 %v1944_v34, %s2669_s30  ;;  %v1975_v35 = vpop.permute.xlu0 %1974 }
 0x34d   :  { %v1977_v18 = vpop.permute.xlu2 %1976 }
 0x34e   :  { %v1781_v37 = vpop.permute.xlu1 %1780 }
 0x34f   :  { %1826 = vst.msk [vmem:[#allocation4 + $0x18] sm:$0xff] %vm1822_vm7, %v1781_v37 }
 0x350   :  { %1923 = vst.msk [vmem:[#allocation4 + $0x18] sm:$0xff] %vm1919_vm8, %v1878_v59 }
 0x351   :  { %2020 = vst.msk [vmem:[#allocation4 + $0x18] sm:$0xff] %vm2016_vm9, %v1975_v35 }
 0x352   :  { %1694 = vrot.lane.b32.xlu0 %v1944_v34, %s2677_s3 }
 0x353   :  { %1597 = vrot.lane.b32.xlu2 %v1847_v14, %s2670_s12 }
 0x354   :  { %1500 = vrot.lane.b32.xlu1 %v3634_v4, %s2678_s4  ;;  %v1491_v22 = vpop.permute.xlu0 %1490 }
 0x355   :  { %v1493_v19 = vpop.permute.xlu2 %1492 }
 0x356   :  { %v1297_v20 = vpop.permute.xlu1 %1296 }
 0x357   :  { %1341 = vst.msk [vmem:[#allocation4 + $0x20] sm:$0xff] %vm1336_vm1, %v1297_v20 }
 0x358   :  { %1438 = vst.msk [vmem:[#allocation4 + $0x20] sm:$0xff] %vm1433_vm2, %v1394_v1  ;;  %v2036_v23 = vld [vmem:[#allocation4 + $0x18] sm:$0xff]  ;;  %v1756_v1 = vld [vmem:[#allocation3 + $0x120] sm:$0xff] }
 0x359   :  { %1535 = vst.msk [vmem:[#allocation4 + $0x20] sm:$0xff] %vm1530_vm4, %v1491_v22  ;;  %2598 = vmatmul.msk.f32.gmra.mxu1 %vm2058_vm11, %v2036_v23 }
 0x35a   :  { %1986 = vrot.lane.b32.xlu0 %v3799_v24, %s2669_s30 }
 0x35b   :  { %1889 = vrot.lane.b32.xlu2 %v3801_v25, %s2679_s14 }
 0x35c   :  { %1792 = vrot.lane.b32.xlu1 %v3638_v5, %s2666_s21  ;;  %v1783_v4 = vpop.permute.xlu0 %1782 }
 0x35d   :  { %v1785_v26 = vpop.permute.xlu2 %1784 }
 0x35e   :  { %v1588_v45 = vpop.permute.xlu1 %1587 }
 0x35f   :  { %1632 = vst.msk [vmem:[#allocation4 + $0x20] sm:$0xff] %vm1627_vm5, %v1588_v45 }
 0x360   :  { %1729 = vst.msk [vmem:[#allocation4 + $0x20] sm:$0xff] %vm1724_vm6, %v1685_v3  ;;  %v1950_v3 = vld [vmem:[#allocation3 + $0x122] sm:$0xff] }
 0x361   :  { %1827 = vst.msk [vmem:[#allocation4 + $0x20] sm:$0xff] %vm1822_vm7, %v1783_v4  ;;  %v1757_v4 = vld [vmem:[#allocation3 + $0x130] sm:$0xff] }
 0x362   :  { %1405 = vrot.lane.b32.xlu0 %v1944_v34, %s2667_s22 }
 0x363   :  { %1314 = vrot.lane.b32.xlu2 %v3812_v27, %s2676_s2 }
 0x364   :  { %1308 = vrot.lane.b32.xlu1 %v1847_v14, %s2676_s2  ;;  %v1299_v11 = vpop.permute.xlu0 %1298 }
 0x365   :  { %v1301_v51 = vpop.permute.xlu2 %1300  ;;  %1342 = vst.msk [vmem:[#allocation4 + $0x28] sm:$0xff] %vm1336_vm1, %v1299_v11 }
 0x366   :  { %v1880_v28 = vpop.permute.xlu1 %1879  ;;  %1343 = vst.msk [vmem:[#allocation4 + $0x30] sm:$0xff] %vm1336_vm1, %v1301_v51  ;;  %v1951_v51 = vld [vmem:[#allocation3 + $0x132] sm:$0xff] }
 0x367   :  { %1924 = vst.msk [vmem:[#allocation4 + $0x20] sm:$0xff] %vm1919_vm8, %v1880_v28  ;;  %v1854_v28 = vld [vmem:[#allocation3 + $0x131] sm:$0xff] }
 0x368   :  { %2021 = vst.msk [vmem:[#allocation4 + $0x20] sm:$0xff] %vm2016_vm9, %v1977_v18 }
 0x36a   :  { %1508 = vrot.lane.b32.xlu0 %v3651_v7, %s2678_s4 }
 0x36b   :  { %1502 = vrot.lane.b32.xlu2 %v3638_v5, %s2678_s4 }
 0x36c   :  { %1411 = vrot.lane.b32.xlu1 %v3826_v29, %s2667_s22  ;;  %v1590_v30 = vpop.permute.xlu0 %1589 }
 0x36d   :  { %v1592_v31 = vpop.permute.xlu2 %1591 }
 0x36e   :  { %v1396_v58 = vpop.permute.xlu1 %1395 }
 0x36f   :  { %1439 = vst.msk [vmem:[#allocation4 + $0x28] sm:$0xff] %vm1433_vm2, %v1396_v58  ;;  %v2037_v10 = vld [vmem:[#allocation4 + $0x20] sm:$0xff] }
 0x370   :  { %1536 = vst.msk [vmem:[#allocation4 + $0x28] sm:$0xff] %vm1530_vm4, %v1493_v19  ;;  %2599 = vmatmul.msk.f32.gmra.mxu1 %vm2058_vm11, %v2037_v10 }
 0x371   :  { %1633 = vst.msk [vmem:[#allocation4 + $0x28] sm:$0xff] %vm1627_vm5, %v1590_v30 }
 0x372   :  { %1696 = vrot.lane.b32.xlu0 %v3799_v24, %s2677_s3 }
 0x373   :  { %1605 = vrot.lane.b32.xlu2 %v3834_v32, %s2670_s12 }
 0x374   :  { %1599 = vrot.lane.b32.xlu1 %v3801_v25, %s2670_s12  ;;  %v1882_v5 = vpop.permute.xlu0 %1881 }
 0x375   :  { %v1884_v33 = vpop.permute.xlu2 %1883 }
 0x376   :  { %v1687_v38 = vpop.permute.xlu1 %1686 }
 0x377   :  { %1730 = vst.msk [vmem:[#allocation4 + $0x28] sm:$0xff] %vm1724_vm6, %v1687_v38 }
 0x378   :  { %1828 = vst.msk [vmem:[#allocation4 + $0x28] sm:$0xff] %vm1822_vm7, %v1785_v26 }
 0x379   :  { %1925 = vst.msk [vmem:[#allocation4 + $0x28] sm:$0xff] %vm1919_vm8, %v1882_v5 }
 0x37a   :  { %1800 = vrot.lane.b32.xlu0 %v3655_v9, %s2666_s21 }
 0x37b   :  { %1794 = vrot.lane.b32.xlu2 %v3659_v13, %s2666_s21 }
 0x37c   :  { %1702 = vrot.lane.b32.xlu1 %v3849_v0, %s2677_s3  ;;  %v1398_v39 = vpop.permute.xlu0 %1397 }
 0x37d   :  { %v1400_v41 = vpop.permute.xlu2 %1399  ;;  %1440 = vst.msk [vmem:[#allocation4 + $0x30] sm:$0xff] %vm1433_vm2, %v1398_v39 }
 0x37e   :  { %v1979_v8 = vpop.permute.xlu1 %1978 }
 0x37f   :  { %2022 = vst.msk [vmem:[#allocation4 + $0x28] sm:$0xff] %vm2016_vm9, %v1979_v8 }
 0x382   :  { %1988 = vrot.lane.b32.xlu0 %v3855_v42, %s2669_s30 }
 0x383   :  { %1897 = vrot.lane.b32.xlu2 %v3857_v16, %s2679_s14 }
 0x384   :  { %1891 = vrot.lane.b32.xlu1 %v3863_v43, %s2679_s14  ;;  %v1689_v44 = vpop.permute.xlu0 %1688 }
 0x385   :  { %v1691_v46 = vpop.permute.xlu2 %1690 }
 0x386   :  { %v1495_v47 = vpop.permute.xlu1 %1494  ;;  %v2038_v49 = vld [vmem:[#allocation4 + $0x28] sm:$0xff] }
 0x387   :  { %1537 = vst.msk [vmem:[#allocation4 + $0x30] sm:$0xff] %vm1530_vm4, %v1495_v47  ;;  %2600 = vmatmul.msk.f32.gmra.mxu1 %vm2058_vm11, %v2038_v49 }
 0x388   :  { %1634 = vst.msk [vmem:[#allocation4 + $0x30] sm:$0xff] %vm1627_vm5, %v1592_v31 }
 0x389   :  { %1731 = vst.msk [vmem:[#allocation4 + $0x30] sm:$0xff] %vm1724_vm6, %v1689_v44 }
 0x38a   :  { %1316 = vrot.lane.b32.xlu0 %v3834_v32, %s2676_s2 }
 0x38b   :  { %1310 = vrot.lane.b32.xlu2 %v3801_v25, %s2676_s2 }
 0x38c   :  { %1994 = vrot.lane.b32.xlu1 %v1949_v50, %s2669_s30  ;;  %v1981_v52 = vpop.permute.xlu0 %1980 }
 0x38d   :  { %v1983_v53 = vpop.permute.xlu2 %1982 }
 0x38e   :  { %v1787_v54 = vpop.permute.xlu1 %1786 }
 0x38f   :  { %1829 = vst.msk [vmem:[#allocation4 + $0x30] sm:$0xff] %vm1822_vm7, %v1787_v54 }
 0x390   :  { %1926 = vst.msk [vmem:[#allocation4 + $0x30] sm:$0xff] %vm1919_vm8, %v1884_v33 }
 0x391   :  { %2023 = vst.msk [vmem:[#allocation4 + $0x30] sm:$0xff] %vm2016_vm9, %v1981_v52 }
 0x392   :  { %1504 = vrot.lane.b32.xlu0 %v3659_v13, %s2678_s4 }
 0x393   :  { %1413 = vrot.lane.b32.xlu2 %v3849_v0, %s2667_s22 }
 0x394   :  { %1407 = vrot.lane.b32.xlu1 %v3799_v24, %s2667_s22  ;;  %v1497_v55 = vpop.permute.xlu0 %1496 }
 0x395   :  { %v1499_v48 = vpop.permute.xlu2 %1498 }
 0x396   :  { %v1303_v57 = vpop.permute.xlu1 %1302 }
 0x397   :  { %1344 = vst.msk [vmem:[#allocation4 + $0x38] sm:$0xff] %vm1336_vm1, %v1303_v57 }
 0x398   :  { %1441 = vst.msk [vmem:[#allocation4 + $0x38] sm:$0xff] %vm1433_vm2, %v1400_v41  ;;  %v2039_v61 = vld [vmem:[#allocation4 + $0x30] sm:$0xff] }
 0x399   :  { %1538 = vst.msk [vmem:[#allocation4 + $0x38] sm:$0xff] %vm1530_vm4, %v1497_v55  ;;  %2601 = vmatmul.msk.f32.gmra.mxu1 %vm2058_vm11, %v2039_v61 }
 0x39a   :  { %1607 = vrot.lane.b32.xlu0 %v3857_v16, %s2670_s12 }
 0x39b   :  { %1601 = vrot.lane.b32.xlu2 %v3863_v43, %s2670_s12 }
 0x39c   :  { %1510 = vrot.lane.b32.xlu1 %v3655_v9, %s2678_s4  ;;  %v1789_v13 = vpop.permute.xlu0 %1788 }
 0x39d   :  { %v1791_v59 = vpop.permute.xlu2 %1790 }
 0x39e   :  { %v1594_v60 = vpop.permute.xlu1 %1593 }
 0x39f   :  { %1635 = vst.msk [vmem:[#allocation4 + $0x38] sm:$0xff] %vm1627_vm5, %v1594_v60 }
 0x3a0   :  { %1732 = vst.msk [vmem:[#allocation4 + $0x38] sm:$0xff] %vm1724_vm6, %v1691_v46 }
 0x3a1   :  { %1830 = vst.msk [vmem:[#allocation4 + $0x38] sm:$0xff] %vm1822_vm7, %v1789_v13 }
 0x3a2   :  { %1796 = vrot.lane.b32.xlu0 %v3640_v6, %s2666_s21 }
 0x3a3   :  { %1704 = vrot.lane.b32.xlu2 %v1949_v50, %s2677_s3 }
 0x3a4   :  { %1698 = vrot.lane.b32.xlu1 %v3855_v42, %s2677_s3  ;;  %v1305_v62 = vpop.permute.xlu0 %1304 }
 0x3a5   :  { %v1307_v40 = vpop.permute.xlu2 %1306  ;;  %1345 = vst.msk [vmem:[#allocation4 + $0x40] sm:$0xff] %vm1336_vm1, %v1305_v62 }
 0x3a6   :  { %v1886_v9 = vpop.permute.xlu1 %1885  ;;  %1346 = vst.msk [vmem:[#allocation4 + $0x48] sm:$0xff] %vm1336_vm1, %v1307_v40 }
 0x3a7   :  { %1927 = vst.msk [vmem:[#allocation4 + $0x38] sm:$0xff] %vm1919_vm8, %v1886_v9 }
 0x3a8   :  { %2024 = vst.msk [vmem:[#allocation4 + $0x38] sm:$0xff] %vm2016_vm9, %v1983_v53 }
 0x3aa   :  { %1899 = vrot.lane.b32.xlu0 %v1853_v63, %s2679_s14 }
 0x3ab   :  { %1893 = vrot.lane.b32.xlu2 %v3812_v27, %s2679_s14 }
 0x3ac   :  { %1802 = vrot.lane.b32.xlu1 %v1756_v1, %s2666_s21  ;;  %v1596_v2 = vpop.permute.xlu0 %1595 }
 0x3ad   :  { %v1598_v14 = vpop.permute.xlu2 %1597 }
 0x3ae   :  { %v1402_v12 = vpop.permute.xlu1 %1401 }
 0x3af   :  { %1442 = vst.msk [vmem:[#allocation4 + $0x40] sm:$0xff] %vm1433_vm2, %v1402_v12  ;;  %v2040_v15 = vld [vmem:[#allocation4 + $0x38] sm:$0xff] }
 0x3b0   :  { %1539 = vst.msk [vmem:[#allocation4 + $0x40] sm:$0xff] %vm1530_vm4, %v1499_v48  ;;  %2602 = vmatmul.msk.f32.gmra.mxu1 %vm2058_vm11, %v2040_v15 }
 0x3b1   :  { %1636 = vst.msk [vmem:[#allocation4 + $0x40] sm:$0xff] %vm1627_vm5, %v1596_v2 }
 0x3b2   :  { %1312 = vrot.lane.b32.xlu0 %v3863_v43, %s2676_s2 }
 0x3b3   :  { %1996 = vrot.lane.b32.xlu2 %v1950_v3, %s2669_s30 }
 0x3b4   :  { %1990 = vrot.lane.b32.xlu1 %v3826_v29, %s2669_s30  ;;  %v1888_v56 = vpop.permute.xlu0 %1887 }
 0x3b5   :  { %v1890_v17 = vpop.permute.xlu2 %1889 }
 0x3b6   :  { %v1693_v34 = vpop.permute.xlu1 %1692 }
 0x3b7   :  { %1733 = vst.msk [vmem:[#allocation4 + $0x40] sm:$0xff] %vm1724_vm6, %v1693_v34 }
 0x3b8   :  { %1831 = vst.msk [vmem:[#allocation4 + $0x40] sm:$0xff] %vm1822_vm7, %v1791_v59 }
 0x3b9   :  { %1928 = vst.msk [vmem:[#allocation4 + $0x40] sm:$0xff] %vm1919_vm8, %v1888_v56 }
 0x3ba   :  { %1415 = vrot.lane.b32.xlu0 %v1949_v50, %s2667_s22 }
 0x3bb   :  { %1409 = vrot.lane.b32.xlu2 %v3855_v42, %s2667_s22 }
 0x3bc   :  { %1318 = vrot.lane.b32.xlu1 %v3857_v16, %s2676_s2  ;;  %v1404_v35 = vpop.permute.xlu0 %1403 }
 0x3bd   :  { %v1315_v18 = vpop.permute.xlu2 %1314  ;;  %1443 = vst.msk [vmem:[#allocation4 + $0x48] sm:$0xff] %vm1433_vm2, %v1404_v35 }
 0x3be   :  { %v1985_v37 = vpop.permute.xlu1 %1984  ;;  %1350 = vst.msk [vmem:[#allocation4 + $0x68] sm:$0xff] %vm1336_vm1, %v1315_v18 }
 0x3bf   :  { %2025 = vst.msk [vmem:[#allocation4 + $0x40] sm:$0xff] %vm2016_vm9, %v1985_v37  ;;  %v2128_v37 = vpop.f32.mrf.mxu1 }
 0x3c2   :  { %1603 = vrot.lane.b32.xlu0 %v3812_v27, %s2670_s12 }
 0x3c3   :  { %1512 = vrot.lane.b32.xlu2 %v1756_v1, %s2678_s4 }
 0x3c4   :  { %1506 = vrot.lane.b32.xlu1 %v3640_v6, %s2678_s4  ;;  %v1695_v22 = vpop.permute.xlu0 %1694 }
 0x3c5   :  { %v1503_v19 = vpop.permute.xlu2 %1502 }
 0x3c6   :  { %v1501_v20 = vpop.permute.xlu1 %1500  ;;  %v2041_v23 = vld [vmem:[#allocation4 + $0x40] sm:$0xff] }
 0x3c7   :  { %1540 = vst.msk [vmem:[#allocation4 + $0x48] sm:$0xff] %vm1530_vm4, %v1501_v20  ;;  %2603 = vmatmul.msk.f32.gmra.mxu1 %vm2058_vm11, %v2041_v23 }
 0x3c8   :  { %1637 = vst.msk [vmem:[#allocation4 + $0x48] sm:$0xff] %vm1627_vm5, %v1598_v14 }
 0x3c9   :  { %1734 = vst.msk [vmem:[#allocation4 + $0x48] sm:$0xff] %vm1724_vm6, %v1695_v22  ;;  %v2131_v22 = vpop.f32.mrf.mxu1 }
 0x3ca   :  { %1706 = vrot.lane.b32.xlu0 %v1950_v3, %s2677_s3 }
 0x3cb   :  { %1700 = vrot.lane.b32.xlu2 %v3826_v29, %s2677_s3 }
 0x3cc   :  { %1609 = vrot.lane.b32.xlu1 %v1853_v63, %s2670_s12  ;;  %v1987_v6 = vpop.permute.xlu0 %1986 }
 0x3cd   :  { %v1606_v24 = vpop.permute.xlu2 %1605 }
 0x3ce   :  { %v1793_v25 = vpop.permute.xlu1 %1792 }
 0x3cf   :  { %1832 = vst.msk [vmem:[#allocation4 + $0x48] sm:$0xff] %vm1822_vm7, %v1793_v25 }
 0x3d0   :  { %1929 = vst.msk [vmem:[#allocation4 + $0x48] sm:$0xff] %vm1919_vm8, %v1890_v17 }
 0x3d1   :  { %2026 = vst.msk [vmem:[#allocation4 + $0x48] sm:$0xff] %vm2016_vm9, %v1987_v6 }
 0x3d2   :  { %1895 = vrot.lane.b32.xlu0 %v3834_v32, %s2679_s14 }
 0x3d3   :  { %1804 = vrot.lane.b32.xlu2 %v1757_v4, %s2666_s21 }
 0x3d4   :  { %1798 = vrot.lane.b32.xlu1 %v3651_v7, %s2666_s21  ;;  %v1406_v26 = vpop.permute.xlu0 %1405 }
 0x3d5   :  { %v1795_v45 = vpop.permute.xlu2 %1794 }
 0x3d6   :  { %v1309_v27 = vpop.permute.xlu1 %1308 }
 0x3d7   :  { %1347 = vst.msk [vmem:[#allocation4 + $0x50] sm:$0xff] %vm1336_vm1, %v1309_v27 }
 0x3d8   :  { %1444 = vst.msk [vmem:[#allocation4 + $0x50] sm:$0xff] %vm1433_vm2, %v1406_v26  ;;  %v2042_v11 = vld [vmem:[#allocation4 + $0x48] sm:$0xff]  ;;  %v4014_v26 = vld [vmem:[%s4250_s6] ss:$0 sm:$0xff] }
 0x3d9   :  { %1541 = vst.msk [vmem:[#allocation4 + $0x50] sm:$0xff] %vm1530_vm4, %v1503_v19  ;;  %2604 = vmatmul.msk.f32.gmra.mxu1 %vm2058_vm11, %v2042_v11  ;;  %v2134_v19 = vpop.f32.mrf.mxu1  ;;  %v4020_v11 = vadd.f32 %v4014_v26, %v2128_v37 }
 0x3da   :  { %1998 = vrot.lane.b32.xlu0 %v1951_v51, %s2669_s30  ;;  %v4023_v51 = vadd.f32 %v4014_v26, %v2134_v19 }
 0x3db   :  { %1992 = vrot.lane.b32.xlu2 %v3849_v0, %s2669_s30 }
 0x3dc   :  { %1901 = vrot.lane.b32.xlu1 %v1854_v28, %s2679_s14  ;;  %v1509_v7 = vpop.permute.xlu0 %1508 }
 0x3dd   :  { %v1898_v29 = vpop.permute.xlu2 %1897 }
 0x3de   :  { %v1412_v30 = vpop.permute.xlu1 %1411 }
 0x3df   :  { %1447 = vst.msk [vmem:[#allocation4 + $0x68] sm:$0xff] %vm1433_vm2, %v1412_v30 }
 0x3e0   :  { %1544 = vst.msk [vmem:[#allocation4 + $0x68] sm:$0xff] %vm1530_vm4, %v1509_v7 }
 0x3e1   :  { %1641 = vst.msk [vmem:[#allocation4 + $0x68] sm:$0xff] %vm1627_vm5, %v1606_v24  ;;  %v2137_v20 = vpop.f32.mrf.mxu1 }
 0x3e2   :  { %v4028_v7 = vadd.f32 %v4014_v26, %v2137_v20 }
 0x3e4   :  { %v1697_v31 = vpop.permute.xlu0 %1696 }
 0x3e5   :  { %v1311_v58 = vpop.permute.xlu2 %1310 }
 0x3e6   :  { %1348 = vst.msk [vmem:[#allocation4 + $0x58] sm:$0xff] %vm1336_vm1, %v1311_v58  ;;  %v1600_v10 = vpop.permute.xlu1 %1599 }
 0x3e7   :  { %1638 = vst.msk [vmem:[#allocation4 + $0x50] sm:$0xff] %vm1627_vm5, %v1600_v10  ;;  %v2178_v10 = vsel %vm994_vm10, %v4020_v11, 0.0 }
 0x3e8   :  { %1735 = vst.msk [vmem:[#allocation4 + $0x50] sm:$0xff] %vm1724_vm6, %v1697_v31  ;;  %v2218_v31 = vmul.f32 %v4023_v51, %v4023_v51 }
 0x3e9   :  { %1833 = vst.msk [vmem:[#allocation4 + $0x50] sm:$0xff] %vm1822_vm7, %v1795_v45  ;;  %v4017_v45 = vadd.f32 %v4014_v26, %v2131_v22 }
 0x3eb   :  { %v2217_v28 = vmul.f32 %v4017_v45, %v4017_v45  ;;  %v2179_v30 = vsel %vm994_vm10, %v4017_v45, 0.0 }
 0x3ec   :  { %v1801_v32 = vpop.permute.xlu0 %1800 }
 0x3ed   :  { %v1414_v5 = vpop.permute.xlu2 %1413  ;;  %v2140_v23 = vpop.f32.mrf.mxu1 }
 0x3ee   :  { %v1703_v33 = vpop.permute.xlu1 %1702  ;;  %v4037_v58 = vadd.f32 %v4014_v26, %v2140_v23 }
 0x3ef   :  { %1738 = vst.msk [vmem:[#allocation4 + $0x68] sm:$0xff] %vm1724_vm6, %v1703_v33  ;;  %v2219_v33 = vmul.f32 %v4028_v7, %v4028_v7 }
 0x3f0   :  { %1836 = vst.msk [vmem:[#allocation4 + $0x68] sm:$0xff] %vm1822_vm7, %v1801_v32  ;;  %v2233_v32 = vsel %vm994_vm10, %v2217_v28, 0.0 }
 0x3f1   :  { %1933 = vst.msk [vmem:[#allocation4 + $0x68] sm:$0xff] %vm1919_vm8, %v1898_v29  ;;  %v2216_v29 = vmul.f32 %v4020_v11, %v4020_v11 }
 0x3f4   :  { %v1989_v38 = vpop.permute.xlu0 %1988 }
 0x3f5   :  { %v1602_v39 = vpop.permute.xlu2 %1601 }
 0x3f6   :  { %v1892_v0 = vpop.permute.xlu1 %1891 }
 0x3f7   :  { %1930 = vst.msk [vmem:[#allocation4 + $0x50] sm:$0xff] %vm1919_vm8, %v1892_v0 }
 0x3f8   :  { %2027 = vst.msk [vmem:[#allocation4 + $0x50] sm:$0xff] %vm2016_vm9, %v1989_v38 }
 0x3fc   :  { %v1317_v41 = vpop.permute.xlu0 %1316 }
 0x3fd   :  { %1351 = vst.msk [vmem:[#allocation4 + $0x70] sm:$0xff] %vm1336_vm1, %v1317_v41  ;;  %v1705_v16 = vpop.permute.xlu2 %1704  ;;  %v2180_v41 = vadd.f32 %v2179_v30, %v2178_v10 }
 0x3fe   :  { %v1995_v8 = vpop.permute.xlu1 %1994  ;;  %1448 = vst.msk [vmem:[#allocation4 + $0x70] sm:$0xff] %vm1433_vm2, %v1414_v5  ;;  %v2181_v5 = vsel %vm994_vm10, %v4023_v51, 0.0 }
 0x3ff   :  { %v2043_v42 = vld [vmem:[#allocation4 + $0x50] sm:$0xff]  ;;  %2030 = vst.msk [vmem:[#allocation4 + $0x68] sm:$0xff] %vm2016_vm9, %v1995_v8  ;;  %v2235_v8 = vsel %vm994_vm10, %v2218_v31, 0.0 }
 0x400   :  { %2605 = vmatmul.msk.f32.gmra.mxu1 %vm2058_vm11, %v2043_v42  ;;  %v2183_v42 = vsel %vm994_vm10, %v4028_v7, 0.0 }
 0x404   :  { %v1505_v43 = vpop.permute.xlu0 %1504  ;;  %v2143_v6 = vpop.f32.mrf.mxu1 }
 0x405   :  { %v1894_v46 = vpop.permute.xlu2 %1893  ;;  %v4047_v38 = vadd.f32 %v4014_v26, %v2143_v6 }
 0x406   :  { %v1408_v36 = vpop.permute.xlu1 %1407  ;;  %v2046_v44 = vld [vmem:[#allocation4 + $0x68] sm:$0xff] }
 0x407   :  { %1445 = vst.msk [vmem:[#allocation4 + $0x58] sm:$0xff] %vm1433_vm2, %v1408_v36  ;;  %2608 = vmatmul.msk.f32.vlgmr.msrb.gmra.mxu3 %vm2058_vm11, %v2046_v44  ;;  %v2182_v44 = vadd.f32 %v2181_v5, %v2180_v41 }
 0x408   :  { %1542 = vst.msk [vmem:[#allocation4 + $0x58] sm:$0xff] %vm1530_vm4, %v1505_v43 }
 0x409   :  { %1639 = vst.msk [vmem:[#allocation4 + $0x58] sm:$0xff] %vm1627_vm5, %v1602_v39  ;;  %v2232_v39 = vsel %vm994_vm10, %v2216_v29, 0.0 }
 0x40a   :  { %v2234_v36 = vadd.f32 %v2233_v32, %v2232_v39 }
 0x40c   :  { %v1608_v47 = vpop.permute.xlu0 %1607 }
 0x40d   :  { %v1997_v52 = vpop.permute.xlu2 %1996 }
 0x40e   :  { %v1511_v49 = vpop.permute.xlu1 %1510 }
 0x40f   :  { %1545 = vst.msk [vmem:[#allocation4 + $0x70] sm:$0xff] %vm1530_vm4, %v1511_v49  ;;  %v2221_v49 = vmul.f32 %v4047_v38, %v4047_v38 }
 0x410   :  { %1642 = vst.msk [vmem:[#allocation4 + $0x70] sm:$0xff] %vm1627_vm5, %v1608_v47  ;;  %v2185_v47 = vsel %vm994_vm10, %v4037_v58, 0.0 }
 0x411   :  { %1739 = vst.msk [vmem:[#allocation4 + $0x70] sm:$0xff] %vm1724_vm6, %v1705_v16  ;;  %v2220_v16 = vmul.f32 %v4037_v58, %v4037_v58 }
 0x414   :  { %v1797_v50 = vpop.permute.xlu0 %1796 }
 0x415   :  { %v1410_v48 = vpop.permute.xlu2 %1409 }
 0x416   :  { %v1699_v53 = vpop.permute.xlu1 %1698  ;;  %v2146_v24 = vpop.f32.mrf.mxu1 }
 0x417   :  { %1736 = vst.msk [vmem:[#allocation4 + $0x58] sm:$0xff] %vm1724_vm6, %v1699_v53  ;;  %v4056_v43 = vadd.f32 %v4014_v26, %v2146_v24  ;;  %v2184_v53 = vadd.f32 %v2183_v42, %v2182_v44 }
 0x418   :  { %1834 = vst.msk [vmem:[#allocation4 + $0x58] sm:$0xff] %vm1822_vm7, %v1797_v50 }
 0x419   :  { %1931 = vst.msk [vmem:[#allocation4 + $0x58] sm:$0xff] %vm1919_vm8, %v1894_v46  ;;  %v2237_v46 = vsel %vm994_vm10, %v2219_v33, 0.0 }
 0x41c   :  { %v1900_v54 = vpop.permute.xlu0 %1899 }
 0x41d   :  { %v1513_v59 = vpop.permute.xlu2 %1512 }
 0x41e   :  { %v1803_v55 = vpop.permute.xlu1 %1802 }
 0x41f   :  { %1837 = vst.msk [vmem:[#allocation4 + $0x70] sm:$0xff] %vm1822_vm7, %v1803_v55  ;;  %v2187_v55 = vsel %vm994_vm10, %v4047_v38, 0.0 }
 0x420   :  { %1934 = vst.msk [vmem:[#allocation4 + $0x70] sm:$0xff] %vm1919_vm8, %v1900_v54  ;;  %v2239_v54 = vsel %vm994_vm10, %v2220_v16, 0.0 }
 0x421   :  { %2031 = vst.msk [vmem:[#allocation4 + $0x70] sm:$0xff] %vm2016_vm9, %v1997_v52  ;;  %v2236_v52 = vadd.f32 %v2235_v8, %v2234_v36 }
 0x424   :  { %v1313_v57 = vpop.permute.xlu0 %1312 }
 0x425   :  { %1349 = vst.msk [vmem:[#allocation4 + $0x60] sm:$0xff] %vm1336_vm1, %v1313_v57  ;;  %v1701_v9 = vpop.permute.xlu2 %1700 }
 0x426   :  { %v1991_v61 = vpop.permute.xlu1 %1990  ;;  %1446 = vst.msk [vmem:[#allocation4 + $0x60] sm:$0xff] %vm1433_vm2, %v1410_v48  ;;  %v2222_v48 = vmul.f32 %v4056_v43, %v4056_v43 }
 0x427   :  { %2028 = vst.msk [vmem:[#allocation4 + $0x58] sm:$0xff] %vm2016_vm9, %v1991_v61  ;;  %v2238_v61 = vadd.f32 %v2237_v46, %v2236_v52 }
 0x428   :  { %v2047_v13 = vld [vmem:[#allocation4 + $0x70] sm:$0xff] }
 0x429   :  { %2609 = vmatmul.msk.f32.gmra.mxu3 %vm2058_vm11, %v2047_v13  ;;  %v2186_v13 = vadd.f32 %v2185_v47, %v2184_v53 }
 0x42c   :  { %v1416_v60 = vpop.permute.xlu0 %1415 }
 0x42d   :  { %v1805_v14 = vpop.permute.xlu2 %1804  ;;  %v2149_v25 = vpop.f32.mrf.mxu1 }
 0x42e   :  { %v1319_v62 = vpop.permute.xlu1 %1318  ;;  %v2044_v40 = vld [vmem:[#allocation4 + $0x58] sm:$0xff]  ;;  %v4064_v50 = vadd.f32 %v4014_v26, %v2149_v25 }
 0x42f   :  { %1352 = vst.msk [vmem:[#allocation4 + $0x78] sm:$0xff] %vm1336_vm1, %v1319_v62  ;;  %2606 = vmatmul.msk.f32.gmra.mxu1 %vm2058_vm11, %v2044_v40 }
 0x430   :  { %1449 = vst.msk [vmem:[#allocation4 + $0x78] sm:$0xff] %vm1433_vm2, %v1416_v60  ;;  %v2189_v60 = vsel %vm994_vm10, %v4056_v43, 0.0  ;;  %v2223_v62 = vmul.f32 %v4064_v50, %v4064_v50 }
 0x431   :  { %1546 = vst.msk [vmem:[#allocation4 + $0x78] sm:$0xff] %vm1530_vm4, %v1513_v59  ;;  %v2241_v59 = vsel %vm994_vm10, %v2221_v49, 0.0 }
 0x434   :  { %v1604_v63 = vpop.permute.xlu0 %1603 }
 0x435   :  { %v1993_v56 = vpop.permute.xlu2 %1992 }
 0x436   :  { %v1507_v1 = vpop.permute.xlu1 %1506 }
 0x437   :  { %1543 = vst.msk [vmem:[#allocation4 + $0x60] sm:$0xff] %vm1530_vm4, %v1507_v1  ;;  %v2188_v1 = vadd.f32 %v2187_v55, %v2186_v13 }
 0x438   :  { %1640 = vst.msk [vmem:[#allocation4 + $0x60] sm:$0xff] %vm1627_vm5, %v1604_v63  ;;  %v2240_v63 = vadd.f32 %v2239_v54, %v2238_v61 }
 0x439   :  { %1737 = vst.msk [vmem:[#allocation4 + $0x60] sm:$0xff] %vm1724_vm6, %v1701_v9 }
 0x43c   :  { %v1707_v2 = vpop.permute.xlu0 %1706 }
 0x43e   :  { %v1610_v12 = vpop.permute.xlu1 %1609 }
 0x43f   :  { %1643 = vst.msk [vmem:[#allocation4 + $0x78] sm:$0xff] %vm1627_vm5, %v1610_v12 }
 0x440   :  { %1740 = vst.msk [vmem:[#allocation4 + $0x78] sm:$0xff] %vm1724_vm6, %v1707_v2  ;;  %v2243_v2 = vsel %vm994_vm10, %v2222_v48, 0.0 }
 0x441   :  { %1838 = vst.msk [vmem:[#allocation4 + $0x78] sm:$0xff] %vm1822_vm7, %v1805_v14  ;;  %v2191_v14 = vsel %vm994_vm10, %v4064_v50, 0.0 }
 0x444   :  { %v1896_v15 = vpop.permute.xlu0 %1895  ;;  %v2152_v4 = vpop.f32.mrf.mxu1 }
 0x445   :  { %v4072_v57 = vadd.f32 %v4014_v26, %v2152_v4 }
 0x446   :  { %v1799_v3 = vpop.permute.xlu1 %1798 }
 0x447   :  { %1835 = vst.msk [vmem:[#allocation4 + $0x60] sm:$0xff] %vm1822_vm7, %v1799_v3  ;;  %v2224_v12 = vmul.f32 %v4072_v57, %v4072_v57  ;;  %v2242_v3 = vadd.f32 %v2241_v59, %v2240_v63 }
 0x448   :  { %1932 = vst.msk [vmem:[#allocation4 + $0x60] sm:$0xff] %vm1919_vm8, %v1896_v15 }
 0x449   :  { %2029 = vst.msk [vmem:[#allocation4 + $0x60] sm:$0xff] %vm2016_vm9, %v1993_v56  ;;  %v2190_v56 = vadd.f32 %v2189_v60, %v2188_v1  ;;  %v2244_v37 = vadd.f32 %v2243_v2, %v2242_v3  ;;  %v2247_v20 = vsel %vm994_vm10, %v2224_v12, 0.0 }
 0x44b   :  { %v2192_v22 = vadd.f32 %v2191_v14, %v2190_v56 }
 0x44c   :  { %v1999_v17 = vpop.permute.xlu0 %1998 }
 0x44e   :  { %v1902_v34 = vpop.permute.xlu1 %1901 }
 0x44f   :  { %1935 = vst.msk [vmem:[#allocation4 + $0x78] sm:$0xff] %vm1919_vm8, %v1902_v34  ;;  %v2193_v34 = vsel %vm994_vm10, %v4072_v57, 0.0 }
 0x450   :  { %2032 = vst.msk [vmem:[#allocation4 + $0x78] sm:$0xff] %vm2016_vm9, %v1999_v17  ;;  %v2045_v35 = vld [vmem:[#allocation4 + $0x60] sm:$0xff]  ;;  %v2245_v17 = vsel %vm994_vm10, %v2223_v62, 0.0  ;;  %v2194_v25 = vadd.f32 %v2193_v34, %v2192_v22 }
 0x451   :  { %2607 = vmatmul.msk.f32.gmra.mxu1 %vm2058_vm11, %v2045_v35  ;;  %v2246_v24 = vadd.f32 %v2245_v17, %v2244_v37 }
 0x453   :  { %v2248_v30 = vadd.f32 %v2247_v20, %v2246_v24 }
 0x456   :  { %v2155_v27 = vpop.f32.mrf.mxu1 }
 0x457   :  { %v2048_v18 = vld [vmem:[#allocation4 + $0x78] sm:$0xff]  ;;  %v4080_v40 = vadd.f32 %v4014_v26, %v2155_v27 }
 0x458   :  { %2610 = vmatmul.msk.f32.gmra.mxu3 %vm2058_vm11, %v2048_v18 }
 0x459   :  { %v2225_v35 = vmul.f32 %v4080_v40, %v4080_v40  ;;  %v2195_v23 = vsel %vm994_vm10, %v4080_v40, 0.0 }
 0x45a   :  { %v2196_v31 = vadd.f32 %v2195_v23, %v2194_v25 }
 0x45b   :  { %v2249_v4 = vsel %vm994_vm10, %v2225_v35, 0.0 }
 0x45c   :  { %v2250_v33 = vadd.f32 %v2249_v4, %v2248_v30 }
 0x47d   :  { %v2158_v0 = vpop.f32.mrf.mxu1 }
 0x47e   :  { %v4088_v15 = vadd.f32 %v4014_v26, %v2158_v0 }
 0x480   :  { %v2226_v6 = vmul.f32 %v4088_v15, %v4088_v15  ;;  %v2197_v27 = vsel %vm994_vm10, %v4088_v15, 0.0 }
 0x481   :  { %v2198_v0 = vadd.f32 %v2197_v27, %v2196_v31 }
 0x482   :  { %v2251_v32 = vsel %vm994_vm10, %v2226_v6, 0.0 }
 0x483   :  { %v2252_v16 = vadd.f32 %v2251_v32, %v2250_v33 }
 0x48a   :  { %v2167_v19 = vpop.f32.mrf.mxu3 }
 0x48b   :  { %v4117_v41 = vadd.f32 %v4014_v26, %v2167_v19 }
 0x48d   :  { %v2229_v52 = vmul.f32 %v4117_v41, %v4117_v41  ;;  %v2203_v55 = vsel %vm994_vm10, %v4117_v41, 0.0 }
 0x48f   :  { %v2257_v61 = vsel %vm994_vm10, %v2229_v52, 0.0 }
 0x4ac   :  { %v2161_v9 = vpop.f32.mrf.mxu1  ;;  %v2170_v44 = vpop.f32.mrf.mxu3 }
 0x4ad   :  { %v4096_v18 = vadd.f32 %v4014_v26, %v2161_v9  ;;  %v2171_v53 = vadd.f32 %v4014_v26, %v2170_v44 }
 0x4af   :  { %v2227_v28 = vmul.f32 %v4096_v18, %v4096_v18  ;;  %v2199_v5 = vsel %vm994_vm10, %v4096_v18, 0.0  ;;  %v2230_v13 = vmul.f32 %v2171_v53, %v2171_v53  ;;  %v2205_v62 = vsel %vm994_vm10, %v2171_v53, 0.0 }
 0x4b0   :  { %v2200_v36 = vadd.f32 %v2199_v5, %v2198_v0 }
 0x4b1   :  { %v2253_v8 = vsel %vm994_vm10, %v2227_v28, 0.0  ;;  %v2259_v1 = vsel %vm994_vm10, %v2230_v13, 0.0  ;;  %v2340_v28 = vld [vmem:[%s4251_s9] sm:$0xf] }
 0x4b2   :  { %v2254_v47 = vadd.f32 %v2253_v8, %v2252_v16  ;;  %2611 = vmatpush.msk.msra.mxu2 %vm2107_vm3, %v2340_v28  ;;  %2642 = vmatpush.msk.msra.mxu3 %vm2107_vm3, %v2340_v28 }
 0x4ce   :  { %v2164_v29 = vpop.f32.mrf.mxu1 }
 0x4cf   :  { %v4109_v10 = vadd.f32 %v4014_v26, %v2164_v29 }
 0x4d1   :  { %v2228_v39 = vmul.f32 %v4109_v10, %v4109_v10  ;;  %v2201_v42 = vsel %vm994_vm10, %v4109_v10, 0.0 }
 0x4d2   :  { %v2202_v49 = vadd.f32 %v2201_v42, %v2200_v36  ;;  %v2176_v42 = vld [vmem:[%s4253_s7] sm:$0x1] }
 0x4d3   :  { %v2255_v46 = vsel %vm994_vm10, %v2228_v39, 0.0 }
 0x4d4   :  { %v2256_v54 = vadd.f32 %v2255_v46, %v2254_v47  ;;  %v2204_v48 = vadd.f32 %v2203_v55, %v2202_v49 }
 0x4d6   :  { %v2258_v59 = vadd.f32 %v2257_v61, %v2256_v54  ;;  %v2206_v63 = vadd.f32 %v2205_v62, %v2204_v48 }
 0x4d8   :  { %v2260_v3 = vadd.f32 %v2259_v1, %v2258_v59 }
 0x4db   :  { %v2173_v60 = vpop.f32.mrf.mxu3 }
 0x4dc   :  { %v2174_v9 = vadd.f32 %v4014_v26, %v2173_v60 }
 0x4de   :  { %v2207_v2 = vsel %vm994_vm10, %v2174_v9, 0.0  ;;  %v2231_v14 = vmul.f32 %v2174_v9, %v2174_v9 }
 0x4df   :  { %v2208_v12 = vadd.f32 %v2207_v2, %v2206_v63 }
 0x4e0   :  { %v2261_v56 = vsel %vm994_vm10, %v2231_v14, 0.0 }
 0x4e1   :  { %v2209_v17 = vrot.slane %v2208_v12, 4  ;;  %v2262_v34 = vadd.f32 %v2261_v56, %v2260_v3 }
 0x4e3   :  { %v2210_v35 = vadd.f32 %v2209_v17, %v2208_v12  ;;  %v2263_v37 = vrot.slane %v2262_v34, 4 }
 0x4e5   :  { %v2211_v22 = vrot.slane %v2210_v35, 2  ;;  %v2264_v19 = vadd.f32 %v2263_v37, %v2262_v34 }
 0x4e7   :  { %v2212_v20 = vadd.f32 %v2211_v22, %v2210_v35  ;;  %v2265_v23 = vrot.slane %v2264_v19, 2 }
 0x4e9   :  { %v2213_v6 = vrot.slane %v2212_v20, 1  ;;  %v2266_v26 = vadd.f32 %v2265_v23, %v2264_v19 }
 0x4eb   :  { %v2214_v24 = vadd.f32 %v2213_v6, %v2212_v20  ;;  %v2267_v25 = vrot.slane %v2266_v26, 1 }
 0x4ed   :  { %v2215_v4 = vmul.f32 %v2214_v24, %v3453_v21  ;;  %v2268_v27 = vadd.f32 %v2267_v25, %v2266_v26 }
 0x4ef   :  { %v2269_v29 = vmul.f32 %v2268_v27, %v3453_v21  ;;  %v2270_v30 = vmul.f32 %v2215_v4, %v2215_v4  ;;  %v2177_v21 = vld [vmem:[%s4254_s8] sm:$0x1] }
 0x4f1   :  { %v2271_v31 = vsub.f32 %v2269_v29, %v2270_v30 }
 0x4f3   :  { %v2272_v32 = vadd.f32 1e-05, %v2271_v31  ;;  %v2659_v31 = vld [vmem:[%s4252_s10] ss:$0 sm:$0xff] }
 0x4f5   :  { %2664 = vrsqrt.f32 %v2272_v32  ;;  %vm2279_vm13 = vweird.f32 %v2272_v32 }
 0x4fb   :  { %v2665_v5 = vpop.eup %2664 }
 0x4fc   :  { %v2274_v33 = vmul.f32 %v2665_v5, %v2272_v32  ;;  %vm2280_vm12 = vweird.f32 %v2665_v5 }
 0x4fd   :  { %vm2281_vm14 = vmor %vm2279_vm13, %vm2280_vm12 }
 0x4fe   :  { %v2275_v0 = vmul.f32 %v2665_v5, %v2274_v33 }
 0x500   :  { %v2276_v39 = vmul.f32 0.5, %v2275_v0 }
 0x502   :  { %v2277_v8 = vsub.f32 1.5, %v2276_v39 }
 0x504   :  { %v2278_v16 = vmul.f32 %v2665_v5, %v2277_v8 }
 0x506   :  { %v2282_v36 = vsel %vm2281_vm14, %v2665_v5, %v2278_v16 }
 0x507   :  { %v2283_v44 = vmul.f32 %v2282_v36, %v2176_v42 }
 0x509   :  { %v2284_v46 = vmul.f32 %v2283_v44, %v2215_v4  ;;  %v2287_v47 = vperm.slane %v2283_v44, 0 }
 0x50b   :  { %v2285_v49 = vsub.f32 %v2177_v21, %v2284_v46  ;;  %v2289_v54 = vmul.f32 %v2287_v47, %v4020_v11  ;;  %v2303_v55 = vmul.f32 %v2287_v47, %v2171_v53  ;;  %v2297_v60 = vmul.f32 %v2287_v47, %v4072_v57 }
 0x50c   :  { %v2298_v62 = vmul.f32 %v2287_v47, %v4080_v40  ;;  %v2299_v63 = vmul.f32 %v2287_v47, %v4088_v15  ;;  %v2300_v1 = vmul.f32 %v2287_v47, %v4096_v18  ;;  %v2304_v2 = vmul.f32 %v2287_v47, %v2174_v9 }
 0x50d   :  { %v2306_v52 = vperm.slane %v2285_v49, 0  ;;  %v2290_v11 = vmul.f32 %v2287_v47, %v4017_v45  ;;  %v2301_v56 = vmul.f32 %v2287_v47, %v4109_v10  ;;  %v2302_v40 = vmul.f32 %v2287_v47, %v4117_v41 }
 0x50e   :  { %v2291_v45 = vmul.f32 %v2287_v47, %v4023_v51  ;;  %v2292_v10 = vmul.f32 %v2287_v47, %v4028_v7  ;;  %v2293_v41 = vmul.f32 %v2287_v47, %v4037_v58  ;;  %v2294_v6 = vmul.f32 %v2287_v47, %v4047_v38 }
 0x50f   :  { %v2308_v48 = vadd.f32 %v2306_v52, %v2289_v54  ;;  %v2322_v61 = vadd.f32 %v2306_v52, %v2303_v55  ;;  %v2316_v53 = vadd.f32 %v2306_v52, %v2297_v60  ;;  %v2317_v14 = vadd.f32 %v2306_v52, %v2298_v62 }
 0x510   :  { %v2318_v12 = vadd.f32 %v2306_v52, %v2299_v63  ;;  %v2319_v3 = vadd.f32 %v2306_v52, %v2300_v1  ;;  %v2309_v57 = vadd.f32 %v2306_v52, %v2290_v11  ;;  %v2323_v17 = vadd.f32 %v2306_v52, %v2304_v2 }
 0x511   :  { %v2324_v13 = vmax.f32 %v2308_v48, 0.0  ;;  %v2338_v59 = vmax.f32 %v2322_v61, 0.0  ;;  %v2320_v15 = vadd.f32 %v2306_v52, %v2301_v56  ;;  %v2321_v34 = vadd.f32 %v2306_v52, %v2302_v40 }
 0x512   :  { %v2325_v18 = vmax.f32 %v2309_v57, 0.0  ;;  %v2339_v9 = vmax.f32 %v2323_v17, 0.0  ;;  %v2310_v35 = vadd.f32 %v2306_v52, %v2291_v45  ;;  %v2311_v22 = vadd.f32 %v2306_v52, %v2292_v10 }
 0x513   :  { %2612 = vmatmul.msk.f32.vlgmr.msra.gmra.mxu2 %vm994_vm10, %v2324_v13  ;;  %2626 = vmatmul.msk.f32.vlgmr.msra.gmra.mxu3 %vm994_vm10, %v2338_v59  ;;  %v2312_v20 = vadd.f32 %v2306_v52, %v2293_v41  ;;  %v2313_v26 = vadd.f32 %v2306_v52, %v2294_v6  ;;  %v2295_v24 = vmul.f32 %v2287_v47, %v4056_v43  ;;  %v2332_v28 = vmax.f32 %v2316_v53, 0.0 }
 0x514   :  { %v2326_v37 = vmax.f32 %v2310_v35, 0.0  ;;  %v2327_v19 = vmax.f32 %v2311_v22, 0.0  ;;  %v2296_v4 = vmul.f32 %v2287_v47, %v4064_v50  ;;  %v2333_v38 = vmax.f32 %v2317_v14, 0.0 }
 0x515   :  { %v2328_v23 = vmax.f32 %v2312_v20, 0.0  ;;  %v2329_v51 = vmax.f32 %v2313_v26, 0.0  ;;  %v2314_v25 = vadd.f32 %v2306_v52, %v2295_v24  ;;  %v2334_v29 = vmax.f32 %v2318_v12, 0.0 }
 0x516   :  { %v2315_v27 = vadd.f32 %v2306_v52, %v2296_v4  ;;  %v2335_v43 = vmax.f32 %v2319_v3, 0.0  ;;  %v2336_v30 = vmax.f32 %v2320_v15, 0.0  ;;  %v2337_v50 = vmax.f32 %v2321_v34, 0.0 }
 0x517   :  { %v2330_v7 = vmax.f32 %v2314_v25, 0.0 }
 0x518   :  { %v2331_v58 = vmax.f32 %v2315_v27, 0.0 }
 0x51b   :  { %2613 = vmatmul.msk.f32.gmra.mxu2 %vm994_vm10, %v2325_v18  ;;  %2627 = vmatmul.msk.f32.gmra.mxu3 %vm994_vm10, %v2339_v9 }
 0x523   :  { %2614 = vmatmul.msk.f32.gmra.mxu2 %vm994_vm10, %v2326_v37 }
 0x52b   :  { %2615 = vmatmul.msk.f32.gmra.mxu2 %vm994_vm10, %v2327_v19 }
 0x533   :  { %2616 = vmatmul.msk.f32.gmra.mxu2 %vm994_vm10, %v2328_v23 }
 0x53b   :  { %2617 = vmatmul.msk.f32.gmra.mxu2 %vm994_vm10, %v2329_v51 }
 0x543   :  { %2618 = vmatmul.msk.f32.gmra.mxu2 %vm994_vm10, %v2330_v7 }
 0x54b   :  { %2619 = vmatmul.msk.f32.gmra.mxu2 %vm994_vm10, %v2331_v58 }
 0x553   :  { %2620 = vmatmul.msk.f32.gmra.mxu2 %vm994_vm10, %v2332_v28 }
 0x55b   :  { %2621 = vmatmul.msk.f32.gmra.mxu2 %vm994_vm10, %v2333_v38 }
 0x563   :  { %2622 = vmatmul.msk.f32.gmra.mxu2 %vm994_vm10, %v2334_v29 }
 0x56b   :  { %2623 = vmatmul.msk.f32.gmra.mxu2 %vm994_vm10, %v2335_v43 }
 0x573   :  { %2624 = vmatmul.msk.f32.gmra.mxu2 %vm994_vm10, %v2336_v30 }
 0x57b   :  { %2625 = vmatmul.msk.f32.gmra.mxu2 %vm994_vm10, %v2337_v50 }
 0x596   :  { %v2413_v32 = vpop.f32.mrf.mxu2  ;;  %v2455_v5 = vpop.f32.mrf.mxu3 }
 0x597   :  { %v2414_v33 = vadd.f32 %v2659_v31, %v2413_v32  ;;  %v2456_v0 = vadd.f32 %v2659_v31, %v2455_v5 }
 0x599   :  { %2462 = vst.msk [vmem:[%s4255_s11] sm:$0xff] %vm2461_vm15, %v2414_v33 }
 0x59a   :  { %2476 = vst.msk [vmem:[%s4255_s11 + $0x70] sm:$0xff] %vm2461_vm15, %v2456_v0 }
 0x59e   :  { %v2416_v39 = vpop.f32.mrf.mxu2  ;;  %v2458_v8 = vpop.f32.mrf.mxu3 }
 0x59f   :  { %v2417_v42 = vadd.f32 %v2659_v31, %v2416_v39  ;;  %v2459_v16 = vadd.f32 %v2659_v31, %v2458_v8 }
 0x5a1   :  { %2463 = vst.msk [vmem:[%s4255_s11 + $0x8] sm:$0xff] %vm2461_vm15, %v2417_v42 }
 0x5a2   :  { %2477 = vst.msk [vmem:[%s4255_s11 + $0x78] sm:$0xff] %vm2461_vm15, %v2459_v16 }
 0x5a6   :  { %v2419_v36 = vpop.f32.mrf.mxu2 }
 0x5a7   :  { %v2420_v44 = vadd.f32 %v2659_v31, %v2419_v36 }
 0x5a9   :  { %2464 = vst.msk [vmem:[%s4255_s11 + $0x10] sm:$0xff] %vm2461_vm15, %v2420_v44 }
 0x5ae   :  { %v2422_v21 = vpop.f32.mrf.mxu2 }
 0x5af   :  { %v2423_v46 = vadd.f32 %v2659_v31, %v2422_v21 }
 0x5b1   :  { %2465 = vst.msk [vmem:[%s4255_s11 + $0x18] sm:$0xff] %vm2461_vm15, %v2423_v46 }
 0x5b6   :  { %v2425_v47 = vpop.f32.mrf.mxu2 }
 0x5b7   :  { %v2426_v49 = vadd.f32 %v2659_v31, %v2425_v47 }
 0x5b9   :  { %2466 = vst.msk [vmem:[%s4255_s11 + $0x20] sm:$0xff] %vm2461_vm15, %v2426_v49 }
 0x5be   :  { %v2428_v52 = vpop.f32.mrf.mxu2 }
 0x5bf   :  { %v2429_v54 = vadd.f32 %v2659_v31, %v2428_v52 }
 0x5c1   :  { %2467 = vst.msk [vmem:[%s4255_s11 + $0x28] sm:$0xff] %vm2461_vm15, %v2429_v54 }
 0x5c6   :  { %v2431_v55 = vpop.f32.mrf.mxu2 }
 0x5c7   :  { %v2432_v48 = vadd.f32 %v2659_v31, %v2431_v55 }
 0x5c9   :  { %2468 = vst.msk [vmem:[%s4255_s11 + $0x30] sm:$0xff] %vm2461_vm15, %v2432_v48 }
 0x5ce   :  { %v2434_v61 = vpop.f32.mrf.mxu2 }
 0x5cf   :  { %v2435_v13 = vadd.f32 %v2659_v31, %v2434_v61 }
 0x5d1   :  { %2469 = vst.msk [vmem:[%s4255_s11 + $0x38] sm:$0xff] %vm2461_vm15, %v2435_v13 }
 0x5d6   :  { %v2437_v59 = vpop.f32.mrf.mxu2 }
 0x5d7   :  { %v2438_v60 = vadd.f32 %v2659_v31, %v2437_v59 }
 0x5d9   :  { %2470 = vst.msk [vmem:[%s4255_s11 + $0x40] sm:$0xff] %vm2461_vm15, %v2438_v60 }
 0x5de   :  { %v2440_v62 = vpop.f32.mrf.mxu2 }
 0x5df   :  { %v2441_v63 = vadd.f32 %v2659_v31, %v2440_v62 }
 0x5e1   :  { %2471 = vst.msk [vmem:[%s4255_s11 + $0x48] sm:$0xff] %vm2461_vm15, %v2441_v63 }
 0x5e6   :  { %v2443_v1 = vpop.f32.mrf.mxu2 }
 0x5e7   :  { %v2444_v2 = vadd.f32 %v2659_v31, %v2443_v1 }
 0x5e9   :  { %2472 = vst.msk [vmem:[%s4255_s11 + $0x50] sm:$0xff] %vm2461_vm15, %v2444_v2 }
 0x5ee   :  { %v2446_v11 = vpop.f32.mrf.mxu2 }
 0x5ef   :  { %v2447_v53 = vadd.f32 %v2659_v31, %v2446_v11 }
 0x5f1   :  { %2473 = vst.msk [vmem:[%s4255_s11 + $0x58] sm:$0xff] %vm2461_vm15, %v2447_v53 }
 0x5f6   :  { %v2449_v14 = vpop.f32.mrf.mxu2 }
 0x5f7   :  { %v2450_v12 = vadd.f32 %v2659_v31, %v2449_v14 }
 0x5f9   :  { %2474 = vst.msk [vmem:[%s4255_s11 + $0x60] sm:$0xff] %vm2461_vm15, %v2450_v12 }
 0x5fe   :  { %v2452_v3 = vpop.f32.mrf.mxu2 }
 0x5ff   :  { %v2453_v56 = vadd.f32 %v2659_v31, %v2452_v3 }
 0x601   :  { %2475 = vst.msk [vmem:[%s4255_s11 + $0x68] sm:$0xff] %vm2461_vm15, %v2453_v56 }

</bundles_post_ra>
